<compile_context>
chip_gen: v6e
topology: v6e:2x2x1
jax: 0.10.0
libtpu: 0.0.40
codegen_flags: <defaults>
</compile_context>

<pallas_src>
import functools

import jax
import jax.numpy as jnp
from jax.experimental import pallas as pl
from jax.experimental.pallas import tpu as pltpu


def _decoder_kernel(x_ref, wih_ref, whh_ref, b_ref, wlin_ref, blin_ref,
                    out_ref,
                    gxi_ref, gxf_ref, gxg_ref, gxo_ref,
                    hall_ref, h_ref, c_ref,
                    *, seq_len, batch, hidden):
    """Whole LSTM decoder forward in one invocation (no grid)."""
    T, BP, H = seq_len, batch, hidden
    E = x_ref.shape[-1]
    V = wlin_ref.shape[-1]

    # ---- Hoisted input projection: no serial dependency, so do all T*BP rows
    # at once per gate.  The combined LSTM bias is folded in here exactly once.
    x2d = x_ref[...].reshape(T * BP, E)
    gate_out = (gxi_ref, gxf_ref, gxg_ref, gxo_ref)      # PyTorch order [i, f, g, o]
    for k in range(4):
        gx = jnp.dot(x2d, wih_ref[k], preferred_element_type=jnp.float32) + b_ref[k]
        gate_out[k][...] = gx.reshape(T, BP, H)

    h_ref[...] = jnp.zeros_like(h_ref)
    c_ref[...] = jnp.zeros_like(c_ref)

    # ---- Serial recurrence: fully unrolled (T is small & static here; for long
    # sequences switch to lax.fori_loop(..., unroll=True)).  Only h @ W_hh plus
    # the elementwise gate math is on the critical chain; gates are separate
    # lane-aligned (BP, H) tiles, so no cross-lane slicing per step.
    for t in range(T):
        h = h_ref[...]
        i_g = jax.nn.sigmoid(
            jnp.dot(h, whh_ref[0], preferred_element_type=jnp.float32) + gxi_ref[t])
        f_g = jax.nn.sigmoid(
            jnp.dot(h, whh_ref[1], preferred_element_type=jnp.float32) + gxf_ref[t])
        g_g = jnp.tanh(
            jnp.dot(h, whh_ref[2], preferred_element_type=jnp.float32) + gxg_ref[t])
        o_g = jax.nn.sigmoid(
            jnp.dot(h, whh_ref[3], preferred_element_type=jnp.float32) + gxo_ref[t])
        c_new = f_g * c_ref[...] + i_g * g_g
        h_new = o_g * jnp.tanh(c_new)
        c_ref[...] = c_new
        h_ref[...] = h_new
        hall_ref[:, t, :] = h_new            # store batch-first (static index t)

    # ---- Deferred, batched output projection + single lane-dense batch-first
    # store of the whole logits slab.  No per-step V-wide work, no wrapper
    # transpose of the (B, T, V) output.
    h2d = hall_ref[...].reshape(BP * T, H)
    logits = (jnp.dot(h2d, wlin_ref[...], preferred_element_type=jnp.float32)
              + blin_ref[...])
    out_ref[...] = logits.reshape(BP, T, V)


def decoder_rnn_forward(params, features, captions):
    """Pallas equivalent of DecoderRNN.forward.

    features: (B, E) float32  (image feature vector, same size as embedding)
    captions: (B, S) int32    token ids
    returns:  (B, S, V) float32 logits   (T = S because captions[:, :-1] is used)
    """
    emb_table = params["embedding"]                                 # (V, E)
    embeds = jnp.take(emb_table, captions[:, :-1], axis=0)          # (B, S-1, E)
    inputs = jnp.concatenate([features[:, None, :], embeds], 1)     # (B, T, E)
    inputs = inputs.astype(jnp.float32)

    B, T, E = inputs.shape
    H = params["w_hh_t"].shape[0]
    V = params["w_lin_t"].shape[1]

    # Pad batch to the f32 sublane tile (8) so every vreg / MXU pass / store is
    # unmasked.  Padded rows are dead and sliced off at the end.
    BP = max(8, ((B + 7) // 8) * 8)
    x = jnp.transpose(inputs, (1, 0, 2))                            # (T, B, E)
    if BP != B:
        x = jnp.pad(x, ((0, 0), (0, BP - B), (0, 0)))               # (T, BP, E)

    # Pre-split LSTM weights per gate (PyTorch order [i, f, g, o] along 4H).
    wih = params["w_ih_t"].reshape(E, 4, H).transpose(1, 0, 2)      # (4, E, H)
    whh = params["w_hh_t"].reshape(H, 4, H).transpose(1, 0, 2)      # (4, H, H)
    b = (params["b_ih"] + params["b_hh"]).reshape(4, 1, H)          # (4, 1, H)
    wlin = params["w_lin_t"]                                        # (H, V)
    blin = params["b_lin"].reshape(1, V)                            # (1, V)

    kernel = functools.partial(_decoder_kernel, seq_len=T, batch=BP, hidden=H)
    vmem_spec = pl.BlockSpec(memory_space=pltpu.MemorySpace.VMEM)

    out_pad = pl.pallas_call(
        kernel,
        out_shape=jax.ShapeDtypeStruct((BP, T, V), jnp.float32),    # batch-first
        in_specs=[vmem_spec] * 6,
        out_specs=vmem_spec,
        scratch_shapes=[
            pltpu.VMEM((T, BP, H), jnp.float32),    # gx: input gate
            pltpu.VMEM((T, BP, H), jnp.float32),    # gx: forget gate
            pltpu.VMEM((T, BP, H), jnp.float32),    # gx: cell gate
            pltpu.VMEM((T, BP, H), jnp.float32),    # gx: output gate
            pltpu.VMEM((BP, T, H), jnp.float32),    # all hidden states (batch-first)
            pltpu.VMEM((BP, H), jnp.float32),       # h state
            pltpu.VMEM((BP, H), jnp.float32),       # c state
        ],
    )(x, wih, whh, b, wlin, blin)

    return out_pad[:B]                                              # (B, T, V)


def _reference_forward(params, features, captions):
    """Pure-JAX reference (mirrors torch nn.LSTM batch_first semantics)."""
    emb = jnp.take(params["embedding"], captions[:, :-1], axis=0)
    x = jnp.concatenate([features[:, None, :], emb], 1)             # (B, T, E)
    B, T, E = x.shape
    H = params["w_hh_t"].shape[0]
    b = (params["b_ih"] + params["b_hh"])[None, :]

    def step(carry, x_t):
        h, c = carry
        gates = x_t @ params["w_ih_t"] + h @ params["w_hh_t"] + b
        i = jax.nn.sigmoid(gates[:, 0 * H:1 * H])
        f = jax.nn.sigmoid(gates[:, 1 * H:2 * H])
        g = jnp.tanh(gates[:, 2 * H:3 * H])
        o = jax.nn.sigmoid(gates[:, 3 * H:4 * H])
        c = f * c + i * g
        h = o * jnp.tanh(c)
        return (h, c), h

    h0 = jnp.zeros((B, H), jnp.float32)
    (_, _), hs = jax.lax.scan(step, (h0, h0), jnp.transpose(x, (1, 0, 2)))
    hs = jnp.transpose(hs, (1, 0, 2))                               # (B, T, H)
    return hs @ params["w_lin_t"] + params["b_lin"][None, None, :]


def init_params(key, embed_size, hidden_size, vocab_size):
    ks = jax.random.split(key, 7)
    s = 0.1
    return {
        "embedding": jax.random.normal(ks[0], (vocab_size, embed_size), jnp.float32) * s,
        # stored transposed relative to PyTorch: (in_features, 4H) / (H, 4H) / (H, V)
        "w_ih_t": jax.random.normal(ks[1], (embed_size, 4 * hidden_size), jnp.float32) * s,
        "w_hh_t": jax.random.normal(ks[2], (hidden_size, 4 * hidden_size), jnp.float32) * s,
        "b_ih": jax.random.normal(ks[3], (4 * hidden_size,), jnp.float32) * s,
        "b_hh": jax.random.normal(ks[4], (4 * hidden_size,), jnp.float32) * s,
        "w_lin_t": jax.random.normal(ks[5], (hidden_size, vocab_size), jnp.float32) * s,
        "b_lin": jax.random.normal(ks[6], (vocab_size,), jnp.float32) * s,
    }


if __name__ == "__main__":
    B, S = 2, 8          # batch, caption length  -> LSTM runs T = S steps
    EMBED, HIDDEN, VOCAB = 32, 32, 128

    key = jax.random.PRNGKey(0)
    pkey, fkey, ckey = jax.random.split(key, 3)
    params = init_params(pkey, EMBED, HIDDEN, VOCAB)

    features = jax.random.normal(fkey, (B, EMBED), jnp.float32)
    captions = jax.random.randint(ckey, (B, S), 0, VOCAB, dtype=jnp.int32)

    out = decoder_rnn_forward(params, features, captions)
    out = jax.block_until_ready(out)

    ref = _reference_forward(params, features, captions)
    assert out.shape == (B, S, VOCAB), out.shape
    assert jnp.allclose(out, ref, atol=2e-5, rtol=1e-5), "mismatch vs reference"

    print("KERNEL_OK")
</pallas_src>

<mosaic_0001>
module attributes {stable_mosaic.version = 11 : i64} {
  func.func @_decoder_kernel(%arg0: memref<8x8x32xf32, #tpu.memory_space<vmem>>, %arg1: memref<4x32x32xf32, #tpu.memory_space<vmem>>, %arg2: memref<4x32x32xf32, #tpu.memory_space<vmem>>, %arg3: memref<4x1x32xf32, #tpu.memory_space<vmem>>, %arg4: memref<32x128xf32, #tpu.memory_space<vmem>>, %arg5: memref<1x128xf32, #tpu.memory_space<vmem>>, %arg6: memref<8x8x128xf32, #tpu.memory_space<vmem>>, %arg7: memref<8x8x32xf32, #tpu.memory_space<vmem>>, %arg8: memref<8x8x32xf32, #tpu.memory_space<vmem>>, %arg9: memref<8x8x32xf32, #tpu.memory_space<vmem>>, %arg10: memref<8x8x32xf32, #tpu.memory_space<vmem>>, %arg11: memref<8x8x32xf32, #tpu.memory_space<vmem>>, %arg12: memref<8x32xf32, #tpu.memory_space<vmem>>, %arg13: memref<8x32xf32, #tpu.memory_space<vmem>>) attributes {dimension_semantics = [], scalar_prefetch = 0 : i64, scratch_operands = 7 : i64, tpu.core_type = #tpu.core_type<tc>} {
    %c0 = arith.constant 0 : index
    %c0_0 = arith.constant 0 : index
    %c0_1 = arith.constant 0 : index
    %0 = vector.load %arg0[%c0, %c0_0, %c0_1] : memref<8x8x32xf32, #tpu.memory_space<vmem>>, vector<8x8x32xf32>
    %1 = vector.shape_cast %0 : vector<8x8x32xf32> to vector<64x32xf32>
    %c0_2 = arith.constant 0 : index
    %c0_3 = arith.constant 0 : index
    %c0_4 = arith.constant 0 : index
    %2 = vector.load %arg1[%c0_2, %c0_3, %c0_4] : memref<4x32x32xf32, #tpu.memory_space<vmem>>, vector<1x32x32xf32>
    %3 = vector.shape_cast %2 : vector<1x32x32xf32> to vector<32x32xf32>
    %cst = arith.constant dense<0.000000e+00> : vector<64x32xf32>
    %4 = tpu.matmul %1, %3, %cst {dimension_numbers = #tpu.dot_dimension_numbers<[1], [0], [0], [1], [0, 0, 1, 1], [], []>} : vector<64x32xf32>, vector<32x32xf32>, vector<64x32xf32> -> vector<64x32xf32>
    %c0_5 = arith.constant 0 : index
    %c0_6 = arith.constant 0 : index
    %c0_7 = arith.constant 0 : index
    %5 = vector.load %arg3[%c0_5, %c0_6, %c0_7] : memref<4x1x32xf32, #tpu.memory_space<vmem>>, vector<1x1x32xf32>
    %6 = vector.shape_cast %5 : vector<1x1x32xf32> to vector<1x32xf32>
    %7 = vector.broadcast %6 : vector<1x32xf32> to vector<64x32xf32>
    %8 = arith.addf %4, %7 : vector<64x32xf32>
    %9 = vector.shape_cast %8 : vector<64x32xf32> to vector<8x8x32xf32>
    %c0_8 = arith.constant 0 : index
    %c0_9 = arith.constant 0 : index
    %c0_10 = arith.constant 0 : index
    %10 = vector.load %arg7[%c0_8, %c0_9, %c0_10] : memref<8x8x32xf32, #tpu.memory_space<vmem>>, vector<8x8x32xf32>
    tpu.vector_store %arg7[%c0_8, %c0_9, %c0_10], %9 {strides = array<i32>} : memref<8x8x32xf32, #tpu.memory_space<vmem>>, vector<8x8x32xf32>,
    %c1 = arith.constant 1 : index
    %c0_11 = arith.constant 0 : index
    %c0_12 = arith.constant 0 : index
    %11 = vector.load %arg1[%c1, %c0_11, %c0_12] : memref<4x32x32xf32, #tpu.memory_space<vmem>>, vector<1x32x32xf32>
    %12 = vector.shape_cast %11 : vector<1x32x32xf32> to vector<32x32xf32>
    %cst_13 = arith.constant dense<0.000000e+00> : vector<64x32xf32>
    %13 = tpu.matmul %1, %12, %cst_13 {dimension_numbers = #tpu.dot_dimension_numbers<[1], [0], [0], [1], [0, 0, 1, 1], [], []>} : vector<64x32xf32>, vector<32x32xf32>, vector<64x32xf32> -> vector<64x32xf32>
    %c1_14 = arith.constant 1 : index
    %c0_15 = arith.constant 0 : index
    %c0_16 = arith.constant 0 : index
    %14 = vector.load %arg3[%c1_14, %c0_15, %c0_16] : memref<4x1x32xf32, #tpu.memory_space<vmem>>, vector<1x1x32xf32>
    %15 = vector.shape_cast %14 : vector<1x1x32xf32> to vector<1x32xf32>
    %16 = vector.broadcast %15 : vector<1x32xf32> to vector<64x32xf32>
    %17 = arith.addf %13, %16 : vector<64x32xf32>
    %18 = vector.shape_cast %17 : vector<64x32xf32> to vector<8x8x32xf32>
    %c0_17 = arith.constant 0 : index
    %c0_18 = arith.constant 0 : index
    %c0_19 = arith.constant 0 : index
    %19 = vector.load %arg8[%c0_17, %c0_18, %c0_19] : memref<8x8x32xf32, #tpu.memory_space<vmem>>, vector<8x8x32xf32>
    tpu.vector_store %arg8[%c0_17, %c0_18, %c0_19], %18 {strides = array<i32>} : memref<8x8x32xf32, #tpu.memory_space<vmem>>, vector<8x8x32xf32>,
    %c2 = arith.constant 2 : index
    %c0_20 = arith.constant 0 : index
    %c0_21 = arith.constant 0 : index
    %20 = vector.load %arg1[%c2, %c0_20, %c0_21] : memref<4x32x32xf32, #tpu.memory_space<vmem>>, vector<1x32x32xf32>
    %21 = vector.shape_cast %20 : vector<1x32x32xf32> to vector<32x32xf32>
    %cst_22 = arith.constant dense<0.000000e+00> : vector<64x32xf32>
    %22 = tpu.matmul %1, %21, %cst_22 {dimension_numbers = #tpu.dot_dimension_numbers<[1], [0], [0], [1], [0, 0, 1, 1], [], []>} : vector<64x32xf32>, vector<32x32xf32>, vector<64x32xf32> -> vector<64x32xf32>
    %c2_23 = arith.constant 2 : index
    %c0_24 = arith.constant 0 : index
    %c0_25 = arith.constant 0 : index
    %23 = vector.load %arg3[%c2_23, %c0_24, %c0_25] : memref<4x1x32xf32, #tpu.memory_space<vmem>>, vector<1x1x32xf32>
    %24 = vector.shape_cast %23 : vector<1x1x32xf32> to vector<1x32xf32>
    %25 = vector.broadcast %24 : vector<1x32xf32> to vector<64x32xf32>
    %26 = arith.addf %22, %25 : vector<64x32xf32>
    %27 = vector.shape_cast %26 : vector<64x32xf32> to vector<8x8x32xf32>
    %c0_26 = arith.constant 0 : index
    %c0_27 = arith.constant 0 : index
    %c0_28 = arith.constant 0 : index
    %28 = vector.load %arg9[%c0_26, %c0_27, %c0_28] : memref<8x8x32xf32, #tpu.memory_space<vmem>>, vector<8x8x32xf32>
    tpu.vector_store %arg9[%c0_26, %c0_27, %c0_28], %27 {strides = array<i32>} : memref<8x8x32xf32, #tpu.memory_space<vmem>>, vector<8x8x32xf32>,
    %c3 = arith.constant 3 : index
    %c0_29 = arith.constant 0 : index
    %c0_30 = arith.constant 0 : index
    %29 = vector.load %arg1[%c3, %c0_29, %c0_30] : memref<4x32x32xf32, #tpu.memory_space<vmem>>, vector<1x32x32xf32>
    %30 = vector.shape_cast %29 : vector<1x32x32xf32> to vector<32x32xf32>
    %cst_31 = arith.constant dense<0.000000e+00> : vector<64x32xf32>
    %31 = tpu.matmul %1, %30, %cst_31 {dimension_numbers = #tpu.dot_dimension_numbers<[1], [0], [0], [1], [0, 0, 1, 1], [], []>} : vector<64x32xf32>, vector<32x32xf32>, vector<64x32xf32> -> vector<64x32xf32>
    %c3_32 = arith.constant 3 : index
    %c0_33 = arith.constant 0 : index
    %c0_34 = arith.constant 0 : index
    %32 = vector.load %arg3[%c3_32, %c0_33, %c0_34] : memref<4x1x32xf32, #tpu.memory_space<vmem>>, vector<1x1x32xf32>
    %33 = vector.shape_cast %32 : vector<1x1x32xf32> to vector<1x32xf32>
    %34 = vector.broadcast %33 : vector<1x32xf32> to vector<64x32xf32>
    %35 = arith.addf %31, %34 : vector<64x32xf32>
    %36 = vector.shape_cast %35 : vector<64x32xf32> to vector<8x8x32xf32>
    %c0_35 = arith.constant 0 : index
    %c0_36 = arith.constant 0 : index
    %c0_37 = arith.constant 0 : index
    %37 = vector.load %arg10[%c0_35, %c0_36, %c0_37] : memref<8x8x32xf32, #tpu.memory_space<vmem>>, vector<8x8x32xf32>
    tpu.vector_store %arg10[%c0_35, %c0_36, %c0_37], %36 {strides = array<i32>} : memref<8x8x32xf32, #tpu.memory_space<vmem>>, vector<8x8x32xf32>,
    %cst_38 = arith.constant 0.000000e+00 : f32
    %38 = vector.broadcast %cst_38 : f32 to vector<8x32xf32>
    %c0_39 = arith.constant 0 : index
    %c0_40 = arith.constant 0 : index
    %39 = vector.load %arg12[%c0_39, %c0_40] : memref<8x32xf32, #tpu.memory_space<vmem>>, vector<8x32xf32>
    tpu.vector_store %arg12[%c0_39, %c0_40], %38 {strides = array<i32>} : memref<8x32xf32, #tpu.memory_space<vmem>>, vector<8x32xf32>,
    %cst_41 = arith.constant 0.000000e+00 : f32
    %40 = vector.broadcast %cst_41 : f32 to vector<8x32xf32>
    %c0_42 = arith.constant 0 : index
    %c0_43 = arith.constant 0 : index
    %41 = vector.load %arg13[%c0_42, %c0_43] : memref<8x32xf32, #tpu.memory_space<vmem>>, vector<8x32xf32>
    tpu.vector_store %arg13[%c0_42, %c0_43], %40 {strides = array<i32>} : memref<8x32xf32, #tpu.memory_space<vmem>>, vector<8x32xf32>,
    %c0_44 = arith.constant 0 : index
    %c0_45 = arith.constant 0 : index
    %42 = vector.load %arg12[%c0_44, %c0_45] : memref<8x32xf32, #tpu.memory_space<vmem>>, vector<8x32xf32>
    %c0_46 = arith.constant 0 : index
    %c0_47 = arith.constant 0 : index
    %c0_48 = arith.constant 0 : index
    %43 = vector.load %arg2[%c0_46, %c0_47, %c0_48] : memref<4x32x32xf32, #tpu.memory_space<vmem>>, vector<1x32x32xf32>
    %44 = vector.shape_cast %43 : vector<1x32x32xf32> to vector<32x32xf32>
    %cst_49 = arith.constant dense<0.000000e+00> : vector<8x32xf32>
    %45 = tpu.matmul %42, %44, %cst_49 {dimension_numbers = #tpu.dot_dimension_numbers<[1], [0], [0], [1], [0, 0, 1, 1], [], []>} : vector<8x32xf32>, vector<32x32xf32>, vector<8x32xf32> -> vector<8x32xf32>
    %c0_50 = arith.constant 0 : index
    %c0_51 = arith.constant 0 : index
    %c0_52 = arith.constant 0 : index
    %46 = vector.load %arg7[%c0_50, %c0_51, %c0_52] : memref<8x8x32xf32, #tpu.memory_space<vmem>>, vector<1x8x32xf32>
    %47 = vector.shape_cast %46 : vector<1x8x32xf32> to vector<8x32xf32>
    %48 = arith.addf %45, %47 : vector<8x32xf32>
    %49 = arith.negf %48 : vector<8x32xf32>
    %50 = math.exp %49 : vector<8x32xf32>
    %cst_53 = arith.constant 1.000000e+00 : f32
    %51 = vector.broadcast %cst_53 : f32 to vector<8x32xf32>
    %52 = arith.addf %51, %50 : vector<8x32xf32>
    %53 = arith.divf %51, %52 : vector<8x32xf32>
    %c1_54 = arith.constant 1 : index
    %c0_55 = arith.constant 0 : index
    %c0_56 = arith.constant 0 : index
    %54 = vector.load %arg2[%c1_54, %c0_55, %c0_56] : memref<4x32x32xf32, #tpu.memory_space<vmem>>, vector<1x32x32xf32>
    %55 = vector.shape_cast %54 : vector<1x32x32xf32> to vector<32x32xf32>
    %cst_57 = arith.constant dense<0.000000e+00> : vector<8x32xf32>
    %56 = tpu.matmul %42, %55, %cst_57 {dimension_numbers = #tpu.dot_dimension_numbers<[1], [0], [0], [1], [0, 0, 1, 1], [], []>} : vector<8x32xf32>, vector<32x32xf32>, vector<8x32xf32> -> vector<8x32xf32>
    %c0_58 = arith.constant 0 : index
    %c0_59 = arith.constant 0 : index
    %c0_60 = arith.constant 0 : index
    %57 = vector.load %arg8[%c0_58, %c0_59, %c0_60] : memref<8x8x32xf32, #tpu.memory_space<vmem>>, vector<1x8x32xf32>
    %58 = vector.shape_cast %57 : vector<1x8x32xf32> to vector<8x32xf32>
    %59 = arith.addf %56, %58 : vector<8x32xf32>
    %60 = arith.negf %59 : vector<8x32xf32>
    %61 = math.exp %60 : vector<8x32xf32>
    %cst_61 = arith.constant 1.000000e+00 : f32
    %62 = vector.broadcast %cst_61 : f32 to vector<8x32xf32>
    %63 = arith.addf %62, %61 : vector<8x32xf32>
    %64 = arith.divf %62, %63 : vector<8x32xf32>
    %c2_62 = arith.constant 2 : index
    %c0_63 = arith.constant 0 : index
    %c0_64 = arith.constant 0 : index
    %65 = vector.load %arg2[%c2_62, %c0_63, %c0_64] : memref<4x32x32xf32, #tpu.memory_space<vmem>>, vector<1x32x32xf32>
    %66 = vector.shape_cast %65 : vector<1x32x32xf32> to vector<32x32xf32>
    %cst_65 = arith.constant dense<0.000000e+00> : vector<8x32xf32>
    %67 = tpu.matmul %42, %66, %cst_65 {dimension_numbers = #tpu.dot_dimension_numbers<[1], [0], [0], [1], [0, 0, 1, 1], [], []>} : vector<8x32xf32>, vector<32x32xf32>, vector<8x32xf32> -> vector<8x32xf32>
    %c0_66 = arith.constant 0 : index
    %c0_67 = arith.constant 0 : index
    %c0_68 = arith.constant 0 : index
    %68 = vector.load %arg9[%c0_66, %c0_67, %c0_68] : memref<8x8x32xf32, #tpu.memory_space<vmem>>, vector<1x8x32xf32>
    %69 = vector.shape_cast %68 : vector<1x8x32xf32> to vector<8x32xf32>
    %70 = arith.addf %67, %69 : vector<8x32xf32>
    %71 = math.tanh %70 : vector<8x32xf32>
    %c3_69 = arith.constant 3 : index
    %c0_70 = arith.constant 0 : index
    %c0_71 = arith.constant 0 : index
    %72 = vector.load %arg2[%c3_69, %c0_70, %c0_71] : memref<4x32x32xf32, #tpu.memory_space<vmem>>, vector<1x32x32xf32>
    %73 = vector.shape_cast %72 : vector<1x32x32xf32> to vector<32x32xf32>
    %cst_72 = arith.constant dense<0.000000e+00> : vector<8x32xf32>
    %74 = tpu.matmul %42, %73, %cst_72 {dimension_numbers = #tpu.dot_dimension_numbers<[1], [0], [0], [1], [0, 0, 1, 1], [], []>} : vector<8x32xf32>, vector<32x32xf32>, vector<8x32xf32> -> vector<8x32xf32>
    %c0_73 = arith.constant 0 : index
    %c0_74 = arith.constant 0 : index
    %c0_75 = arith.constant 0 : index
    %75 = vector.load %arg10[%c0_73, %c0_74, %c0_75] : memref<8x8x32xf32, #tpu.memory_space<vmem>>, vector<1x8x32xf32>
    %76 = vector.shape_cast %75 : vector<1x8x32xf32> to vector<8x32xf32>
    %77 = arith.addf %74, %76 : vector<8x32xf32>
    %78 = arith.negf %77 : vector<8x32xf32>
    %79 = math.exp %78 : vector<8x32xf32>
    %cst_76 = arith.constant 1.000000e+00 : f32
    %80 = vector.broadcast %cst_76 : f32 to vector<8x32xf32>
    %81 = arith.addf %80, %79 : vector<8x32xf32>
    %82 = arith.divf %80, %81 : vector<8x32xf32>
    %c0_77 = arith.constant 0 : index
    %c0_78 = arith.constant 0 : index
    %83 = vector.load %arg13[%c0_77, %c0_78] : memref<8x32xf32, #tpu.memory_space<vmem>>, vector<8x32xf32>
    %84 = arith.mulf %64, %83 : vector<8x32xf32>
    %85 = arith.mulf %53, %71 : vector<8x32xf32>
    %86 = arith.addf %84, %85 : vector<8x32xf32>
    %87 = math.tanh %86 : vector<8x32xf32>
    %88 = arith.mulf %82, %87 : vector<8x32xf32>
    %c0_79 = arith.constant 0 : index
    %c0_80 = arith.constant 0 : index
    %89 = vector.load %arg13[%c0_79, %c0_80] : memref<8x32xf32, #tpu.memory_space<vmem>>, vector<8x32xf32>
    tpu.vector_store %arg13[%c0_79, %c0_80], %86 {strides = array<i32>} : memref<8x32xf32, #tpu.memory_space<vmem>>, vector<8x32xf32>,
    %c0_81 = arith.constant 0 : index
    %c0_82 = arith.constant 0 : index
    %90 = vector.load %arg12[%c0_81, %c0_82] : memref<8x32xf32, #tpu.memory_space<vmem>>, vector<8x32xf32>
    tpu.vector_store %arg12[%c0_81, %c0_82], %88 {strides = array<i32>} : memref<8x32xf32, #tpu.memory_space<vmem>>, vector<8x32xf32>,
    %c0_83 = arith.constant 0 : index
    %c0_84 = arith.constant 0 : index
    %c0_85 = arith.constant 0 : index
    %91 = vector.load %arg11[%c0_83, %c0_84, %c0_85] : memref<8x8x32xf32, #tpu.memory_space<vmem>>, vector<8x1x32xf32>
    %92 = vector.shape_cast %91 : vector<8x1x32xf32> to vector<8x32xf32>
    %93 = vector.shape_cast %88 : vector<8x32xf32> to vector<8x1x32xf32>
    tpu.vector_store %arg11[%c0_83, %c0_84, %c0_85], %93 {strides = array<i32>} : memref<8x8x32xf32, #tpu.memory_space<vmem>>, vector<8x1x32xf32>,
    %c0_86 = arith.constant 0 : index
    %c0_87 = arith.constant 0 : index
    %94 = vector.load %arg12[%c0_86, %c0_87] : memref<8x32xf32, #tpu.memory_space<vmem>>, vector<8x32xf32>
    %c0_88 = arith.constant 0 : index
    %c0_89 = arith.constant 0 : index
    %c0_90 = arith.constant 0 : index
    %95 = vector.load %arg2[%c0_88, %c0_89, %c0_90] : memref<4x32x32xf32, #tpu.memory_space<vmem>>, vector<1x32x32xf32>
    %96 = vector.shape_cast %95 : vector<1x32x32xf32> to vector<32x32xf32>
    %cst_91 = arith.constant dense<0.000000e+00> : vector<8x32xf32>
    %97 = tpu.matmul %94, %96, %cst_91 {dimension_numbers = #tpu.dot_dimension_numbers<[1], [0], [0], [1], [0, 0, 1, 1], [], []>} : vector<8x32xf32>, vector<32x32xf32>, vector<8x32xf32> -> vector<8x32xf32>
    %c1_92 = arith.constant 1 : index
    %c0_93 = arith.constant 0 : index
    %c0_94 = arith.constant 0 : index
    %98 = vector.load %arg7[%c1_92, %c0_93, %c0_94] : memref<8x8x32xf32, #tpu.memory_space<vmem>>, vector<1x8x32xf32>
    %99 = vector.shape_cast %98 : vector<1x8x32xf32> to vector<8x32xf32>
    %100 = arith.addf %97, %99 : vector<8x32xf32>
    %101 = arith.negf %100 : vector<8x32xf32>
    %102 = math.exp %101 : vector<8x32xf32>
    %cst_95 = arith.constant 1.000000e+00 : f32
    %103 = vector.broadcast %cst_95 : f32 to vector<8x32xf32>
    %104 = arith.addf %103, %102 : vector<8x32xf32>
    %105 = arith.divf %103, %104 : vector<8x32xf32>
    %c1_96 = arith.constant 1 : index
    %c0_97 = arith.constant 0 : index
    %c0_98 = arith.constant 0 : index
    %106 = vector.load %arg2[%c1_96, %c0_97, %c0_98] : memref<4x32x32xf32, #tpu.memory_space<vmem>>, vector<1x32x32xf32>
    %107 = vector.shape_cast %106 : vector<1x32x32xf32> to vector<32x32xf32>
    %cst_99 = arith.constant dense<0.000000e+00> : vector<8x32xf32>
    %108 = tpu.matmul %94, %107, %cst_99 {dimension_numbers = #tpu.dot_dimension_numbers<[1], [0], [0], [1], [0, 0, 1, 1], [], []>} : vector<8x32xf32>, vector<32x32xf32>, vector<8x32xf32> -> vector<8x32xf32>
    %c1_100 = arith.constant 1 : index
    %c0_101 = arith.constant 0 : index
    %c0_102 = arith.constant 0 : index
    %109 = vector.load %arg8[%c1_100, %c0_101, %c0_102] : memref<8x8x32xf32, #tpu.memory_space<vmem>>, vector<1x8x32xf32>
    %110 = vector.shape_cast %109 : vector<1x8x32xf32> to vector<8x32xf32>
    %111 = arith.addf %108, %110 : vector<8x32xf32>
    %112 = arith.negf %111 : vector<8x32xf32>
    %113 = math.exp %112 : vector<8x32xf32>
    %cst_103 = arith.constant 1.000000e+00 : f32
    %114 = vector.broadcast %cst_103 : f32 to vector<8x32xf32>
    %115 = arith.addf %114, %113 : vector<8x32xf32>
    %116 = arith.divf %114, %115 : vector<8x32xf32>
    %c2_104 = arith.constant 2 : index
    %c0_105 = arith.constant 0 : index
    %c0_106 = arith.constant 0 : index
    %117 = vector.load %arg2[%c2_104, %c0_105, %c0_106] : memref<4x32x32xf32, #tpu.memory_space<vmem>>, vector<1x32x32xf32>
    %118 = vector.shape_cast %117 : vector<1x32x32xf32> to vector<32x32xf32>
    %cst_107 = arith.constant dense<0.000000e+00> : vector<8x32xf32>
    %119 = tpu.matmul %94, %118, %cst_107 {dimension_numbers = #tpu.dot_dimension_numbers<[1], [0], [0], [1], [0, 0, 1, 1], [], []>} : vector<8x32xf32>, vector<32x32xf32>, vector<8x32xf32> -> vector<8x32xf32>
    %c1_108 = arith.constant 1 : index
    %c0_109 = arith.constant 0 : index
    %c0_110 = arith.constant 0 : index
    %120 = vector.load %arg9[%c1_108, %c0_109, %c0_110] : memref<8x8x32xf32, #tpu.memory_space<vmem>>, vector<1x8x32xf32>
    %121 = vector.shape_cast %120 : vector<1x8x32xf32> to vector<8x32xf32>
    %122 = arith.addf %119, %121 : vector<8x32xf32>
    %123 = math.tanh %122 : vector<8x32xf32>
    %c3_111 = arith.constant 3 : index
    %c0_112 = arith.constant 0 : index
    %c0_113 = arith.constant 0 : index
    %124 = vector.load %arg2[%c3_111, %c0_112, %c0_113] : memref<4x32x32xf32, #tpu.memory_space<vmem>>, vector<1x32x32xf32>
    %125 = vector.shape_cast %124 : vector<1x32x32xf32> to vector<32x32xf32>
    %cst_114 = arith.constant dense<0.000000e+00> : vector<8x32xf32>
    %126 = tpu.matmul %94, %125, %cst_114 {dimension_numbers = #tpu.dot_dimension_numbers<[1], [0], [0], [1], [0, 0, 1, 1], [], []>} : vector<8x32xf32>, vector<32x32xf32>, vector<8x32xf32> -> vector<8x32xf32>
    %c1_115 = arith.constant 1 : index
    %c0_116 = arith.constant 0 : index
    %c0_117 = arith.constant 0 : index
    %127 = vector.load %arg10[%c1_115, %c0_116, %c0_117] : memref<8x8x32xf32, #tpu.memory_space<vmem>>, vector<1x8x32xf32>
    %128 = vector.shape_cast %127 : vector<1x8x32xf32> to vector<8x32xf32>
    %129 = arith.addf %126, %128 : vector<8x32xf32>
    %130 = arith.negf %129 : vector<8x32xf32>
    %131 = math.exp %130 : vector<8x32xf32>
    %cst_118 = arith.constant 1.000000e+00 : f32
    %132 = vector.broadcast %cst_118 : f32 to vector<8x32xf32>
    %133 = arith.addf %132, %131 : vector<8x32xf32>
    %134 = arith.divf %132, %133 : vector<8x32xf32>
    %c0_119 = arith.constant 0 : index
    %c0_120 = arith.constant 0 : index
    %135 = vector.load %arg13[%c0_119, %c0_120] : memref<8x32xf32, #tpu.memory_space<vmem>>, vector<8x32xf32>
    %136 = arith.mulf %116, %135 : vector<8x32xf32>
    %137 = arith.mulf %105, %123 : vector<8x32xf32>
    %138 = arith.addf %136, %137 : vector<8x32xf32>
    %139 = math.tanh %138 : vector<8x32xf32>
    %140 = arith.mulf %134, %139 : vector<8x32xf32>
    %c0_121 = arith.constant 0 : index
    %c0_122 = arith.constant 0 : index
    %141 = vector.load %arg13[%c0_121, %c0_122] : memref<8x32xf32, #tpu.memory_space<vmem>>, vector<8x32xf32>
    tpu.vector_store %arg13[%c0_121, %c0_122], %138 {strides = array<i32>} : memref<8x32xf32, #tpu.memory_space<vmem>>, vector<8x32xf32>,
    %c0_123 = arith.constant 0 : index
    %c0_124 = arith.constant 0 : index
    %142 = vector.load %arg12[%c0_123, %c0_124] : memref<8x32xf32, #tpu.memory_space<vmem>>, vector<8x32xf32>
    tpu.vector_store %arg12[%c0_123, %c0_124], %140 {strides = array<i32>} : memref<8x32xf32, #tpu.memory_space<vmem>>, vector<8x32xf32>,
    %c0_125 = arith.constant 0 : index
    %c1_126 = arith.constant 1 : index
    %c0_127 = arith.constant 0 : index
    %143 = vector.load %arg11[%c0_125, %c1_126, %c0_127] : memref<8x8x32xf32, #tpu.memory_space<vmem>>, vector<8x1x32xf32>
    %144 = vector.shape_cast %143 : vector<8x1x32xf32> to vector<8x32xf32>
    %145 = vector.shape_cast %140 : vector<8x32xf32> to vector<8x1x32xf32>
    tpu.vector_store %arg11[%c0_125, %c1_126, %c0_127], %145 {strides = array<i32>} : memref<8x8x32xf32, #tpu.memory_space<vmem>>, vector<8x1x32xf32>,
    %c0_128 = arith.constant 0 : index
    %c0_129 = arith.constant 0 : index
    %146 = vector.load %arg12[%c0_128, %c0_129] : memref<8x32xf32, #tpu.memory_space<vmem>>, vector<8x32xf32>
    %c0_130 = arith.constant 0 : index
    %c0_131 = arith.constant 0 : index
    %c0_132 = arith.constant 0 : index
    %147 = vector.load %arg2[%c0_130, %c0_131, %c0_132] : memref<4x32x32xf32, #tpu.memory_space<vmem>>, vector<1x32x32xf32>
    %148 = vector.shape_cast %147 : vector<1x32x32xf32> to vector<32x32xf32>
    %cst_133 = arith.constant dense<0.000000e+00> : vector<8x32xf32>
    %149 = tpu.matmul %146, %148, %cst_133 {dimension_numbers = #tpu.dot_dimension_numbers<[1], [0], [0], [1], [0, 0, 1, 1], [], []>} : vector<8x32xf32>, vector<32x32xf32>, vector<8x32xf32> -> vector<8x32xf32>
    %c2_134 = arith.constant 2 : index
    %c0_135 = arith.constant 0 : index
    %c0_136 = arith.constant 0 : index
    %150 = vector.load %arg7[%c2_134, %c0_135, %c0_136] : memref<8x8x32xf32, #tpu.memory_space<vmem>>, vector<1x8x32xf32>
    %151 = vector.shape_cast %150 : vector<1x8x32xf32> to vector<8x32xf32>
    %152 = arith.addf %149, %151 : vector<8x32xf32>
    %153 = arith.negf %152 : vector<8x32xf32>
    %154 = math.exp %153 : vector<8x32xf32>
    %cst_137 = arith.constant 1.000000e+00 : f32
    %155 = vector.broadcast %cst_137 : f32 to vector<8x32xf32>
    %156 = arith.addf %155, %154 : vector<8x32xf32>
    %157 = arith.divf %155, %156 : vector<8x32xf32>
    %c1_138 = arith.constant 1 : index
    %c0_139 = arith.constant 0 : index
    %c0_140 = arith.constant 0 : index
    %158 = vector.load %arg2[%c1_138, %c0_139, %c0_140] : memref<4x32x32xf32, #tpu.memory_space<vmem>>, vector<1x32x32xf32>
    %159 = vector.shape_cast %158 : vector<1x32x32xf32> to vector<32x32xf32>
    %cst_141 = arith.constant dense<0.000000e+00> : vector<8x32xf32>
    %160 = tpu.matmul %146, %159, %cst_141 {dimension_numbers = #tpu.dot_dimension_numbers<[1], [0], [0], [1], [0, 0, 1, 1], [], []>} : vector<8x32xf32>, vector<32x32xf32>, vector<8x32xf32> -> vector<8x32xf32>
    %c2_142 = arith.constant 2 : index
    %c0_143 = arith.constant 0 : index
    %c0_144 = arith.constant 0 : index
    %161 = vector.load %arg8[%c2_142, %c0_143, %c0_144] : memref<8x8x32xf32, #tpu.memory_space<vmem>>, vector<1x8x32xf32>
    %162 = vector.shape_cast %161 : vector<1x8x32xf32> to vector<8x32xf32>
    %163 = arith.addf %160, %162 : vector<8x32xf32>
    %164 = arith.negf %163 : vector<8x32xf32>
    %165 = math.exp %164 : vector<8x32xf32>
    %cst_145 = arith.constant 1.000000e+00 : f32
    %166 = vector.broadcast %cst_145 : f32 to vector<8x32xf32>
    %167 = arith.addf %166, %165 : vector<8x32xf32>
    %168 = arith.divf %166, %167 : vector<8x32xf32>
    %c2_146 = arith.constant 2 : index
    %c0_147 = arith.constant 0 : index
    %c0_148 = arith.constant 0 : index
    %169 = vector.load %arg2[%c2_146, %c0_147, %c0_148] : memref<4x32x32xf32, #tpu.memory_space<vmem>>, vector<1x32x32xf32>
    %170 = vector.shape_cast %169 : vector<1x32x32xf32> to vector<32x32xf32>
    %cst_149 = arith.constant dense<0.000000e+00> : vector<8x32xf32>
    %171 = tpu.matmul %146, %170, %cst_149 {dimension_numbers = #tpu.dot_dimension_numbers<[1], [0], [0], [1], [0, 0, 1, 1], [], []>} : vector<8x32xf32>, vector<32x32xf32>, vector<8x32xf32> -> vector<8x32xf32>
    %c2_150 = arith.constant 2 : index
    %c0_151 = arith.constant 0 : index
    %c0_152 = arith.constant 0 : index
    %172 = vector.load %arg9[%c2_150, %c0_151, %c0_152] : memref<8x8x32xf32, #tpu.memory_space<vmem>>, vector<1x8x32xf32>
    %173 = vector.shape_cast %172 : vector<1x8x32xf32> to vector<8x32xf32>
    %174 = arith.addf %171, %173 : vector<8x32xf32>
    %175 = math.tanh %174 : vector<8x32xf32>
    %c3_153 = arith.constant 3 : index
    %c0_154 = arith.constant 0 : index
    %c0_155 = arith.constant 0 : index
    %176 = vector.load %arg2[%c3_153, %c0_154, %c0_155] : memref<4x32x32xf32, #tpu.memory_space<vmem>>, vector<1x32x32xf32>
    %177 = vector.shape_cast %176 : vector<1x32x32xf32> to vector<32x32xf32>
    %cst_156 = arith.constant dense<0.000000e+00> : vector<8x32xf32>
    %178 = tpu.matmul %146, %177, %cst_156 {dimension_numbers = #tpu.dot_dimension_numbers<[1], [0], [0], [1], [0, 0, 1, 1], [], []>} : vector<8x32xf32>, vector<32x32xf32>, vector<8x32xf32> -> vector<8x32xf32>
    %c2_157 = arith.constant 2 : index
    %c0_158 = arith.constant 0 : index
    %c0_159 = arith.constant 0 : index
    %179 = vector.load %arg10[%c2_157, %c0_158, %c0_159] : memref<8x8x32xf32, #tpu.memory_space<vmem>>, vector<1x8x32xf32>
    %180 = vector.shape_cast %179 : vector<1x8x32xf32> to vector<8x32xf32>
    %181 = arith.addf %178, %180 : vector<8x32xf32>
    %182 = arith.negf %181 : vector<8x32xf32>
    %183 = math.exp %182 : vector<8x32xf32>
    %cst_160 = arith.constant 1.000000e+00 : f32
    %184 = vector.broadcast %cst_160 : f32 to vector<8x32xf32>
    %185 = arith.addf %184, %183 : vector<8x32xf32>
    %186 = arith.divf %184, %185 : vector<8x32xf32>
    %c0_161 = arith.constant 0 : index
    %c0_162 = arith.constant 0 : index
    %187 = vector.load %arg13[%c0_161, %c0_162] : memref<8x32xf32, #tpu.memory_space<vmem>>, vector<8x32xf32>
    %188 = arith.mulf %168, %187 : vector<8x32xf32>
    %189 = arith.mulf %157, %175 : vector<8x32xf32>
    %190 = arith.addf %188, %189 : vector<8x32xf32>
    %191 = math.tanh %190 : vector<8x32xf32>
    %192 = arith.mulf %186, %191 : vector<8x32xf32>
    %c0_163 = arith.constant 0 : index
    %c0_164 = arith.constant 0 : index
    %193 = vector.load %arg13[%c0_163, %c0_164] : memref<8x32xf32, #tpu.memory_space<vmem>>, vector<8x32xf32>
    tpu.vector_store %arg13[%c0_163, %c0_164], %190 {strides = array<i32>} : memref<8x32xf32, #tpu.memory_space<vmem>>, vector<8x32xf32>,
    %c0_165 = arith.constant 0 : index
    %c0_166 = arith.constant 0 : index
    %194 = vector.load %arg12[%c0_165, %c0_166] : memref<8x32xf32, #tpu.memory_space<vmem>>, vector<8x32xf32>
    tpu.vector_store %arg12[%c0_165, %c0_166], %192 {strides = array<i32>} : memref<8x32xf32, #tpu.memory_space<vmem>>, vector<8x32xf32>,
    %c0_167 = arith.constant 0 : index
    %c2_168 = arith.constant 2 : index
    %c0_169 = arith.constant 0 : index
    %195 = vector.load %arg11[%c0_167, %c2_168, %c0_169] : memref<8x8x32xf32, #tpu.memory_space<vmem>>, vector<8x1x32xf32>
    %196 = vector.shape_cast %195 : vector<8x1x32xf32> to vector<8x32xf32>
    %197 = vector.shape_cast %192 : vector<8x32xf32> to vector<8x1x32xf32>
    tpu.vector_store %arg11[%c0_167, %c2_168, %c0_169], %197 {strides = array<i32>} : memref<8x8x32xf32, #tpu.memory_space<vmem>>, vector<8x1x32xf32>,
    %c0_170 = arith.constant 0 : index
    %c0_171 = arith.constant 0 : index
    %198 = vector.load %arg12[%c0_170, %c0_171] : memref<8x32xf32, #tpu.memory_space<vmem>>, vector<8x32xf32>
    %c0_172 = arith.constant 0 : index
    %c0_173 = arith.constant 0 : index
    %c0_174 = arith.constant 0 : index
    %199 = vector.load %arg2[%c0_172, %c0_173, %c0_174] : memref<4x32x32xf32, #tpu.memory_space<vmem>>, vector<1x32x32xf32>
    %200 = vector.shape_cast %199 : vector<1x32x32xf32> to vector<32x32xf32>
    %cst_175 = arith.constant dense<0.000000e+00> : vector<8x32xf32>
    %201 = tpu.matmul %198, %200, %cst_175 {dimension_numbers = #tpu.dot_dimension_numbers<[1], [0], [0], [1], [0, 0, 1, 1], [], []>} : vector<8x32xf32>, vector<32x32xf32>, vector<8x32xf32> -> vector<8x32xf32>
    %c3_176 = arith.constant 3 : index
    %c0_177 = arith.constant 0 : index
    %c0_178 = arith.constant 0 : index
    %202 = vector.load %arg7[%c3_176, %c0_177, %c0_178] : memref<8x8x32xf32, #tpu.memory_space<vmem>>, vector<1x8x32xf32>
    %203 = vector.shape_cast %202 : vector<1x8x32xf32> to vector<8x32xf32>
    %204 = arith.addf %201, %203 : vector<8x32xf32>
    %205 = arith.negf %204 : vector<8x32xf32>
    %206 = math.exp %205 : vector<8x32xf32>
    %cst_179 = arith.constant 1.000000e+00 : f32
    %207 = vector.broadcast %cst_179 : f32 to vector<8x32xf32>
    %208 = arith.addf %207, %206 : vector<8x32xf32>
    %209 = arith.divf %207, %208 : vector<8x32xf32>
    %c1_180 = arith.constant 1 : index
    %c0_181 = arith.constant 0 : index
    %c0_182 = arith.constant 0 : index
    %210 = vector.load %arg2[%c1_180, %c0_181, %c0_182] : memref<4x32x32xf32, #tpu.memory_space<vmem>>, vector<1x32x32xf32>
    %211 = vector.shape_cast %210 : vector<1x32x32xf32> to vector<32x32xf32>
    %cst_183 = arith.constant dense<0.000000e+00> : vector<8x32xf32>
    %212 = tpu.matmul %198, %211, %cst_183 {dimension_numbers = #tpu.dot_dimension_numbers<[1], [0], [0], [1], [0, 0, 1, 1], [], []>} : vector<8x32xf32>, vector<32x32xf32>, vector<8x32xf32> -> vector<8x32xf32>
    %c3_184 = arith.constant 3 : index
    %c0_185 = arith.constant 0 : index
    %c0_186 = arith.constant 0 : index
    %213 = vector.load %arg8[%c3_184, %c0_185, %c0_186] : memref<8x8x32xf32, #tpu.memory_space<vmem>>, vector<1x8x32xf32>
    %214 = vector.shape_cast %213 : vector<1x8x32xf32> to vector<8x32xf32>
    %215 = arith.addf %212, %214 : vector<8x32xf32>
    %216 = arith.negf %215 : vector<8x32xf32>
    %217 = math.exp %216 : vector<8x32xf32>
    %cst_187 = arith.constant 1.000000e+00 : f32
    %218 = vector.broadcast %cst_187 : f32 to vector<8x32xf32>
    %219 = arith.addf %218, %217 : vector<8x32xf32>
    %220 = arith.divf %218, %219 : vector<8x32xf32>
    %c2_188 = arith.constant 2 : index
    %c0_189 = arith.constant 0 : index
    %c0_190 = arith.constant 0 : index
    %221 = vector.load %arg2[%c2_188, %c0_189, %c0_190] : memref<4x32x32xf32, #tpu.memory_space<vmem>>, vector<1x32x32xf32>
    %222 = vector.shape_cast %221 : vector<1x32x32xf32> to vector<32x32xf32>
    %cst_191 = arith.constant dense<0.000000e+00> : vector<8x32xf32>
    %223 = tpu.matmul %198, %222, %cst_191 {dimension_numbers = #tpu.dot_dimension_numbers<[1], [0], [0], [1], [0, 0, 1, 1], [], []>} : vector<8x32xf32>, vector<32x32xf32>, vector<8x32xf32> -> vector<8x32xf32>
    %c3_192 = arith.constant 3 : index
    %c0_193 = arith.constant 0 : index
    %c0_194 = arith.constant 0 : index
    %224 = vector.load %arg9[%c3_192, %c0_193, %c0_194] : memref<8x8x32xf32, #tpu.memory_space<vmem>>, vector<1x8x32xf32>
    %225 = vector.shape_cast %224 : vector<1x8x32xf32> to vector<8x32xf32>
    %226 = arith.addf %223, %225 : vector<8x32xf32>
    %227 = math.tanh %226 : vector<8x32xf32>
    %c3_195 = arith.constant 3 : index
    %c0_196 = arith.constant 0 : index
    %c0_197 = arith.constant 0 : index
    %228 = vector.load %arg2[%c3_195, %c0_196, %c0_197] : memref<4x32x32xf32, #tpu.memory_space<vmem>>, vector<1x32x32xf32>
    %229 = vector.shape_cast %228 : vector<1x32x32xf32> to vector<32x32xf32>
    %cst_198 = arith.constant dense<0.000000e+00> : vector<8x32xf32>
    %230 = tpu.matmul %198, %229, %cst_198 {dimension_numbers = #tpu.dot_dimension_numbers<[1], [0], [0], [1], [0, 0, 1, 1], [], []>} : vector<8x32xf32>, vector<32x32xf32>, vector<8x32xf32> -> vector<8x32xf32>
    %c3_199 = arith.constant 3 : index
    %c0_200 = arith.constant 0 : index
    %c0_201 = arith.constant 0 : index
    %231 = vector.load %arg10[%c3_199, %c0_200, %c0_201] : memref<8x8x32xf32, #tpu.memory_space<vmem>>, vector<1x8x32xf32>
    %232 = vector.shape_cast %231 : vector<1x8x32xf32> to vector<8x32xf32>
    %233 = arith.addf %230, %232 : vector<8x32xf32>
    %234 = arith.negf %233 : vector<8x32xf32>
    %235 = math.exp %234 : vector<8x32xf32>
    %cst_202 = arith.constant 1.000000e+00 : f32
    %236 = vector.broadcast %cst_202 : f32 to vector<8x32xf32>
    %237 = arith.addf %236, %235 : vector<8x32xf32>
    %238 = arith.divf %236, %237 : vector<8x32xf32>
    %c0_203 = arith.constant 0 : index
    %c0_204 = arith.constant 0 : index
    %239 = vector.load %arg13[%c0_203, %c0_204] : memref<8x32xf32, #tpu.memory_space<vmem>>, vector<8x32xf32>
    %240 = arith.mulf %220, %239 : vector<8x32xf32>
    %241 = arith.mulf %209, %227 : vector<8x32xf32>
    %242 = arith.addf %240, %241 : vector<8x32xf32>
    %243 = math.tanh %242 : vector<8x32xf32>
    %244 = arith.mulf %238, %243 : vector<8x32xf32>
    %c0_205 = arith.constant 0 : index
    %c0_206 = arith.constant 0 : index
    %245 = vector.load %arg13[%c0_205, %c0_206] : memref<8x32xf32, #tpu.memory_space<vmem>>, vector<8x32xf32>
    tpu.vector_store %arg13[%c0_205, %c0_206], %242 {strides = array<i32>} : memref<8x32xf32, #tpu.memory_space<vmem>>, vector<8x32xf32>,
    %c0_207 = arith.constant 0 : index
    %c0_208 = arith.constant 0 : index
    %246 = vector.load %arg12[%c0_207, %c0_208] : memref<8x32xf32, #tpu.memory_space<vmem>>, vector<8x32xf32>
    tpu.vector_store %arg12[%c0_207, %c0_208], %244 {strides = array<i32>} : memref<8x32xf32, #tpu.memory_space<vmem>>, vector<8x32xf32>,
    %c0_209 = arith.constant 0 : index
    %c3_210 = arith.constant 3 : index
    %c0_211 = arith.constant 0 : index
    %247 = vector.load %arg11[%c0_209, %c3_210, %c0_211] : memref<8x8x32xf32, #tpu.memory_space<vmem>>, vector<8x1x32xf32>
    %248 = vector.shape_cast %247 : vector<8x1x32xf32> to vector<8x32xf32>
    %249 = vector.shape_cast %244 : vector<8x32xf32> to vector<8x1x32xf32>
    tpu.vector_store %arg11[%c0_209, %c3_210, %c0_211], %249 {strides = array<i32>} : memref<8x8x32xf32, #tpu.memory_space<vmem>>, vector<8x1x32xf32>,
    %c0_212 = arith.constant 0 : index
    %c0_213 = arith.constant 0 : index
    %250 = vector.load %arg12[%c0_212, %c0_213] : memref<8x32xf32, #tpu.memory_space<vmem>>, vector<8x32xf32>
    %c0_214 = arith.constant 0 : index
    %c0_215 = arith.constant 0 : index
    %c0_216 = arith.constant 0 : index
    %251 = vector.load %arg2[%c0_214, %c0_215, %c0_216] : memref<4x32x32xf32, #tpu.memory_space<vmem>>, vector<1x32x32xf32>
    %252 = vector.shape_cast %251 : vector<1x32x32xf32> to vector<32x32xf32>
    %cst_217 = arith.constant dense<0.000000e+00> : vector<8x32xf32>
    %253 = tpu.matmul %250, %252, %cst_217 {dimension_numbers = #tpu.dot_dimension_numbers<[1], [0], [0], [1], [0, 0, 1, 1], [], []>} : vector<8x32xf32>, vector<32x32xf32>, vector<8x32xf32> -> vector<8x32xf32>
    %c4 = arith.constant 4 : index
    %c0_218 = arith.constant 0 : index
    %c0_219 = arith.constant 0 : index
    %254 = vector.load %arg7[%c4, %c0_218, %c0_219] : memref<8x8x32xf32, #tpu.memory_space<vmem>>, vector<1x8x32xf32>
    %255 = vector.shape_cast %254 : vector<1x8x32xf32> to vector<8x32xf32>
    %256 = arith.addf %253, %255 : vector<8x32xf32>
    %257 = arith.negf %256 : vector<8x32xf32>
    %258 = math.exp %257 : vector<8x32xf32>
    %cst_220 = arith.constant 1.000000e+00 : f32
    %259 = vector.broadcast %cst_220 : f32 to vector<8x32xf32>
    %260 = arith.addf %259, %258 : vector<8x32xf32>
    %261 = arith.divf %259, %260 : vector<8x32xf32>
    %c1_221 = arith.constant 1 : index
    %c0_222 = arith.constant 0 : index
    %c0_223 = arith.constant 0 : index
    %262 = vector.load %arg2[%c1_221, %c0_222, %c0_223] : memref<4x32x32xf32, #tpu.memory_space<vmem>>, vector<1x32x32xf32>
    %263 = vector.shape_cast %262 : vector<1x32x32xf32> to vector<32x32xf32>
    %cst_224 = arith.constant dense<0.000000e+00> : vector<8x32xf32>
    %264 = tpu.matmul %250, %263, %cst_224 {dimension_numbers = #tpu.dot_dimension_numbers<[1], [0], [0], [1], [0, 0, 1, 1], [], []>} : vector<8x32xf32>, vector<32x32xf32>, vector<8x32xf32> -> vector<8x32xf32>
    %c4_225 = arith.constant 4 : index
    %c0_226 = arith.constant 0 : index
    %c0_227 = arith.constant 0 : index
    %265 = vector.load %arg8[%c4_225, %c0_226, %c0_227] : memref<8x8x32xf32, #tpu.memory_space<vmem>>, vector<1x8x32xf32>
    %266 = vector.shape_cast %265 : vector<1x8x32xf32> to vector<8x32xf32>
    %267 = arith.addf %264, %266 : vector<8x32xf32>
    %268 = arith.negf %267 : vector<8x32xf32>
    %269 = math.exp %268 : vector<8x32xf32>
    %cst_228 = arith.constant 1.000000e+00 : f32
    %270 = vector.broadcast %cst_228 : f32 to vector<8x32xf32>
    %271 = arith.addf %270, %269 : vector<8x32xf32>
    %272 = arith.divf %270, %271 : vector<8x32xf32>
    %c2_229 = arith.constant 2 : index
    %c0_230 = arith.constant 0 : index
    %c0_231 = arith.constant 0 : index
    %273 = vector.load %arg2[%c2_229, %c0_230, %c0_231] : memref<4x32x32xf32, #tpu.memory_space<vmem>>, vector<1x32x32xf32>
    %274 = vector.shape_cast %273 : vector<1x32x32xf32> to vector<32x32xf32>
    %cst_232 = arith.constant dense<0.000000e+00> : vector<8x32xf32>
    %275 = tpu.matmul %250, %274, %cst_232 {dimension_numbers = #tpu.dot_dimension_numbers<[1], [0], [0], [1], [0, 0, 1, 1], [], []>} : vector<8x32xf32>, vector<32x32xf32>, vector<8x32xf32> -> vector<8x32xf32>
    %c4_233 = arith.constant 4 : index
    %c0_234 = arith.constant 0 : index
    %c0_235 = arith.constant 0 : index
    %276 = vector.load %arg9[%c4_233, %c0_234, %c0_235] : memref<8x8x32xf32, #tpu.memory_space<vmem>>, vector<1x8x32xf32>
    %277 = vector.shape_cast %276 : vector<1x8x32xf32> to vector<8x32xf32>
    %278 = arith.addf %275, %277 : vector<8x32xf32>
    %279 = math.tanh %278 : vector<8x32xf32>
    %c3_236 = arith.constant 3 : index
    %c0_237 = arith.constant 0 : index
    %c0_238 = arith.constant 0 : index
    %280 = vector.load %arg2[%c3_236, %c0_237, %c0_238] : memref<4x32x32xf32, #tpu.memory_space<vmem>>, vector<1x32x32xf32>
    %281 = vector.shape_cast %280 : vector<1x32x32xf32> to vector<32x32xf32>
    %cst_239 = arith.constant dense<0.000000e+00> : vector<8x32xf32>
    %282 = tpu.matmul %250, %281, %cst_239 {dimension_numbers = #tpu.dot_dimension_numbers<[1], [0], [0], [1], [0, 0, 1, 1], [], []>} : vector<8x32xf32>, vector<32x32xf32>, vector<8x32xf32> -> vector<8x32xf32>
    %c4_240 = arith.constant 4 : index
    %c0_241 = arith.constant 0 : index
    %c0_242 = arith.constant 0 : index
    %283 = vector.load %arg10[%c4_240, %c0_241, %c0_242] : memref<8x8x32xf32, #tpu.memory_space<vmem>>, vector<1x8x32xf32>
    %284 = vector.shape_cast %283 : vector<1x8x32xf32> to vector<8x32xf32>
    %285 = arith.addf %282, %284 : vector<8x32xf32>
    %286 = arith.negf %285 : vector<8x32xf32>
    %287 = math.exp %286 : vector<8x32xf32>
    %cst_243 = arith.constant 1.000000e+00 : f32
    %288 = vector.broadcast %cst_243 : f32 to vector<8x32xf32>
    %289 = arith.addf %288, %287 : vector<8x32xf32>
    %290 = arith.divf %288, %289 : vector<8x32xf32>
    %c0_244 = arith.constant 0 : index
    %c0_245 = arith.constant 0 : index
    %291 = vector.load %arg13[%c0_244, %c0_245] : memref<8x32xf32, #tpu.memory_space<vmem>>, vector<8x32xf32>
    %292 = arith.mulf %272, %291 : vector<8x32xf32>
    %293 = arith.mulf %261, %279 : vector<8x32xf32>
    %294 = arith.addf %292, %293 : vector<8x32xf32>
    %295 = math.tanh %294 : vector<8x32xf32>
    %296 = arith.mulf %290, %295 : vector<8x32xf32>
    %c0_246 = arith.constant 0 : index
    %c0_247 = arith.constant 0 : index
    %297 = vector.load %arg13[%c0_246, %c0_247] : memref<8x32xf32, #tpu.memory_space<vmem>>, vector<8x32xf32>
    tpu.vector_store %arg13[%c0_246, %c0_247], %294 {strides = array<i32>} : memref<8x32xf32, #tpu.memory_space<vmem>>, vector<8x32xf32>,
    %c0_248 = arith.constant 0 : index
    %c0_249 = arith.constant 0 : index
    %298 = vector.load %arg12[%c0_248, %c0_249] : memref<8x32xf32, #tpu.memory_space<vmem>>, vector<8x32xf32>
    tpu.vector_store %arg12[%c0_248, %c0_249], %296 {strides = array<i32>} : memref<8x32xf32, #tpu.memory_space<vmem>>, vector<8x32xf32>,
    %c0_250 = arith.constant 0 : index
    %c4_251 = arith.constant 4 : index
    %c0_252 = arith.constant 0 : index
    %299 = vector.load %arg11[%c0_250, %c4_251, %c0_252] : memref<8x8x32xf32, #tpu.memory_space<vmem>>, vector<8x1x32xf32>
    %300 = vector.shape_cast %299 : vector<8x1x32xf32> to vector<8x32xf32>
    %301 = vector.shape_cast %296 : vector<8x32xf32> to vector<8x1x32xf32>
    tpu.vector_store %arg11[%c0_250, %c4_251, %c0_252], %301 {strides = array<i32>} : memref<8x8x32xf32, #tpu.memory_space<vmem>>, vector<8x1x32xf32>,
    %c0_253 = arith.constant 0 : index
    %c0_254 = arith.constant 0 : index
    %302 = vector.load %arg12[%c0_253, %c0_254] : memref<8x32xf32, #tpu.memory_space<vmem>>, vector<8x32xf32>
    %c0_255 = arith.constant 0 : index
    %c0_256 = arith.constant 0 : index
    %c0_257 = arith.constant 0 : index
    %303 = vector.load %arg2[%c0_255, %c0_256, %c0_257] : memref<4x32x32xf32, #tpu.memory_space<vmem>>, vector<1x32x32xf32>
    %304 = vector.shape_cast %303 : vector<1x32x32xf32> to vector<32x32xf32>
    %cst_258 = arith.constant dense<0.000000e+00> : vector<8x32xf32>
    %305 = tpu.matmul %302, %304, %cst_258 {dimension_numbers = #tpu.dot_dimension_numbers<[1], [0], [0], [1], [0, 0, 1, 1], [], []>} : vector<8x32xf32>, vector<32x32xf32>, vector<8x32xf32> -> vector<8x32xf32>
    %c5 = arith.constant 5 : index
    %c0_259 = arith.constant 0 : index
    %c0_260 = arith.constant 0 : index
    %306 = vector.load %arg7[%c5, %c0_259, %c0_260] : memref<8x8x32xf32, #tpu.memory_space<vmem>>, vector<1x8x32xf32>
    %307 = vector.shape_cast %306 : vector<1x8x32xf32> to vector<8x32xf32>
    %308 = arith.addf %305, %307 : vector<8x32xf32>
    %309 = arith.negf %308 : vector<8x32xf32>
    %310 = math.exp %309 : vector<8x32xf32>
    %cst_261 = arith.constant 1.000000e+00 : f32
    %311 = vector.broadcast %cst_261 : f32 to vector<8x32xf32>
    %312 = arith.addf %311, %310 : vector<8x32xf32>
    %313 = arith.divf %311, %312 : vector<8x32xf32>
    %c1_262 = arith.constant 1 : index
    %c0_263 = arith.constant 0 : index
    %c0_264 = arith.constant 0 : index
    %314 = vector.load %arg2[%c1_262, %c0_263, %c0_264] : memref<4x32x32xf32, #tpu.memory_space<vmem>>, vector<1x32x32xf32>
    %315 = vector.shape_cast %314 : vector<1x32x32xf32> to vector<32x32xf32>
    %cst_265 = arith.constant dense<0.000000e+00> : vector<8x32xf32>
    %316 = tpu.matmul %302, %315, %cst_265 {dimension_numbers = #tpu.dot_dimension_numbers<[1], [0], [0], [1], [0, 0, 1, 1], [], []>} : vector<8x32xf32>, vector<32x32xf32>, vector<8x32xf32> -> vector<8x32xf32>
    %c5_266 = arith.constant 5 : index
    %c0_267 = arith.constant 0 : index
    %c0_268 = arith.constant 0 : index
    %317 = vector.load %arg8[%c5_266, %c0_267, %c0_268] : memref<8x8x32xf32, #tpu.memory_space<vmem>>, vector<1x8x32xf32>
    %318 = vector.shape_cast %317 : vector<1x8x32xf32> to vector<8x32xf32>
    %319 = arith.addf %316, %318 : vector<8x32xf32>
    %320 = arith.negf %319 : vector<8x32xf32>
    %321 = math.exp %320 : vector<8x32xf32>
    %cst_269 = arith.constant 1.000000e+00 : f32
    %322 = vector.broadcast %cst_269 : f32 to vector<8x32xf32>
    %323 = arith.addf %322, %321 : vector<8x32xf32>
    %324 = arith.divf %322, %323 : vector<8x32xf32>
    %c2_270 = arith.constant 2 : index
    %c0_271 = arith.constant 0 : index
    %c0_272 = arith.constant 0 : index
    %325 = vector.load %arg2[%c2_270, %c0_271, %c0_272] : memref<4x32x32xf32, #tpu.memory_space<vmem>>, vector<1x32x32xf32>
    %326 = vector.shape_cast %325 : vector<1x32x32xf32> to vector<32x32xf32>
    %cst_273 = arith.constant dense<0.000000e+00> : vector<8x32xf32>
    %327 = tpu.matmul %302, %326, %cst_273 {dimension_numbers = #tpu.dot_dimension_numbers<[1], [0], [0], [1], [0, 0, 1, 1], [], []>} : vector<8x32xf32>, vector<32x32xf32>, vector<8x32xf32> -> vector<8x32xf32>
    %c5_274 = arith.constant 5 : index
    %c0_275 = arith.constant 0 : index
    %c0_276 = arith.constant 0 : index
    %328 = vector.load %arg9[%c5_274, %c0_275, %c0_276] : memref<8x8x32xf32, #tpu.memory_space<vmem>>, vector<1x8x32xf32>
    %329 = vector.shape_cast %328 : vector<1x8x32xf32> to vector<8x32xf32>
    %330 = arith.addf %327, %329 : vector<8x32xf32>
    %331 = math.tanh %330 : vector<8x32xf32>
    %c3_277 = arith.constant 3 : index
    %c0_278 = arith.constant 0 : index
    %c0_279 = arith.constant 0 : index
    %332 = vector.load %arg2[%c3_277, %c0_278, %c0_279] : memref<4x32x32xf32, #tpu.memory_space<vmem>>, vector<1x32x32xf32>
    %333 = vector.shape_cast %332 : vector<1x32x32xf32> to vector<32x32xf32>
    %cst_280 = arith.constant dense<0.000000e+00> : vector<8x32xf32>
    %334 = tpu.matmul %302, %333, %cst_280 {dimension_numbers = #tpu.dot_dimension_numbers<[1], [0], [0], [1], [0, 0, 1, 1], [], []>} : vector<8x32xf32>, vector<32x32xf32>, vector<8x32xf32> -> vector<8x32xf32>
    %c5_281 = arith.constant 5 : index
    %c0_282 = arith.constant 0 : index
    %c0_283 = arith.constant 0 : index
    %335 = vector.load %arg10[%c5_281, %c0_282, %c0_283] : memref<8x8x32xf32, #tpu.memory_space<vmem>>, vector<1x8x32xf32>
    %336 = vector.shape_cast %335 : vector<1x8x32xf32> to vector<8x32xf32>
    %337 = arith.addf %334, %336 : vector<8x32xf32>
    %338 = arith.negf %337 : vector<8x32xf32>
    %339 = math.exp %338 : vector<8x32xf32>
    %cst_284 = arith.constant 1.000000e+00 : f32
    %340 = vector.broadcast %cst_284 : f32 to vector<8x32xf32>
    %341 = arith.addf %340, %339 : vector<8x32xf32>
    %342 = arith.divf %340, %341 : vector<8x32xf32>
    %c0_285 = arith.constant 0 : index
    %c0_286 = arith.constant 0 : index
    %343 = vector.load %arg13[%c0_285, %c0_286] : memref<8x32xf32, #tpu.memory_space<vmem>>, vector<8x32xf32>
    %344 = arith.mulf %324, %343 : vector<8x32xf32>
    %345 = arith.mulf %313, %331 : vector<8x32xf32>
    %346 = arith.addf %344, %345 : vector<8x32xf32>
    %347 = math.tanh %346 : vector<8x32xf32>
    %348 = arith.mulf %342, %347 : vector<8x32xf32>
    %c0_287 = arith.constant 0 : index
    %c0_288 = arith.constant 0 : index
    %349 = vector.load %arg13[%c0_287, %c0_288] : memref<8x32xf32, #tpu.memory_space<vmem>>, vector<8x32xf32>
    tpu.vector_store %arg13[%c0_287, %c0_288], %346 {strides = array<i32>} : memref<8x32xf32, #tpu.memory_space<vmem>>, vector<8x32xf32>,
    %c0_289 = arith.constant 0 : index
    %c0_290 = arith.constant 0 : index
    %350 = vector.load %arg12[%c0_289, %c0_290] : memref<8x32xf32, #tpu.memory_space<vmem>>, vector<8x32xf32>
    tpu.vector_store %arg12[%c0_289, %c0_290], %348 {strides = array<i32>} : memref<8x32xf32, #tpu.memory_space<vmem>>, vector<8x32xf32>,
    %c0_291 = arith.constant 0 : index
    %c5_292 = arith.constant 5 : index
    %c0_293 = arith.constant 0 : index
    %351 = vector.load %arg11[%c0_291, %c5_292, %c0_293] : memref<8x8x32xf32, #tpu.memory_space<vmem>>, vector<8x1x32xf32>
    %352 = vector.shape_cast %351 : vector<8x1x32xf32> to vector<8x32xf32>
    %353 = vector.shape_cast %348 : vector<8x32xf32> to vector<8x1x32xf32>
    tpu.vector_store %arg11[%c0_291, %c5_292, %c0_293], %353 {strides = array<i32>} : memref<8x8x32xf32, #tpu.memory_space<vmem>>, vector<8x1x32xf32>,
    %c0_294 = arith.constant 0 : index
    %c0_295 = arith.constant 0 : index
    %354 = vector.load %arg12[%c0_294, %c0_295] : memref<8x32xf32, #tpu.memory_space<vmem>>, vector<8x32xf32>
    %c0_296 = arith.constant 0 : index
    %c0_297 = arith.constant 0 : index
    %c0_298 = arith.constant 0 : index
    %355 = vector.load %arg2[%c0_296, %c0_297, %c0_298] : memref<4x32x32xf32, #tpu.memory_space<vmem>>, vector<1x32x32xf32>
    %356 = vector.shape_cast %355 : vector<1x32x32xf32> to vector<32x32xf32>
    %cst_299 = arith.constant dense<0.000000e+00> : vector<8x32xf32>
    %357 = tpu.matmul %354, %356, %cst_299 {dimension_numbers = #tpu.dot_dimension_numbers<[1], [0], [0], [1], [0, 0, 1, 1], [], []>} : vector<8x32xf32>, vector<32x32xf32>, vector<8x32xf32> -> vector<8x32xf32>
    %c6 = arith.constant 6 : index
    %c0_300 = arith.constant 0 : index
    %c0_301 = arith.constant 0 : index
    %358 = vector.load %arg7[%c6, %c0_300, %c0_301] : memref<8x8x32xf32, #tpu.memory_space<vmem>>, vector<1x8x32xf32>
    %359 = vector.shape_cast %358 : vector<1x8x32xf32> to vector<8x32xf32>
    %360 = arith.addf %357, %359 : vector<8x32xf32>
    %361 = arith.negf %360 : vector<8x32xf32>
    %362 = math.exp %361 : vector<8x32xf32>
    %cst_302 = arith.constant 1.000000e+00 : f32
    %363 = vector.broadcast %cst_302 : f32 to vector<8x32xf32>
    %364 = arith.addf %363, %362 : vector<8x32xf32>
    %365 = arith.divf %363, %364 : vector<8x32xf32>
    %c1_303 = arith.constant 1 : index
    %c0_304 = arith.constant 0 : index
    %c0_305 = arith.constant 0 : index
    %366 = vector.load %arg2[%c1_303, %c0_304, %c0_305] : memref<4x32x32xf32, #tpu.memory_space<vmem>>, vector<1x32x32xf32>
    %367 = vector.shape_cast %366 : vector<1x32x32xf32> to vector<32x32xf32>
    %cst_306 = arith.constant dense<0.000000e+00> : vector<8x32xf32>
    %368 = tpu.matmul %354, %367, %cst_306 {dimension_numbers = #tpu.dot_dimension_numbers<[1], [0], [0], [1], [0, 0, 1, 1], [], []>} : vector<8x32xf32>, vector<32x32xf32>, vector<8x32xf32> -> vector<8x32xf32>
    %c6_307 = arith.constant 6 : index
    %c0_308 = arith.constant 0 : index
    %c0_309 = arith.constant 0 : index
    %369 = vector.load %arg8[%c6_307, %c0_308, %c0_309] : memref<8x8x32xf32, #tpu.memory_space<vmem>>, vector<1x8x32xf32>
    %370 = vector.shape_cast %369 : vector<1x8x32xf32> to vector<8x32xf32>
    %371 = arith.addf %368, %370 : vector<8x32xf32>
    %372 = arith.negf %371 : vector<8x32xf32>
    %373 = math.exp %372 : vector<8x32xf32>
    %cst_310 = arith.constant 1.000000e+00 : f32
    %374 = vector.broadcast %cst_310 : f32 to vector<8x32xf32>
    %375 = arith.addf %374, %373 : vector<8x32xf32>
    %376 = arith.divf %374, %375 : vector<8x32xf32>
    %c2_311 = arith.constant 2 : index
    %c0_312 = arith.constant 0 : index
    %c0_313 = arith.constant 0 : index
    %377 = vector.load %arg2[%c2_311, %c0_312, %c0_313] : memref<4x32x32xf32, #tpu.memory_space<vmem>>, vector<1x32x32xf32>
    %378 = vector.shape_cast %377 : vector<1x32x32xf32> to vector<32x32xf32>
    %cst_314 = arith.constant dense<0.000000e+00> : vector<8x32xf32>
    %379 = tpu.matmul %354, %378, %cst_314 {dimension_numbers = #tpu.dot_dimension_numbers<[1], [0], [0], [1], [0, 0, 1, 1], [], []>} : vector<8x32xf32>, vector<32x32xf32>, vector<8x32xf32> -> vector<8x32xf32>
    %c6_315 = arith.constant 6 : index
    %c0_316 = arith.constant 0 : index
    %c0_317 = arith.constant 0 : index
    %380 = vector.load %arg9[%c6_315, %c0_316, %c0_317] : memref<8x8x32xf32, #tpu.memory_space<vmem>>, vector<1x8x32xf32>
    %381 = vector.shape_cast %380 : vector<1x8x32xf32> to vector<8x32xf32>
    %382 = arith.addf %379, %381 : vector<8x32xf32>
    %383 = math.tanh %382 : vector<8x32xf32>
    %c3_318 = arith.constant 3 : index
    %c0_319 = arith.constant 0 : index
    %c0_320 = arith.constant 0 : index
    %384 = vector.load %arg2[%c3_318, %c0_319, %c0_320] : memref<4x32x32xf32, #tpu.memory_space<vmem>>, vector<1x32x32xf32>
    %385 = vector.shape_cast %384 : vector<1x32x32xf32> to vector<32x32xf32>
    %cst_321 = arith.constant dense<0.000000e+00> : vector<8x32xf32>
    %386 = tpu.matmul %354, %385, %cst_321 {dimension_numbers = #tpu.dot_dimension_numbers<[1], [0], [0], [1], [0, 0, 1, 1], [], []>} : vector<8x32xf32>, vector<32x32xf32>, vector<8x32xf32> -> vector<8x32xf32>
    %c6_322 = arith.constant 6 : index
    %c0_323 = arith.constant 0 : index
    %c0_324 = arith.constant 0 : index
    %387 = vector.load %arg10[%c6_322, %c0_323, %c0_324] : memref<8x8x32xf32, #tpu.memory_space<vmem>>, vector<1x8x32xf32>
    %388 = vector.shape_cast %387 : vector<1x8x32xf32> to vector<8x32xf32>
    %389 = arith.addf %386, %388 : vector<8x32xf32>
    %390 = arith.negf %389 : vector<8x32xf32>
    %391 = math.exp %390 : vector<8x32xf32>
    %cst_325 = arith.constant 1.000000e+00 : f32
    %392 = vector.broadcast %cst_325 : f32 to vector<8x32xf32>
    %393 = arith.addf %392, %391 : vector<8x32xf32>
    %394 = arith.divf %392, %393 : vector<8x32xf32>
    %c0_326 = arith.constant 0 : index
    %c0_327 = arith.constant 0 : index
    %395 = vector.load %arg13[%c0_326, %c0_327] : memref<8x32xf32, #tpu.memory_space<vmem>>, vector<8x32xf32>
    %396 = arith.mulf %376, %395 : vector<8x32xf32>
    %397 = arith.mulf %365, %383 : vector<8x32xf32>
    %398 = arith.addf %396, %397 : vector<8x32xf32>
    %399 = math.tanh %398 : vector<8x32xf32>
    %400 = arith.mulf %394, %399 : vector<8x32xf32>
    %c0_328 = arith.constant 0 : index
    %c0_329 = arith.constant 0 : index
    %401 = vector.load %arg13[%c0_328, %c0_329] : memref<8x32xf32, #tpu.memory_space<vmem>>, vector<8x32xf32>
    tpu.vector_store %arg13[%c0_328, %c0_329], %398 {strides = array<i32>} : memref<8x32xf32, #tpu.memory_space<vmem>>, vector<8x32xf32>,
    %c0_330 = arith.constant 0 : index
    %c0_331 = arith.constant 0 : index
    %402 = vector.load %arg12[%c0_330, %c0_331] : memref<8x32xf32, #tpu.memory_space<vmem>>, vector<8x32xf32>
    tpu.vector_store %arg12[%c0_330, %c0_331], %400 {strides = array<i32>} : memref<8x32xf32, #tpu.memory_space<vmem>>, vector<8x32xf32>,
    %c0_332 = arith.constant 0 : index
    %c6_333 = arith.constant 6 : index
    %c0_334 = arith.constant 0 : index
    %403 = vector.load %arg11[%c0_332, %c6_333, %c0_334] : memref<8x8x32xf32, #tpu.memory_space<vmem>>, vector<8x1x32xf32>
    %404 = vector.shape_cast %403 : vector<8x1x32xf32> to vector<8x32xf32>
    %405 = vector.shape_cast %400 : vector<8x32xf32> to vector<8x1x32xf32>
    tpu.vector_store %arg11[%c0_332, %c6_333, %c0_334], %405 {strides = array<i32>} : memref<8x8x32xf32, #tpu.memory_space<vmem>>, vector<8x1x32xf32>,
    %c0_335 = arith.constant 0 : index
    %c0_336 = arith.constant 0 : index
    %406 = vector.load %arg12[%c0_335, %c0_336] : memref<8x32xf32, #tpu.memory_space<vmem>>, vector<8x32xf32>
    %c0_337 = arith.constant 0 : index
    %c0_338 = arith.constant 0 : index
    %c0_339 = arith.constant 0 : index
    %407 = vector.load %arg2[%c0_337, %c0_338, %c0_339] : memref<4x32x32xf32, #tpu.memory_space<vmem>>, vector<1x32x32xf32>
    %408 = vector.shape_cast %407 : vector<1x32x32xf32> to vector<32x32xf32>
    %cst_340 = arith.constant dense<0.000000e+00> : vector<8x32xf32>
    %409 = tpu.matmul %406, %408, %cst_340 {dimension_numbers = #tpu.dot_dimension_numbers<[1], [0], [0], [1], [0, 0, 1, 1], [], []>} : vector<8x32xf32>, vector<32x32xf32>, vector<8x32xf32> -> vector<8x32xf32>
    %c7 = arith.constant 7 : index
    %c0_341 = arith.constant 0 : index
    %c0_342 = arith.constant 0 : index
    %410 = vector.load %arg7[%c7, %c0_341, %c0_342] : memref<8x8x32xf32, #tpu.memory_space<vmem>>, vector<1x8x32xf32>
    %411 = vector.shape_cast %410 : vector<1x8x32xf32> to vector<8x32xf32>
    %412 = arith.addf %409, %411 : vector<8x32xf32>
    %413 = arith.negf %412 : vector<8x32xf32>
    %414 = math.exp %413 : vector<8x32xf32>
    %cst_343 = arith.constant 1.000000e+00 : f32
    %415 = vector.broadcast %cst_343 : f32 to vector<8x32xf32>
    %416 = arith.addf %415, %414 : vector<8x32xf32>
    %417 = arith.divf %415, %416 : vector<8x32xf32>
    %c1_344 = arith.constant 1 : index
    %c0_345 = arith.constant 0 : index
    %c0_346 = arith.constant 0 : index
    %418 = vector.load %arg2[%c1_344, %c0_345, %c0_346] : memref<4x32x32xf32, #tpu.memory_space<vmem>>, vector<1x32x32xf32>
    %419 = vector.shape_cast %418 : vector<1x32x32xf32> to vector<32x32xf32>
    %cst_347 = arith.constant dense<0.000000e+00> : vector<8x32xf32>
    %420 = tpu.matmul %406, %419, %cst_347 {dimension_numbers = #tpu.dot_dimension_numbers<[1], [0], [0], [1], [0, 0, 1, 1], [], []>} : vector<8x32xf32>, vector<32x32xf32>, vector<8x32xf32> -> vector<8x32xf32>
    %c7_348 = arith.constant 7 : index
    %c0_349 = arith.constant 0 : index
    %c0_350 = arith.constant 0 : index
    %421 = vector.load %arg8[%c7_348, %c0_349, %c0_350] : memref<8x8x32xf32, #tpu.memory_space<vmem>>, vector<1x8x32xf32>
    %422 = vector.shape_cast %421 : vector<1x8x32xf32> to vector<8x32xf32>
    %423 = arith.addf %420, %422 : vector<8x32xf32>
    %424 = arith.negf %423 : vector<8x32xf32>
    %425 = math.exp %424 : vector<8x32xf32>
    %cst_351 = arith.constant 1.000000e+00 : f32
    %426 = vector.broadcast %cst_351 : f32 to vector<8x32xf32>
    %427 = arith.addf %426, %425 : vector<8x32xf32>
    %428 = arith.divf %426, %427 : vector<8x32xf32>
    %c2_352 = arith.constant 2 : index
    %c0_353 = arith.constant 0 : index
    %c0_354 = arith.constant 0 : index
    %429 = vector.load %arg2[%c2_352, %c0_353, %c0_354] : memref<4x32x32xf32, #tpu.memory_space<vmem>>, vector<1x32x32xf32>
    %430 = vector.shape_cast %429 : vector<1x32x32xf32> to vector<32x32xf32>
    %cst_355 = arith.constant dense<0.000000e+00> : vector<8x32xf32>
    %431 = tpu.matmul %406, %430, %cst_355 {dimension_numbers = #tpu.dot_dimension_numbers<[1], [0], [0], [1], [0, 0, 1, 1], [], []>} : vector<8x32xf32>, vector<32x32xf32>, vector<8x32xf32> -> vector<8x32xf32>
    %c7_356 = arith.constant 7 : index
    %c0_357 = arith.constant 0 : index
    %c0_358 = arith.constant 0 : index
    %432 = vector.load %arg9[%c7_356, %c0_357, %c0_358] : memref<8x8x32xf32, #tpu.memory_space<vmem>>, vector<1x8x32xf32>
    %433 = vector.shape_cast %432 : vector<1x8x32xf32> to vector<8x32xf32>
    %434 = arith.addf %431, %433 : vector<8x32xf32>
    %435 = math.tanh %434 : vector<8x32xf32>
    %c3_359 = arith.constant 3 : index
    %c0_360 = arith.constant 0 : index
    %c0_361 = arith.constant 0 : index
    %436 = vector.load %arg2[%c3_359, %c0_360, %c0_361] : memref<4x32x32xf32, #tpu.memory_space<vmem>>, vector<1x32x32xf32>
    %437 = vector.shape_cast %436 : vector<1x32x32xf32> to vector<32x32xf32>
    %cst_362 = arith.constant dense<0.000000e+00> : vector<8x32xf32>
    %438 = tpu.matmul %406, %437, %cst_362 {dimension_numbers = #tpu.dot_dimension_numbers<[1], [0], [0], [1], [0, 0, 1, 1], [], []>} : vector<8x32xf32>, vector<32x32xf32>, vector<8x32xf32> -> vector<8x32xf32>
    %c7_363 = arith.constant 7 : index
    %c0_364 = arith.constant 0 : index
    %c0_365 = arith.constant 0 : index
    %439 = vector.load %arg10[%c7_363, %c0_364, %c0_365] : memref<8x8x32xf32, #tpu.memory_space<vmem>>, vector<1x8x32xf32>
    %440 = vector.shape_cast %439 : vector<1x8x32xf32> to vector<8x32xf32>
    %441 = arith.addf %438, %440 : vector<8x32xf32>
    %442 = arith.negf %441 : vector<8x32xf32>
    %443 = math.exp %442 : vector<8x32xf32>
    %cst_366 = arith.constant 1.000000e+00 : f32
    %444 = vector.broadcast %cst_366 : f32 to vector<8x32xf32>
    %445 = arith.addf %444, %443 : vector<8x32xf32>
    %446 = arith.divf %444, %445 : vector<8x32xf32>
    %c0_367 = arith.constant 0 : index
    %c0_368 = arith.constant 0 : index
    %447 = vector.load %arg13[%c0_367, %c0_368] : memref<8x32xf32, #tpu.memory_space<vmem>>, vector<8x32xf32>
    %448 = arith.mulf %428, %447 : vector<8x32xf32>
    %449 = arith.mulf %417, %435 : vector<8x32xf32>
    %450 = arith.addf %448, %449 : vector<8x32xf32>
    %451 = math.tanh %450 : vector<8x32xf32>
    %452 = arith.mulf %446, %451 : vector<8x32xf32>
    %c0_369 = arith.constant 0 : index
    %c0_370 = arith.constant 0 : index
    %453 = vector.load %arg13[%c0_369, %c0_370] : memref<8x32xf32, #tpu.memory_space<vmem>>, vector<8x32xf32>
    tpu.vector_store %arg13[%c0_369, %c0_370], %450 {strides = array<i32>} : memref<8x32xf32, #tpu.memory_space<vmem>>, vector<8x32xf32>,
    %c0_371 = arith.constant 0 : index
    %c0_372 = arith.constant 0 : index
    %454 = vector.load %arg12[%c0_371, %c0_372] : memref<8x32xf32, #tpu.memory_space<vmem>>, vector<8x32xf32>
    tpu.vector_store %arg12[%c0_371, %c0_372], %452 {strides = array<i32>} : memref<8x32xf32, #tpu.memory_space<vmem>>, vector<8x32xf32>,
    %c0_373 = arith.constant 0 : index
    %c7_374 = arith.constant 7 : index
    %c0_375 = arith.constant 0 : index
    %455 = vector.load %arg11[%c0_373, %c7_374, %c0_375] : memref<8x8x32xf32, #tpu.memory_space<vmem>>, vector<8x1x32xf32>
    %456 = vector.shape_cast %455 : vector<8x1x32xf32> to vector<8x32xf32>
    %457 = vector.shape_cast %452 : vector<8x32xf32> to vector<8x1x32xf32>
    tpu.vector_store %arg11[%c0_373, %c7_374, %c0_375], %457 {strides = array<i32>} : memref<8x8x32xf32, #tpu.memory_space<vmem>>, vector<8x1x32xf32>,
    %c0_376 = arith.constant 0 : index
    %c0_377 = arith.constant 0 : index
    %c0_378 = arith.constant 0 : index
    %458 = vector.load %arg11[%c0_376, %c0_377, %c0_378] : memref<8x8x32xf32, #tpu.memory_space<vmem>>, vector<8x8x32xf32>
    %459 = vector.shape_cast %458 : vector<8x8x32xf32> to vector<64x32xf32>
    %c0_379 = arith.constant 0 : index
    %c0_380 = arith.constant 0 : index
    %460 = vector.load %arg4[%c0_379, %c0_380] : memref<32x128xf32, #tpu.memory_space<vmem>>, vector<32x128xf32>
    %cst_381 = arith.constant dense<0.000000e+00> : vector<64x128xf32>
    %461 = tpu.matmul %459, %460, %cst_381 {dimension_numbers = #tpu.dot_dimension_numbers<[1], [0], [0], [1], [0, 0, 1, 1], [], []>} : vector<64x32xf32>, vector<32x128xf32>, vector<64x128xf32> -> vector<64x128xf32>
    %c0_382 = arith.constant 0 : index
    %c0_383 = arith.constant 0 : index
    %462 = vector.load %arg5[%c0_382, %c0_383] : memref<1x128xf32, #tpu.memory_space<vmem>>, vector<1x128xf32>
    %463 = vector.broadcast %462 : vector<1x128xf32> to vector<64x128xf32>
    %464 = arith.addf %461, %463 : vector<64x128xf32>
    %465 = vector.shape_cast %464 : vector<64x128xf32> to vector<8x8x128xf32>
    %c0_384 = arith.constant 0 : index
    %c0_385 = arith.constant 0 : index
    %c0_386 = arith.constant 0 : index
    %466 = vector.load %arg6[%c0_384, %c0_385, %c0_386] : memref<8x8x128xf32, #tpu.memory_space<vmem>>, vector<8x8x128xf32>
    tpu.vector_store %arg6[%c0_384, %c0_385, %c0_386], %465 {strides = array<i32>} : memref<8x8x128xf32, #tpu.memory_space<vmem>>, vector<8x8x128xf32>,
    return
  }
}

</mosaic_0001>

<bundles_post_ra>
// kernel: tpu_custom_call.1
= control target key start
LH: loop header
LB: loop body
LE: loop exit
PB: predicated region body
PF: predicated region fallthrough
CT: control target
= control target key end

     0   :  { %11 = vsyncpa [#allocation10], 0  ;;  %s5795_s0 = inlined_call_operand.hbm [shape: f32[8,8,32], index: 0, kind: input, shape index: {}]   ;;  %s5796_s1 = inlined_call_operand.hbm [shape: f32[4,32,32], index: 1, kind: input, shape index: {}]   ;;  %s5797_s2 = inlined_call_operand.hbm [shape: f32[4,32,32], index: 2, kind: input, shape index: {}]   ;;  %s5798_s3 = inlined_call_operand.vmem [shape: f32[4,1,32], index: 3, kind: input, shape index: {}]   ;;  %s5799_s4 = inlined_call_operand.hbm [shape: f32[32,128], index: 4, kind: input, shape index: {}]   ;;  %s5800_s5 = inlined_call_operand.vmem [shape: f32[1,128], index: 5, kind: input, shape index: {}]   ;;  %s5801_s6 = inlined_call_operand.hbm [shape: f32[8,8,128], index: 6, kind: output, shape index: {}]  }
   0x1   :  { %12 = vsyncpa [#allocation13], 0 }
   0x2   :  { %13 = vsyncpa [#allocation16], 0 }
   0x3   :  { %14 = vsyncpa [#allocation11], 0  ;;  %s5029_s21 = smov [#allocation12]   ;;  %s5030_s23 = smov [#allocation9]  }
   0x4   :  { %s32_s22 = sshll.u32 %s5029_s21, 4  ;;  %s20_s24 = sshll.u32 %s5030_s23, 4  ;;  %s33_s22 = int_to_ptr.vmem [resolvable:$true] %s32_s22  ;;  %s21_s24 = int_to_ptr.vmem [resolvable:$true] %s20_s24 }
   0x5   :  { %s4929_s25 = scalar_lea.vmem %s33_s22, 2048  ;;  %p4934_p1 = scmp.lt.s32.totalorder %s33_s22, %s33_s22 }
   0x6   :  { %p4930_p0 = scmp.ne.s32.totalorder %s33_s22, %s4929_s25  ;;  %p4935_p2 = scmp.lt.s32.totalorder %s4929_s25, %s4929_s25 }
   0x8   :  { %p4936_p3 = por %p4935_p2, %p4934_p1 }
   0xa   :  { %p4937_p4 = pnand %p4936_p3, %p4930_p0 }
   0xc   :  { %4940 = shalt.err (!%p4937_p4)
}
   0xd   :  { %s5031_s26 = smov 128   ;;  %s5032_s27 = smov 8  }
   0xe   :  { %38 = dma.hbm_to_vmem [thread:$0]  %s5796_s1, 2048, %s33_s22, [#allocation13], %s5031_s26, %s5031_s26, %s5032_s27  }
   0xf   :  { %s4949_s30 = scalar_lea.vmem %s21_s24, 1024  ;;  %p4954_p6 = scmp.lt.s32.totalorder %s21_s24, %s21_s24 }
  0x10   :  { %p4950_p5 = scmp.ne.s32.totalorder %s21_s24, %s4949_s30  ;;  %p4955_p7 = scmp.lt.s32.totalorder %s4949_s30, %s4949_s30 }
  0x12   :  { %p4956_p8 = por %p4955_p7, %p4954_p6 }
  0x14   :  { %p4957_p9 = pnand %p4956_p8, %p4950_p5 }
  0x16   :  { %4960 = shalt.err (!%p4957_p9)
}
  0x17   :  { %26 = dma.hbm_to_vmem [thread:$0]  %s5795_s0, 1024, %s21_s24, [#allocation10], %s5031_s26, %s5031_s26, %s5032_s27  }
  0x18   :  { %s5033_s9 = smov [#allocation14]   ;;  %s5034_s11 = smov [#allocation15]  }
  0x19   :  { %s44_s10 = sshll.u32 %s5033_s9, 4  ;;  %s58_s12 = sshll.u32 %s5034_s11, 4  ;;  %s45_s10 = int_to_ptr.vmem [resolvable:$true] %s44_s10  ;;  %s59_s12 = int_to_ptr.vmem [resolvable:$true] %s58_s12 }
  0x1a   :  { %s4969_s1 = scalar_lea.vmem %s45_s10, 2048  ;;  %p4974_p11 = scmp.lt.s32.totalorder %s45_s10, %s45_s10 }
  0x1b   :  { %p4970_p10 = scmp.ne.s32.totalorder %s45_s10, %s4969_s1  ;;  %p4975_p12 = scmp.lt.s32.totalorder %s4969_s1, %s4969_s1 }
  0x1d   :  { %p4976_p13 = por %p4975_p12, %p4974_p11 }
  0x1f   :  { %p4977_p0 = pnand %p4976_p13, %p4970_p10 }
  0x21   :  { %4980 = shalt.err (!%p4977_p0)
}
  0x22   :  { %50 = dma.hbm_to_vmem [thread:$0]  %s5797_s2, 2048, %s45_s10, [#allocation13], %s5031_s26, %s5031_s26, %s5032_s27  }
  0x23   :  { %s4989_s0 = scalar_lea.vmem %s59_s12, 512  ;;  %p4994_p2 = scmp.lt.s32.totalorder %s59_s12, %s59_s12 }
  0x24   :  { %p4990_p1 = scmp.ne.s32.totalorder %s59_s12, %s4989_s0  ;;  %p4995_p3 = scmp.lt.s32.totalorder %s4989_s0, %s4989_s0 }
  0x26   :  { %p4996_p4 = por %p4995_p3, %p4994_p2 }
  0x28   :  { %p4997_p5 = pnand %p4996_p4, %p4990_p1 }
  0x2a   :  { %5000 = shalt.err (!%p4997_p5)
}
  0x2b   :  { %64 = dma.hbm_to_vmem [thread:$0]  %s5799_s4, 512, %s59_s12, [#allocation16], %s5031_s26, %s5031_s26, %s5032_s27  }
  0x2c   :  { %5021 = dma.done.wait [#allocation10], 1024  }
  0x2d   :  { %5022 = vsyncadd [#allocation10], 4294966272 }
  0x2e   :  { %5023 = dma.done.wait [#allocation13], 4096  }
  0x2f   :  { %5024 = vsyncadd [#allocation13], 4294963200 }
  0x30   :  { %5025 = dma.done.wait [#allocation16], 512  }
  0x31   :  { %5026 = vsyncadd [#allocation16], 4294966784  ;;  %vm98_vm0 = vcmask 261120   ;;  %v5035_v0 = vmov 0.0   ;;  %v90_v1 = vld [vmem:[#allocation12 + $0x18] sm:$0xff]  ;;  %v89_v2 = vld [vmem:[#allocation12 + $0x10] sm:$0xff] }
  0x32   :  { %614 = vst.msk [vmem:[#allocation7] sm:$0xff] %vm98_vm0, %v5035_v0  ;;  %615 = vst.msk [vmem:[#allocation8] sm:$0xff] %vm98_vm0, %v5035_v0  ;;  %4323 = vmatprep.subr.mxu0 %v90_v1  ;;  %4775 = vmatprep.subr.mxu1 %v90_v1  ;;  %v88_v3 = vld [vmem:[#allocation12 + $0x8] sm:$0xff]  ;;  %v87_v4 = vld [vmem:[#allocation12] sm:$0xff]  ;;  %vm5036_vm1 = vmmov 0   ;;  %vm1008_vm2 = vcmask 253952  }
  0x33   :  { %4324 = vmatpush3.msra.mxu0 %v90_v1  ;;  %4779 = vmatpush3.msra.mxu1 %v90_v1  ;;  %v5102_v5 = vld [vmem:[#allocation9] sm:$0xff]  ;;  %v5106_v7 = vld [vmem:[#allocation9 + $0x8] sm:$0xff]  ;;  %v240_v9 = vld [vmem:[#allocation12 + $0x38] sm:$0xff]  ;;  %s5038_s24 = smov [#allocation17]  }
  0x34   :  { %4325 = vmatprep.subr.mxu0 %v89_v2  ;;  %4776 = vmatprep.subr.mxu1 %v89_v2  ;;  %v5104_v6 = vld [vmem:[#allocation9 + $0x20] sm:$0xff]  ;;  %v5108_v8 = vld [vmem:[#allocation9 + $0x28] sm:$0xff]  ;;  %v366_v10 = vld [vmem:[#allocation12 + $0x58] sm:$0xff] }
  0x35   :  { %4326 = vmatpush3.msra.mxu0 %v89_v2  ;;  %4780 = vmatpush3.msra.mxu1 %v89_v2  ;;  %v239_v11 = vld [vmem:[#allocation12 + $0x30] sm:$0xff]  ;;  %v5122_v15 = vld [vmem:[#allocation9 + $0x18] sm:$0xff]  ;;  %v238_v17 = vld [vmem:[#allocation12 + $0x28] sm:$0xff] }
  0x36   :  { %4327 = vmatprep.subr.mxu0 %v88_v3  ;;  %4777 = vmatprep.subr.mxu1 %v88_v3  ;;  %v365_v12 = vld [vmem:[#allocation12 + $0x50] sm:$0xff]  ;;  %v5124_v16 = vld [vmem:[#allocation9 + $0x38] sm:$0xff]  ;;  %v364_v18 = vld [vmem:[#allocation12 + $0x48] sm:$0xff] }
  0x37   :  { %4328 = vmatpush3.msra.mxu0 %v88_v3  ;;  %4781 = vmatpush3.msra.mxu1 %v88_v3  ;;  %v5118_v13 = vld [vmem:[#allocation9 + $0x10] sm:$0xff]  ;;  %v237_v19 = vld [vmem:[#allocation12 + $0x20] sm:$0xff]  ;;  %v492_v21 = vld [vmem:[#allocation12 + $0x78] sm:$0xff] }
  0x38   :  { %4329 = vmatprep.subr.mxu0 %v87_v4  ;;  %4778 = vmatprep.subr.mxu1 %v87_v4  ;;  %v5120_v14 = vld [vmem:[#allocation9 + $0x30] sm:$0xff]  ;;  %v363_v20 = vld [vmem:[#allocation12 + $0x40] sm:$0xff]  ;;  %v490_v23 = vld [vmem:[#allocation12 + $0x68] sm:$0xff] }
  0x39   :  { %4330 = vmatpush3.msra.mxu0 %v87_v4  ;;  %4782 = vmatpush3.msra.mxu1 %v87_v4  ;;  %v491_v22 = vld [vmem:[#allocation12 + $0x70] sm:$0xff]  ;;  %v5151_v24 = vld [vmem:[#allocation14 + $0x18] sm:$0xff]  ;;  %v489_v26 = vld [vmem:[#allocation12 + $0x60] sm:$0xff] }
  0x3a   :  { %4331 = vmatprep.mubr.msk.f32.mxu0 %vm98_vm0, %v5102_v5  ;;  %4337 = vmatprep.mubr.msk.f32.mxu1 %vm98_vm0, %v5104_v6  ;;  %v5158_v25 = vld [vmem:[#allocation14 + $0x10] sm:$0xff]  ;;  %v5170_v27 = vld [vmem:[#allocation14 + $0x8] sm:$0xff]  ;;  %v5177_v28 = vld [vmem:[#allocation14] sm:$0xff] }
  0x3b   :  { %4332 = vmatmul.mubr.msk.f32.vlgmr.msra.gmra.mxu0 %vm98_vm0, %v5106_v7  ;;  %4338 = vmatmul.mubr.msk.f32.vlgmr.msra.gmra.mxu1 %vm98_vm0, %v5108_v8  ;;  %v5180_v29 = vld [vmem:[#allocation7] sm:$0xff]  ;;  %v5188_v30 = vld [vmem:[#allocation14 + $0x38] sm:$0xff]  ;;  %v5210_v34 = vld [vmem:[#allocation14 + $0x48] sm:$0xff] }
  0x3c   :  { %4343 = vmatprep.subr.mxu1 %v240_v9  ;;  %4363 = vmatprep.subr.mxu0 %v366_v10  ;;  %v5194_v31 = vld [vmem:[#allocation14 + $0x58] sm:$0xff]  ;;  %v5201_v32 = vld [vmem:[#allocation14 + $0x30] sm:$0xff]  ;;  %v5217_v35 = vld [vmem:[#allocation14 + $0x28] sm:$0xff] }
  0x3d   :  { %4344 = vmatpush3.msra.mxu1 %v240_v9  ;;  %4364 = vmatpush3.msra.mxu0 %v366_v10  ;;  %v5203_v33 = vld [vmem:[#allocation14 + $0x50] sm:$0xff]  ;;  %v5219_v36 = vld [vmem:[#allocation14 + $0x40] sm:$0xff]  ;;  %v5244_v38 = vld [vmem:[#allocation14 + $0x78] sm:$0xff] }
  0x3e   :  { %4345 = vmatprep.subr.mxu1 %v239_v11  ;;  %4365 = vmatprep.subr.mxu0 %v365_v12  ;;  %v5232_v37 = vld [vmem:[#allocation14 + $0x20] sm:$0xff]  ;;  %v5252_v39 = vld [vmem:[#allocation14 + $0x70] sm:$0xff]  ;;  %v5259_v40 = vld [vmem:[#allocation14 + $0x68] sm:$0xff] }
  0x3f   :  { %4334 = vmatprep.mubr.msk.f32.mxu0 %vm98_vm0, %v5118_v13  ;;  %4340 = vmatprep.mubr.msk.f32.mxu1 %vm98_vm0, %v5120_v14  ;;  %v5265_v41 = vld [vmem:[#allocation14 + $0x60] sm:$0xff]  ;;  %v3999_v42 = vld [vmem:[%s5798_s3] ss:$0 sm:$0xff]  ;;  %v4009_v59 = vld [vmem:[%s5798_s3 + $0x1] ss:$0 sm:$0xff] }
  0x40   :  { %4346 = vmatpush3.msra.mxu1 %v239_v11  ;;  %4366 = vmatpush3.msra.mxu0 %v365_v12  ;;  %v4019_v60 = vld [vmem:[%s5798_s3 + $0x2] ss:$0 sm:$0xff] }
  0x41   :  { %4335 = vmatmul.mubr.msk.f32.gmra.mxu0 %vm98_vm0, %v5122_v15  ;;  %4341 = vmatmul.mubr.msk.f32.gmra.mxu1 %vm98_vm0, %v5124_v16 }
  0x42   :  { %4347 = vmatprep.subr.mxu1 %v238_v17  ;;  %4367 = vmatprep.subr.mxu0 %v364_v18 }
  0x43   :  { %4348 = vmatpush3.msra.mxu1 %v238_v17  ;;  %4368 = vmatpush3.msra.mxu0 %v364_v18 }
  0x44   :  { %4349 = vmatprep.subr.mxu1 %v237_v19  ;;  %4369 = vmatprep.subr.mxu0 %v363_v20 }
  0x45   :  { %4350 = vmatpush3.msra.mxu1 %v237_v19  ;;  %4351 = vmatprep.mubr.msk.f32.mxu1 %vm98_vm0, %v5102_v5 }
  0x46   :  { %4370 = vmatpush3.msra.mxu0 %v363_v20  ;;  %4371 = vmatprep.mubr.msk.f32.mxu0 %vm98_vm0, %v5102_v5 }
  0x47   :  { %4352 = vmatmul.mubr.msk.f32.vlgmr.msra.gmra.mxu1 %vm98_vm0, %v5106_v7  ;;  %4372 = vmatmul.mubr.msk.f32.vlgmr.msra.gmra.mxu0 %vm98_vm0, %v5106_v7 }
  0x48   :  { %4383 = vmatprep.subr.mxu1 %v492_v21  ;;  %4354 = vmatprep.mubr.msk.f32.mxu1 %vm98_vm0, %v5118_v13 }
  0x49   :  { %4384 = vmatpush3.msra.mxu1 %v492_v21  ;;  %4374 = vmatprep.mubr.msk.f32.mxu0 %vm98_vm0, %v5118_v13 }
  0x4a   :  { %4385 = vmatprep.subr.mxu1 %v491_v22  ;;  %4403 = vmatprep.subr.mxu0 %v5035_v0 }
  0x4b   :  { %4355 = vmatmul.mubr.msk.f32.gmra.mxu1 %vm98_vm0, %v5122_v15  ;;  %4375 = vmatmul.mubr.msk.f32.gmra.mxu0 %vm98_vm0, %v5122_v15 }
  0x4c   :  { %4386 = vmatpush3.msra.mxu1 %v491_v22  ;;  %4357 = vmatprep.mubr.msk.f32.mxu1 %vm98_vm0, %v5104_v6 }
  0x4d   :  { %4377 = vmatprep.mubr.msk.f32.mxu0 %vm98_vm0, %v5104_v6  ;;  %4387 = vmatprep.subr.mxu1 %v490_v23 }
  0x4e   :  { %4388 = vmatpush3.msra.mxu1 %v490_v23  ;;  %4404 = vmatpush3.msra.mxu0 %v5151_v24 }
  0x4f   :  { %4358 = vmatmul.mubr.msk.f32.gmra.mxu1 %vm98_vm0, %v5108_v8  ;;  %4378 = vmatmul.mubr.msk.f32.gmra.mxu0 %vm98_vm0, %v5108_v8 }
  0x50   :  { %4405 = vmatprep.subr.mxu0 %v5035_v0  ;;  %4360 = vmatprep.mubr.msk.f32.mxu1 %vm98_vm0, %v5120_v14 }
  0x51   :  { %4380 = vmatprep.mubr.msk.f32.mxu0 %vm98_vm0, %v5120_v14  ;;  %4406 = vmatpush3.msra.mxu0 %v5158_v25 }
  0x52   :  { %4389 = vmatprep.subr.mxu1 %v489_v26  ;;  %4407 = vmatprep.subr.mxu0 %v5035_v0 }
  0x53   :  { %4361 = vmatmul.mubr.msk.f32.gmra.mxu1 %vm98_vm0, %v5124_v16  ;;  %4381 = vmatmul.mubr.msk.f32.gmra.mxu0 %vm98_vm0, %v5124_v16 }
  0x54   :  { %4390 = vmatpush3.msra.mxu1 %v489_v26  ;;  %4408 = vmatpush3.msra.mxu0 %v5170_v27 }
  0x55   :  { %4409 = vmatprep.subr.mxu0 %v5035_v0  ;;  %4391 = vmatprep.mubr.msk.f32.mxu1 %vm98_vm0, %v5102_v5 }
  0x56   :  { %4410 = vmatpush3.msra.mxu0 %v5177_v28  ;;  %4411 = vmatprep.mubr.msk.f32.mxu0 %vm5036_vm1, %v5035_v0 }
  0x57   :  { %4392 = vmatmul.mubr.msk.f32.vlgmr.msra.gmra.mxu1 %vm98_vm0, %v5106_v7  ;;  %4412 = vmatmul.mubr.msk.f32.vlgmr.msra.gmra.mxu0 %vm98_vm0, %v5180_v29 }
  0x58   :  { %4414 = vmatprep.subr.mxu1 %v5035_v0  ;;  %4394 = vmatprep.mubr.msk.f32.mxu1 %vm98_vm0, %v5118_v13 }
  0x59   :  { %4415 = vmatpush3.msra.mxu1 %v5188_v30  ;;  %4425 = vmatprep.subr.mxu0 %v5035_v0 }
  0x5a   :  { %4416 = vmatprep.subr.mxu1 %v5035_v0  ;;  %4426 = vmatpush3.msra.mxu0 %v5194_v31 }
  0x5b   :  { %4395 = vmatmul.mubr.msk.f32.gmra.mxu1 %vm98_vm0, %v5122_v15  ;;  %4427 = vmatprep.subr.mxu0 %v5035_v0 }
  0x5c   :  { %4417 = vmatpush3.msra.mxu1 %v5201_v32  ;;  %4428 = vmatpush3.msra.mxu0 %v5203_v33 }
  0x5d   :  { %4397 = vmatprep.mubr.msk.f32.mxu1 %vm98_vm0, %v5104_v6  ;;  %4429 = vmatprep.subr.mxu0 %v5035_v0 }
  0x5e   :  { %4418 = vmatprep.subr.mxu1 %v5035_v0  ;;  %4430 = vmatpush3.msra.mxu0 %v5210_v34 }
  0x5f   :  { %4398 = vmatmul.mubr.msk.f32.gmra.mxu1 %vm98_vm0, %v5108_v8  ;;  %4431 = vmatprep.subr.mxu0 %v5035_v0 }
  0x60   :  { %4419 = vmatpush3.msra.mxu1 %v5217_v35  ;;  %4432 = vmatpush3.msra.mxu0 %v5219_v36 }
  0x61   :  { %4433 = vmatprep.mubr.msk.f32.mxu0 %vm5036_vm1, %v5035_v0  ;;  %4400 = vmatprep.mubr.msk.f32.mxu1 %vm98_vm0, %v5120_v14 }
  0x62   :  { %4434 = vmatmul.mubr.msk.f32.vlgmr.msra.gmra.mxu0 %vm98_vm0, %v5180_v29  ;;  %4420 = vmatprep.subr.mxu1 %v5035_v0 }
  0x63   :  { %4401 = vmatmul.mubr.msk.f32.gmra.mxu1 %vm98_vm0, %v5124_v16  ;;  %4447 = vmatprep.subr.mxu0 %v5035_v0 }
  0x64   :  { %4421 = vmatpush3.msra.mxu1 %v5232_v37  ;;  %4422 = vmatprep.mubr.msk.f32.mxu1 %vm5036_vm1, %v5035_v0 }
  0x65   :  { %4436 = vmatprep.subr.mxu1 %v5035_v0  ;;  %4448 = vmatpush3.msra.mxu0 %v5151_v24 }
  0x66   :  { %4449 = vmatprep.subr.mxu0 %v5035_v0  ;;  %4455 = vmatprep.mubr.msk.f32.mxu0 %vm5036_vm1, %v5035_v0 }
  0x67   :  { %4423 = vmatmul.mubr.msk.f32.vlgmr.msra.gmra.mxu1 %vm98_vm0, %v5180_v29  ;;  %4450 = vmatpush3.msra.mxu0 %v5158_v25 }
  0x68   :  { %4437 = vmatpush3.msra.mxu1 %v5244_v38  ;;  %4444 = vmatprep.mubr.msk.f32.mxu1 %vm5036_vm1, %v5035_v0 }
  0x69   :  { %4438 = vmatprep.subr.mxu1 %v5035_v0  ;;  %4451 = vmatprep.subr.mxu0 %v5035_v0 }
  0x6a   :  { %4439 = vmatpush3.msra.mxu1 %v5252_v39  ;;  %4452 = vmatpush3.msra.mxu0 %v5170_v27 }
  0x6b   :  { %4440 = vmatprep.subr.mxu1 %v5035_v0  ;;  %4453 = vmatprep.subr.mxu0 %v5035_v0 }
  0x6c   :  { %4441 = vmatpush3.msra.mxu1 %v5259_v40  ;;  %4454 = vmatpush3.msra.mxu0 %v5177_v28 }
  0x6d   :  { %4442 = vmatprep.subr.mxu1 %v5035_v0  ;;  %4469 = vmatprep.subr.mxu0 %v5035_v0 }
  0x6e   :  { %4443 = vmatpush3.msra.mxu1 %v5265_v41 }
  0x6f   :  { %4445 = vmatmul.mubr.msk.f32.vlgmr.msra.gmra.mxu1 %vm98_vm0, %v5180_v29  ;;  %4458 = vmatprep.subr.mxu1 %v5035_v0 }
  0x70   :  { %4459 = vmatpush3.msra.mxu1 %v5188_v30  ;;  %4466 = vmatprep.mubr.msk.f32.mxu1 %vm5036_vm1, %v5035_v0 }
  0x71   :  { %4460 = vmatprep.subr.mxu1 %v5035_v0 }
  0x72   :  { %4461 = vmatpush3.msra.mxu1 %v5201_v32 }
  0x73   :  { %4462 = vmatprep.subr.mxu1 %v5035_v0 }
  0x74   :  { %4463 = vmatpush3.msra.mxu1 %v5217_v35 }
  0x75   :  { %4464 = vmatprep.subr.mxu1 %v5035_v0 }
  0x76   :  { %4465 = vmatpush3.msra.mxu1 %v5232_v37 }
  0x77   :  { %4480 = vmatprep.subr.mxu1 %v5035_v0 }
  0xfb   :  { %v4333_v43 = vpop.f32.mrf.mxu0  ;;  %v4339_v44 = vpop.f32.mrf.mxu1 }
  0xfc   :  { %v195_v45 = vadd.f32 %v4333_v43, %v3999_v42  ;;  %v215_v46 = vadd.f32 %v4339_v44, %v3999_v42  ;;  %v4029_v44 = vld [vmem:[%s5798_s3 + $0x3] ss:$0 sm:$0xff] }
  0xfd   :  { %v189_v47 = vpop.f32.mrf.mxu0  ;;  %v209_v48 = vpop.f32.mrf.mxu1 }
  0xfe   :  { %229 = vst.msk [vmem:[#allocation2 + $0x8] sm:$0xff] %vm98_vm0, %v195_v45  ;;  %233 = vst.msk [vmem:[#allocation2 + $0x28] sm:$0xff] %vm98_vm0, %v215_v46  ;;  %v190_v49 = vadd.f32 %v3999_v42, %v189_v47  ;;  %v210_v50 = vadd.f32 %v3999_v42, %v209_v48 }
 0x100   :  { %228 = vst.msk [vmem:[#allocation2] sm:$0xff] %vm98_vm0, %v190_v49  ;;  %232 = vst.msk [vmem:[#allocation2 + $0x20] sm:$0xff] %vm98_vm0, %v210_v50 }
 0x101   :  { %v4336_v51 = vpop.f32.mrf.mxu0  ;;  %v4342_v52 = vpop.f32.mrf.mxu1 }
 0x102   :  { %v205_v53 = vadd.f32 %v4336_v51, %v3999_v42  ;;  %v225_v54 = vadd.f32 %v4342_v52, %v3999_v42 }
 0x103   :  { %v199_v55 = vpop.f32.mrf.mxu0  ;;  %v219_v56 = vpop.f32.mrf.mxu1 }
 0x104   :  { %231 = vst.msk [vmem:[#allocation2 + $0x18] sm:$0xff] %vm98_vm0, %v205_v53  ;;  %235 = vst.msk [vmem:[#allocation2 + $0x38] sm:$0xff] %vm98_vm0, %v225_v54  ;;  %v200_v57 = vadd.f32 %v3999_v42, %v199_v55  ;;  %v220_v58 = vadd.f32 %v3999_v42, %v219_v56 }
 0x106   :  { %230 = vst.msk [vmem:[#allocation2 + $0x10] sm:$0xff] %vm98_vm0, %v200_v57  ;;  %234 = vst.msk [vmem:[#allocation2 + $0x30] sm:$0xff] %vm98_vm0, %v220_v58 }
 0x107   :  { %v4353_v61 = vpop.f32.mrf.mxu1  ;;  %v4373_v62 = vpop.f32.mrf.mxu0  ;;  %v621_v54 = vld [vmem:[#allocation2] sm:$0xff] }
 0x108   :  { %v321_v63 = vadd.f32 %v4353_v61, %v4009_v59  ;;  %v447_v1 = vadd.f32 %v4373_v62, %v4019_v60 }
 0x109   :  { %v315_v2 = vpop.f32.mrf.mxu1  ;;  %v441_v3 = vpop.f32.mrf.mxu0 }
 0x10a   :  { %355 = vst.msk [vmem:[#allocation3 + $0x8] sm:$0xff] %vm98_vm0, %v321_v63  ;;  %481 = vst.msk [vmem:[#allocation4 + $0x8] sm:$0xff] %vm98_vm0, %v447_v1  ;;  %v316_v4 = vadd.f32 %v4009_v59, %v315_v2  ;;  %v442_v5 = vadd.f32 %v4019_v60, %v441_v3 }
 0x10b   :  { %v4356_v6 = vpop.f32.mrf.mxu1  ;;  %v4376_v7 = vpop.f32.mrf.mxu0 }
 0x10c   :  { %354 = vst.msk [vmem:[#allocation3] sm:$0xff] %vm98_vm0, %v316_v4  ;;  %480 = vst.msk [vmem:[#allocation4] sm:$0xff] %vm98_vm0, %v442_v5  ;;  %v331_v8 = vadd.f32 %v4356_v6, %v4009_v59  ;;  %v457_v9 = vadd.f32 %v4376_v7, %v4019_v60 }
 0x10d   :  { %v325_v10 = vpop.f32.mrf.mxu1  ;;  %v451_v11 = vpop.f32.mrf.mxu0 }
 0x10e   :  { %357 = vst.msk [vmem:[#allocation3 + $0x18] sm:$0xff] %vm98_vm0, %v331_v8  ;;  %483 = vst.msk [vmem:[#allocation4 + $0x18] sm:$0xff] %vm98_vm0, %v457_v9  ;;  %v326_v12 = vadd.f32 %v4009_v59, %v325_v10  ;;  %v452_v13 = vadd.f32 %v4019_v60, %v451_v11 }
 0x10f   :  { %v4359_v14 = vpop.f32.mrf.mxu1  ;;  %v4379_v15 = vpop.f32.mrf.mxu0 }
 0x110   :  { %356 = vst.msk [vmem:[#allocation3 + $0x10] sm:$0xff] %vm98_vm0, %v326_v12  ;;  %482 = vst.msk [vmem:[#allocation4 + $0x10] sm:$0xff] %vm98_vm0, %v452_v13  ;;  %v341_v16 = vadd.f32 %v4359_v14, %v4009_v59  ;;  %v467_v17 = vadd.f32 %v4379_v15, %v4019_v60 }
 0x111   :  { %v335_v18 = vpop.f32.mrf.mxu1  ;;  %v461_v19 = vpop.f32.mrf.mxu0 }
 0x112   :  { %359 = vst.msk [vmem:[#allocation3 + $0x28] sm:$0xff] %vm98_vm0, %v341_v16  ;;  %485 = vst.msk [vmem:[#allocation4 + $0x28] sm:$0xff] %vm98_vm0, %v467_v17  ;;  %v336_v20 = vadd.f32 %v4009_v59, %v335_v18  ;;  %v462_v21 = vadd.f32 %v4019_v60, %v461_v19 }
 0x113   :  { %v4362_v22 = vpop.f32.mrf.mxu1  ;;  %v4382_v23 = vpop.f32.mrf.mxu0  ;;  %v706_v7 = vld [vmem:[#allocation3] sm:$0xff] }
 0x114   :  { %358 = vst.msk [vmem:[#allocation3 + $0x20] sm:$0xff] %vm98_vm0, %v336_v20  ;;  %484 = vst.msk [vmem:[#allocation4 + $0x20] sm:$0xff] %vm98_vm0, %v462_v21  ;;  %v351_v26 = vadd.f32 %v4362_v22, %v4009_v59  ;;  %v477_v29 = vadd.f32 %v4382_v23, %v4019_v60  ;;  %v788_v17 = vld [vmem:[#allocation4] sm:$0xff] }
 0x115   :  { %v345_v42 = vpop.f32.mrf.mxu1  ;;  %v471_v43 = vpop.f32.mrf.mxu0 }
 0x116   :  { %361 = vst.msk [vmem:[#allocation3 + $0x38] sm:$0xff] %vm98_vm0, %v351_v26  ;;  %487 = vst.msk [vmem:[#allocation4 + $0x38] sm:$0xff] %vm98_vm0, %v477_v29  ;;  %v346_v45 = vadd.f32 %v4009_v59, %v345_v42  ;;  %v472_v46 = vadd.f32 %v4019_v60, %v471_v43  ;;  %v942_v29 = vld [vmem:[#allocation8] sm:$0xff] }
 0x117   :  { %v4393_v47 = vpop.f32.mrf.mxu1  ;;  %v691_v48 = vpop.f32.mrf.mxu0 }
 0x118   :  { %360 = vst.msk [vmem:[#allocation3 + $0x30] sm:$0xff] %vm98_vm0, %v346_v45  ;;  %486 = vst.msk [vmem:[#allocation4 + $0x30] sm:$0xff] %vm98_vm0, %v472_v46  ;;  %v573_v49 = vadd.f32 %v4393_v47, %v4029_v44  ;;  %v692_v58 = vadd.f32 %v691_v48, %v621_v54  ;;  %v5037_v48 = vmov 1966171168  }
 0x119   :  { %v567_v50 = vpop.f32.mrf.mxu1  ;;  %v4413_v51 = vpop.f32.mrf.mxu0 }
 0x11a   :  { %607 = vst.msk [vmem:[#allocation5 + $0x8] sm:$0xff] %vm98_vm0, %v573_v49  ;;  %v568_v52 = vadd.f32 %v4029_v44, %v567_v50  ;;  %v4039_v1 = vmul.f32 -1.442695, %v692_v58  ;;  %v953_v49 = vunpack.c.l.s4 %v5037_v48  ;;  %v955_v50 = vlaneseq }
 0x11b   :  { %v4396_v53 = vpop.f32.mrf.mxu1 }
 0x11c   :  { %606 = vst.msk [vmem:[#allocation5] sm:$0xff] %vm98_vm0, %v568_v52  ;;  %v583_v55 = vadd.f32 %v4396_v53, %v4029_v44  ;;  %4793 = vpow2.f32 %v4039_v1  ;;  %v954_v51 = vunpack.c.0.s8 %v953_v49  ;;  %v956_v52 = vshrl.u32 %v955_v50, 7 }
 0x11d   :  { %v577_v56 = vpop.f32.mrf.mxu1 }
 0x11e   :  { %609 = vst.msk [vmem:[#allocation5 + $0x18] sm:$0xff] %vm98_vm0, %v583_v55  ;;  %v578_v57 = vadd.f32 %v4029_v44, %v577_v56  ;;  %v5331_v54 = vsub.s32 %v954_v51, %v956_v52 }
 0x11f   :  { %v4399_v59 = vpop.f32.mrf.mxu1 }
 0x120   :  { %608 = vst.msk [vmem:[#allocation5 + $0x10] sm:$0xff] %vm98_vm0, %v578_v57  ;;  %v593_v60 = vadd.f32 %v4399_v59, %v4029_v44 }
 0x121   :  { %v587_v61 = vpop.f32.mrf.mxu1 }
 0x122   :  { %611 = vst.msk [vmem:[#allocation5 + $0x28] sm:$0xff] %vm98_vm0, %v593_v60  ;;  %v588_v62 = vadd.f32 %v4029_v44, %v587_v61  ;;  %v855_v63 = vpop.f32.mrf.mxu0 }
 0x123   :  { %v4402_v2 = vpop.f32.mrf.mxu1  ;;  %v865_v13 = vld [vmem:[#allocation5] sm:$0xff]  ;;  %v856_v20 = vadd.f32 %v855_v63, %v788_v17 }
 0x124   :  { %610 = vst.msk [vmem:[#allocation5 + $0x20] sm:$0xff] %vm98_vm0, %v588_v62  ;;  %v603_v3 = vadd.f32 %v4402_v2, %v4029_v44  ;;  %v4435_v4 = vpop.f32.mrf.mxu0 }
 0x125   :  { %v597_v5 = vpop.f32.mrf.mxu1 }
 0x126   :  { %613 = vst.msk [vmem:[#allocation5 + $0x38] sm:$0xff] %vm98_vm0, %v603_v3  ;;  %v598_v6 = vadd.f32 %v4029_v44, %v597_v5 }
 0x127   :  { %v773_v8 = vpop.f32.mrf.mxu1 }
 0x128   :  { %612 = vst.msk [vmem:[#allocation5 + $0x30] sm:$0xff] %vm98_vm0, %v598_v6  ;;  %v774_v9 = vadd.f32 %v773_v8, %v706_v7  ;;  %v1023_v8 = vld [vmem:[#allocation2 + $0x8] sm:$0xff] }
 0x129   :  { %v4424_v10 = vpop.f32.mrf.mxu1  ;;  %v4794_v16 = vpop.eup %4793 }
 0x12a   :  { %v4041_v11 = vmul.f32 -1.442695, %v774_v9  ;;  %v698_v19 = vadd.f32 1.0, %v4794_v16  ;;  %v1108_v10 = vld [vmem:[#allocation3 + $0x8] sm:$0xff] }
 0x12c   :  { %4795 = vpow2.f32 %v4041_v11 }
 0x12f   :  { %v932_v12 = vpop.f32.mrf.mxu1 }
 0x130   :  { %v933_v15 = vadd.f32 %v932_v12, %v865_v13 }
 0x131   :  { %v4446_v14 = vpop.f32.mrf.mxu1 }
 0x132   :  { %v4044_v18 = vmul.f32 -1.442695, %v933_v15 }
 0x134   :  { %4797 = vpow2.f32 %v4044_v18 }
 0x135   :  { %4799 = vrcp.f32 %v698_v19 }
 0x136   :  { %4801 = vtanh.f32 %v856_v20  ;;  %v1267_v20 = vld [vmem:[#allocation5 + $0x8] sm:$0xff] }
 0x139   :  { %v4796_v21 = vpop.eup %4795 }
 0x13a   :  { %v780_v22 = vadd.f32 1.0, %v4796_v21 }
 0x13c   :  { %4803 = vrcp.f32 %v780_v22 }
 0x141   :  { %v4798_v23 = vpop.eup %4797 }
 0x142   :  { %v4800_v26 = vpop.eup %4799  ;;  %v939_v44 = vadd.f32 1.0, %v4798_v23 }
 0x143   :  { %v4802_v42 = vpop.eup %4801 }
 0x144   :  { %v944_v45 = vmul.f32 %v4802_v42, %v4800_v26  ;;  %4805 = vrcp.f32 %v939_v44  ;;  %v1190_v26 = vld [vmem:[#allocation4 + $0x8] sm:$0xff] }
 0x149   :  { %v4804_v43 = vpop.eup %4803 }
 0x14a   :  { %v943_v46 = vmul.f32 %v4804_v43, %v942_v29 }
 0x14c   :  { %v945_v47 = vadd.f32 %v944_v45, %v943_v46 }
 0x14e   :  { %4807 = vtanh.f32 %v945_v47  ;;  %948 = vst.msk [vmem:[#allocation8] sm:$0xff] %vm98_vm0, %v945_v47 }
 0x151   :  { %v4806_v53 = vpop.eup %4805 }
 0x155   :  { %v1344_v51 = vld [vmem:[#allocation8] sm:$0xff] }
 0x15b   :  { %v4808_v55 = vpop.eup %4807 }
 0x15c   :  { %v947_v56 = vmul.f32 %v4808_v55, %v4806_v53 }
 0x15e   :  { %949 = vst.msk [vmem:[#allocation7] sm:$0xff] %vm98_vm0, %v947_v56  ;;  %v951_v57 = vcombine.high %v947_v56, %v947_v56  ;;  %v958_v58 = vrot.slane %v947_v56, %v5331_v54 }
 0x160   :  { %v965_v59 = vrot.slane %v951_v57, %v5331_v54  ;;  %v966_v60 = vcombine.high %v958_v58, %v958_v58  ;;  %v974_v61 = vrot.slane %v958_v58, %v5331_v54 }
 0x162   :  { %v967_v62 = vcombine.high %v965_v59, %v965_v59  ;;  %v981_v63 = vrot.slane %v965_v59, %v5331_v54  ;;  %v988_v1 = vrot.slane %v966_v60, %v5331_v54  ;;  %v996_v2 = vcombine.high %v974_v61, %v974_v61  ;;  %1009 = vst.msk [vmem:[#allocation6] sm:$0x1] %vm1008_vm2, %v974_v61 }
 0x164   :  { %v995_v3 = vrot.slane %v967_v62, %v5331_v54  ;;  %v997_v4 = vcombine.high %v981_v63, %v981_v63  ;;  %v998_v5 = vcombine.high %v988_v1, %v988_v1  ;;  %1010 = vst.msk [vmem:[#allocation6 + $0x8] sm:$0x1] %vm1008_vm2, %v988_v1  ;;  %1011 = vst.msk [vmem:[#allocation6 + $0x10] sm:$0x1] %vm1008_vm2, %v996_v2 }
 0x165   :  { %1013 = vst.msk [vmem:[#allocation6 + $0x20] sm:$0x1] %vm1008_vm2, %v981_v63  ;;  %v1017_v6 = vld [vmem:[#allocation7] sm:$0xff] }
 0x166   :  { %v999_v7 = vcombine.high %v995_v3, %v995_v3  ;;  %1012 = vst.msk [vmem:[#allocation6 + $0x18] sm:$0x1] %vm1008_vm2, %v998_v5  ;;  %1014 = vst.msk [vmem:[#allocation6 + $0x28] sm:$0x1] %vm1008_vm2, %v995_v3  ;;  %4456 = vmatmul.mubr.msk.f32.vlgmr.msra.gmra.mxu0 %vm98_vm0, %v1017_v6  ;;  %4467 = vmatmul.mubr.msk.f32.vlgmr.msra.gmra.mxu1 %vm98_vm0, %v1017_v6 }
 0x167   :  { %1015 = vst.msk [vmem:[#allocation6 + $0x30] sm:$0x1] %vm1008_vm2, %v997_v4  ;;  %4470 = vmatpush3.msra.mxu0 %v5194_v31  ;;  %4481 = vmatpush3.msra.mxu1 %v5244_v38 }
 0x168   :  { %1016 = vst.msk [vmem:[#allocation6 + $0x38] sm:$0x1] %vm1008_vm2, %v999_v7  ;;  %4471 = vmatprep.subr.mxu0 %v5035_v0  ;;  %4482 = vmatprep.subr.mxu1 %v5035_v0 }
 0x169   :  { %4472 = vmatpush3.msra.mxu0 %v5203_v33  ;;  %4483 = vmatpush3.msra.mxu1 %v5252_v39 }
 0x16a   :  { %4473 = vmatprep.subr.mxu0 %v5035_v0  ;;  %4484 = vmatprep.subr.mxu1 %v5035_v0 }
 0x16b   :  { %4474 = vmatpush3.msra.mxu0 %v5210_v34  ;;  %4485 = vmatpush3.msra.mxu1 %v5259_v40 }
 0x16c   :  { %4475 = vmatprep.subr.mxu0 %v5035_v0  ;;  %4486 = vmatprep.subr.mxu1 %v5035_v0 }
 0x16d   :  { %4476 = vmatpush3.msra.mxu0 %v5219_v36  ;;  %4477 = vmatprep.mubr.msk.f32.mxu0 %vm5036_vm1, %v5035_v0 }
 0x16e   :  { %4487 = vmatpush3.msra.mxu1 %v5265_v41  ;;  %4488 = vmatprep.mubr.msk.f32.mxu1 %vm5036_vm1, %v5035_v0 }
 0x16f   :  { %4478 = vmatmul.mubr.msk.f32.vlgmr.msra.gmra.mxu0 %vm98_vm0, %v1017_v6  ;;  %4489 = vmatmul.mubr.msk.f32.vlgmr.msra.gmra.mxu1 %vm98_vm0, %v1017_v6 }
 0x170   :  { %4491 = vmatprep.subr.mxu0 %v5035_v0  ;;  %4502 = vmatprep.subr.mxu1 %v5035_v0 }
 0x171   :  { %4492 = vmatpush3.msra.mxu0 %v5151_v24  ;;  %4503 = vmatpush3.msra.mxu1 %v5188_v30 }
 0x172   :  { %4493 = vmatprep.subr.mxu0 %v5035_v0  ;;  %4504 = vmatprep.subr.mxu1 %v5035_v0 }
 0x173   :  { %4494 = vmatpush3.msra.mxu0 %v5158_v25  ;;  %4505 = vmatpush3.msra.mxu1 %v5201_v32 }
 0x174   :  { %4495 = vmatprep.subr.mxu0 %v5035_v0  ;;  %4506 = vmatprep.subr.mxu1 %v5035_v0 }
 0x175   :  { %4496 = vmatpush3.msra.mxu0 %v5170_v27  ;;  %4507 = vmatpush3.msra.mxu1 %v5217_v35 }
 0x176   :  { %4497 = vmatprep.subr.mxu0 %v5035_v0  ;;  %4508 = vmatprep.subr.mxu1 %v5035_v0 }
 0x177   :  { %4498 = vmatpush3.msra.mxu0 %v5177_v28  ;;  %4509 = vmatpush3.msra.mxu1 %v5232_v37 }
 0x178   :  { %4499 = vmatprep.mubr.msk.f32.mxu0 %vm5036_vm1, %v5035_v0  ;;  %4510 = vmatprep.mubr.msk.f32.mxu1 %vm5036_vm1, %v5035_v0 }
 0x179   :  { %4513 = vmatprep.subr.mxu0 %v5035_v0  ;;  %4524 = vmatprep.subr.mxu1 %v5035_v0 }
 0x226   :  { %v1093_v9 = vpop.f32.mrf.mxu0  ;;  %v1175_v11 = vpop.f32.mrf.mxu1 }
 0x227   :  { %v1094_v12 = vadd.f32 %v1093_v9, %v1023_v8  ;;  %v1176_v13 = vadd.f32 %v1175_v11, %v1108_v10 }
 0x228   :  { %v4457_v14 = vpop.f32.mrf.mxu0  ;;  %v4468_v15 = vpop.f32.mrf.mxu1 }
 0x229   :  { %v4046_v16 = vmul.f32 -1.442695, %v1094_v12  ;;  %v4048_v17 = vmul.f32 -1.442695, %v1176_v13  ;;  %v1668_v15 = vld [vmem:[#allocation5 + $0x10] sm:$0xff] }
 0x22b   :  { %4809 = vpow2.f32 %v4046_v16 }
 0x22c   :  { %4811 = vpow2.f32 %v4048_v17 }
 0x22f   :  { %v1257_v18 = vpop.f32.mrf.mxu0  ;;  %v1334_v19 = vpop.f32.mrf.mxu1 }
 0x230   :  { %v1335_v21 = vadd.f32 %v1334_v19, %v1267_v20  ;;  %v1258_v42 = vadd.f32 %v1257_v18, %v1190_v26  ;;  %v1591_v19 = vld [vmem:[#allocation4 + $0x10] sm:$0xff] }
 0x231   :  { %v4479_v22 = vpop.f32.mrf.mxu0  ;;  %v4490_v23 = vpop.f32.mrf.mxu1 }
 0x232   :  { %v4051_v29 = vmul.f32 -1.442695, %v1335_v21 }
 0x234   :  { %4813 = vpow2.f32 %v4051_v29 }
 0x235   :  { %4815 = vtanh.f32 %v1258_v42 }
 0x238   :  { %v4810_v43 = vpop.eup %4809 }
 0x239   :  { %v4812_v44 = vpop.eup %4811  ;;  %v1100_v45 = vadd.f32 1.0, %v4810_v43 }
 0x23a   :  { %v1182_v46 = vadd.f32 1.0, %v4812_v44 }
 0x23b   :  { %4817 = vrcp.f32 %v1100_v45 }
 0x23c   :  { %4819 = vrcp.f32 %v1182_v46 }
 0x241   :  { %v4814_v47 = vpop.eup %4813 }
 0x242   :  { %v4816_v48 = vpop.eup %4815  ;;  %v1341_v53 = vadd.f32 1.0, %v4814_v47 }
 0x244   :  { %4821 = vrcp.f32 %v1341_v53 }
 0x248   :  { %v4818_v49 = vpop.eup %4817 }
 0x249   :  { %v4820_v50 = vpop.eup %4819  ;;  %v1346_v52 = vmul.f32 %v4818_v49, %v4816_v48 }
 0x24a   :  { %v1345_v55 = vmul.f32 %v4820_v50, %v1344_v51 }
 0x24c   :  { %v1347_v56 = vadd.f32 %v1346_v52, %v1345_v55 }
 0x24e   :  { %4823 = vtanh.f32 %v1347_v56  ;;  %1350 = vst.msk [vmem:[#allocation8] sm:$0xff] %vm98_vm0, %v1347_v56 }
 0x251   :  { %v4822_v57 = vpop.eup %4821 }
 0x255   :  { %v1745_v46 = vld [vmem:[#allocation8] sm:$0xff] }
 0x25b   :  { %v4824_v58 = vpop.eup %4823 }
 0x25c   :  { %v1349_v59 = vmul.f32 %v4824_v58, %v4822_v57 }
 0x25e   :  { %1351 = vst.msk [vmem:[#allocation7] sm:$0xff] %vm98_vm0, %v1349_v59  ;;  %v1353_v60 = vcombine.high %v1349_v59, %v1349_v59  ;;  %v1360_v61 = vrot.slane %v1349_v59, %v5331_v54 }
 0x260   :  { %v1367_v62 = vrot.slane %v1353_v60, %v5331_v54  ;;  %v1368_v63 = vcombine.high %v1360_v61, %v1360_v61  ;;  %v1376_v1 = vrot.slane %v1360_v61, %v5331_v54 }
 0x262   :  { %v1369_v2 = vcombine.high %v1367_v62, %v1367_v62  ;;  %v1383_v3 = vrot.slane %v1367_v62, %v5331_v54  ;;  %v1390_v4 = vrot.slane %v1368_v63, %v5331_v54  ;;  %v1398_v5 = vcombine.high %v1376_v1, %v1376_v1  ;;  %1410 = vst.msk [vmem:[#allocation6 + $0x1] sm:$0x1] %vm1008_vm2, %v1376_v1 }
 0x264   :  { %v1397_v6 = vrot.slane %v1369_v2, %v5331_v54  ;;  %v1399_v7 = vcombine.high %v1383_v3, %v1383_v3  ;;  %v1400_v8 = vcombine.high %v1390_v4, %v1390_v4  ;;  %1411 = vst.msk [vmem:[#allocation6 + $0x9] sm:$0x1] %vm1008_vm2, %v1390_v4  ;;  %1412 = vst.msk [vmem:[#allocation6 + $0x11] sm:$0x1] %vm1008_vm2, %v1398_v5 }
 0x265   :  { %1414 = vst.msk [vmem:[#allocation6 + $0x21] sm:$0x1] %vm1008_vm2, %v1383_v3  ;;  %v1418_v9 = vld [vmem:[#allocation7] sm:$0xff] }
 0x266   :  { %v1401_v10 = vcombine.high %v1397_v6, %v1397_v6  ;;  %1413 = vst.msk [vmem:[#allocation6 + $0x19] sm:$0x1] %vm1008_vm2, %v1400_v8  ;;  %1415 = vst.msk [vmem:[#allocation6 + $0x29] sm:$0x1] %vm1008_vm2, %v1397_v6  ;;  %4500 = vmatmul.mubr.msk.f32.vlgmr.msra.gmra.mxu0 %vm98_vm0, %v1418_v9  ;;  %4511 = vmatmul.mubr.msk.f32.vlgmr.msra.gmra.mxu1 %vm98_vm0, %v1418_v9  ;;  %v1825_v6 = vld [vmem:[#allocation2 + $0x18] sm:$0xff] }
 0x267   :  { %1416 = vst.msk [vmem:[#allocation6 + $0x31] sm:$0x1] %vm1008_vm2, %v1399_v7  ;;  %4514 = vmatpush3.msra.mxu0 %v5194_v31  ;;  %4525 = vmatpush3.msra.mxu1 %v5244_v38  ;;  %v1910_v8 = vld [vmem:[#allocation3 + $0x18] sm:$0xff] }
 0x268   :  { %1417 = vst.msk [vmem:[#allocation6 + $0x39] sm:$0x1] %vm1008_vm2, %v1401_v10  ;;  %4515 = vmatprep.subr.mxu0 %v5035_v0  ;;  %4526 = vmatprep.subr.mxu1 %v5035_v0 }
 0x269   :  { %4516 = vmatpush3.msra.mxu0 %v5203_v33  ;;  %4527 = vmatpush3.msra.mxu1 %v5252_v39 }
 0x26a   :  { %4517 = vmatprep.subr.mxu0 %v5035_v0  ;;  %4528 = vmatprep.subr.mxu1 %v5035_v0 }
 0x26b   :  { %4518 = vmatpush3.msra.mxu0 %v5210_v34  ;;  %4529 = vmatpush3.msra.mxu1 %v5259_v40 }
 0x26c   :  { %4519 = vmatprep.subr.mxu0 %v5035_v0  ;;  %4530 = vmatprep.subr.mxu1 %v5035_v0 }
 0x26d   :  { %4520 = vmatpush3.msra.mxu0 %v5219_v36  ;;  %4521 = vmatprep.mubr.msk.f32.mxu0 %vm5036_vm1, %v5035_v0 }
 0x26e   :  { %4531 = vmatpush3.msra.mxu1 %v5265_v41  ;;  %4532 = vmatprep.mubr.msk.f32.mxu1 %vm5036_vm1, %v5035_v0 }
 0x26f   :  { %4522 = vmatmul.mubr.msk.f32.vlgmr.msra.gmra.mxu0 %vm98_vm0, %v1418_v9  ;;  %4533 = vmatmul.mubr.msk.f32.vlgmr.msra.gmra.mxu1 %vm98_vm0, %v1418_v9 }
 0x270   :  { %4535 = vmatprep.subr.mxu0 %v5035_v0  ;;  %4546 = vmatprep.subr.mxu1 %v5035_v0 }
 0x271   :  { %4536 = vmatpush3.msra.mxu0 %v5151_v24  ;;  %4547 = vmatpush3.msra.mxu1 %v5188_v30  ;;  %v1424_v24 = vld [vmem:[#allocation2 + $0x10] sm:$0xff] }
 0x272   :  { %4537 = vmatprep.subr.mxu0 %v5035_v0  ;;  %4548 = vmatprep.subr.mxu1 %v5035_v0 }
 0x273   :  { %4538 = vmatpush3.msra.mxu0 %v5158_v25  ;;  %4549 = vmatpush3.msra.mxu1 %v5201_v32 }
 0x274   :  { %4539 = vmatprep.subr.mxu0 %v5035_v0  ;;  %4550 = vmatprep.subr.mxu1 %v5035_v0 }
 0x275   :  { %4540 = vmatpush3.msra.mxu0 %v5170_v27  ;;  %4551 = vmatpush3.msra.mxu1 %v5217_v35  ;;  %v1509_v27 = vld [vmem:[#allocation3 + $0x10] sm:$0xff] }
 0x276   :  { %4541 = vmatprep.subr.mxu0 %v5035_v0  ;;  %4552 = vmatprep.subr.mxu1 %v5035_v0 }
 0x277   :  { %4542 = vmatpush3.msra.mxu0 %v5177_v28  ;;  %4553 = vmatpush3.msra.mxu1 %v5232_v37 }
 0x278   :  { %4543 = vmatprep.mubr.msk.f32.mxu0 %vm5036_vm1, %v5035_v0  ;;  %4554 = vmatprep.mubr.msk.f32.mxu1 %vm5036_vm1, %v5035_v0 }
 0x279   :  { %4557 = vmatprep.subr.mxu0 %v5035_v0  ;;  %4568 = vmatprep.subr.mxu1 %v5035_v0 }
 0x326   :  { %v1494_v25 = vpop.f32.mrf.mxu0  ;;  %v1576_v30 = vpop.f32.mrf.mxu1 }
 0x327   :  { %v1495_v32 = vadd.f32 %v1494_v25, %v1424_v24  ;;  %v1577_v35 = vadd.f32 %v1576_v30, %v1509_v27 }
 0x328   :  { %v4501_v11 = vpop.f32.mrf.mxu0  ;;  %v4512_v28 = vpop.f32.mrf.mxu1 }
 0x329   :  { %v4053_v12 = vmul.f32 -1.442695, %v1495_v32  ;;  %v4055_v37 = vmul.f32 -1.442695, %v1577_v35  ;;  %v2069_v28 = vld [vmem:[#allocation5 + $0x18] sm:$0xff] }
 0x32b   :  { %4825 = vpow2.f32 %v4053_v12 }
 0x32c   :  { %4827 = vpow2.f32 %v4055_v37 }
 0x32f   :  { %v1658_v13 = vpop.f32.mrf.mxu0  ;;  %v1735_v14 = vpop.f32.mrf.mxu1 }
 0x330   :  { %v1736_v16 = vadd.f32 %v1735_v14, %v1668_v15  ;;  %v1659_v21 = vadd.f32 %v1658_v13, %v1591_v19  ;;  %v1992_v14 = vld [vmem:[#allocation4 + $0x18] sm:$0xff] }
 0x331   :  { %v4523_v17 = vpop.f32.mrf.mxu0  ;;  %v4534_v18 = vpop.f32.mrf.mxu1 }
 0x332   :  { %v4058_v20 = vmul.f32 -1.442695, %v1736_v16 }
 0x334   :  { %4829 = vpow2.f32 %v4058_v20 }
 0x335   :  { %4831 = vtanh.f32 %v1659_v21 }
 0x338   :  { %v4826_v22 = vpop.eup %4825 }
 0x339   :  { %v4828_v23 = vpop.eup %4827  ;;  %v1501_v26 = vadd.f32 1.0, %v4826_v22 }
 0x33a   :  { %v1583_v29 = vadd.f32 1.0, %v4828_v23 }
 0x33b   :  { %4833 = vrcp.f32 %v1501_v26 }
 0x33c   :  { %4835 = vrcp.f32 %v1583_v29 }
 0x341   :  { %v4830_v42 = vpop.eup %4829 }
 0x342   :  { %v4832_v43 = vpop.eup %4831  ;;  %v1742_v48 = vadd.f32 1.0, %v4830_v42 }
 0x344   :  { %4837 = vrcp.f32 %v1742_v48 }
 0x348   :  { %v4834_v44 = vpop.eup %4833 }
 0x349   :  { %v4836_v45 = vpop.eup %4835  ;;  %v1747_v47 = vmul.f32 %v4834_v44, %v4832_v43 }
 0x34a   :  { %v1746_v49 = vmul.f32 %v4836_v45, %v1745_v46 }
 0x34c   :  { %v1748_v50 = vadd.f32 %v1747_v47, %v1746_v49 }
 0x34e   :  { %4839 = vtanh.f32 %v1748_v50  ;;  %1751 = vst.msk [vmem:[#allocation8] sm:$0xff] %vm98_vm0, %v1748_v50 }
 0x351   :  { %v4838_v51 = vpop.eup %4837 }
 0x355   :  { %v2146_v29 = vld [vmem:[#allocation8] sm:$0xff] }
 0x35b   :  { %v4840_v52 = vpop.eup %4839 }
 0x35c   :  { %v1750_v53 = vmul.f32 %v4840_v52, %v4838_v51 }
 0x35e   :  { %1752 = vst.msk [vmem:[#allocation7] sm:$0xff] %vm98_vm0, %v1750_v53  ;;  %v1754_v55 = vcombine.high %v1750_v53, %v1750_v53  ;;  %v1761_v56 = vrot.slane %v1750_v53, %v5331_v54 }
 0x360   :  { %v1768_v57 = vrot.slane %v1754_v55, %v5331_v54  ;;  %v1769_v58 = vcombine.high %v1761_v56, %v1761_v56  ;;  %v1777_v59 = vrot.slane %v1761_v56, %v5331_v54 }
 0x362   :  { %v1770_v60 = vcombine.high %v1768_v57, %v1768_v57  ;;  %v1784_v61 = vrot.slane %v1768_v57, %v5331_v54  ;;  %v1791_v62 = vrot.slane %v1769_v58, %v5331_v54  ;;  %v1799_v63 = vcombine.high %v1777_v59, %v1777_v59  ;;  %1811 = vst.msk [vmem:[#allocation6 + $0x2] sm:$0x1] %vm1008_vm2, %v1777_v59 }
 0x364   :  { %v1798_v1 = vrot.slane %v1770_v60, %v5331_v54  ;;  %v1800_v2 = vcombine.high %v1784_v61, %v1784_v61  ;;  %v1801_v3 = vcombine.high %v1791_v62, %v1791_v62  ;;  %1812 = vst.msk [vmem:[#allocation6 + $0xa] sm:$0x1] %vm1008_vm2, %v1791_v62  ;;  %1813 = vst.msk [vmem:[#allocation6 + $0x12] sm:$0x1] %vm1008_vm2, %v1799_v63  ;;  %v5540_v62 = vld [vmem:[#allocation14 + $0x58] sm:$0xff] }
 0x365   :  { %1815 = vst.msk [vmem:[#allocation6 + $0x22] sm:$0x1] %vm1008_vm2, %v1784_v61  ;;  %v1819_v4 = vld [vmem:[#allocation7] sm:$0xff]  ;;  %v5542_v63 = vld [vmem:[#allocation14 + $0x78] sm:$0xff] }
 0x366   :  { %v1802_v5 = vcombine.high %v1798_v1, %v1798_v1  ;;  %1814 = vst.msk [vmem:[#allocation6 + $0x1a] sm:$0x1] %vm1008_vm2, %v1801_v3  ;;  %1816 = vst.msk [vmem:[#allocation6 + $0x2a] sm:$0x1] %vm1008_vm2, %v1798_v1  ;;  %4544 = vmatmul.mubr.msk.f32.vlgmr.msra.gmra.mxu0 %vm98_vm0, %v1819_v4  ;;  %4555 = vmatmul.mubr.msk.f32.vlgmr.msra.gmra.mxu1 %vm98_vm0, %v1819_v4  ;;  %v5549_v3 = vld [vmem:[#allocation14 + $0x50] sm:$0xff] }
 0x367   :  { %1817 = vst.msk [vmem:[#allocation6 + $0x32] sm:$0x1] %vm1008_vm2, %v1800_v2  ;;  %4558 = vmatpush3.msra.mxu0 %v5194_v31  ;;  %4569 = vmatpush3.msra.mxu1 %v5244_v38  ;;  %v5496_v31 = vld [vmem:[#allocation14 + $0x18] sm:$0xff]  ;;  %v5512_v38 = vld [vmem:[#allocation14 + $0x8] sm:$0xff] }
 0x368   :  { %1818 = vst.msk [vmem:[#allocation6 + $0x3a] sm:$0x1] %vm1008_vm2, %v1802_v5  ;;  %4559 = vmatprep.subr.mxu0 %v5035_v0  ;;  %4570 = vmatprep.subr.mxu1 %v5035_v0  ;;  %v5558_v5 = vld [vmem:[#allocation14 + $0x48] sm:$0xff] }
 0x369   :  { %4560 = vmatpush3.msra.mxu0 %v5203_v33  ;;  %4571 = vmatpush3.msra.mxu1 %v5252_v39  ;;  %v5498_v33 = vld [vmem:[#allocation14 + $0x38] sm:$0xff]  ;;  %v5514_v39 = vld [vmem:[#allocation14 + $0x28] sm:$0xff] }
 0x36a   :  { %4561 = vmatprep.subr.mxu0 %v5035_v0  ;;  %4572 = vmatprep.subr.mxu1 %v5035_v0 }
 0x36b   :  { %4562 = vmatpush3.msra.mxu0 %v5210_v34  ;;  %4573 = vmatpush3.msra.mxu1 %v5259_v40  ;;  %v5504_v34 = vld [vmem:[#allocation14 + $0x10] sm:$0xff]  ;;  %v5520_v40 = vld [vmem:[#allocation14] sm:$0xff] }
 0x36c   :  { %4563 = vmatprep.subr.mxu0 %v5035_v0  ;;  %4574 = vmatprep.subr.mxu1 %v5035_v0 }
 0x36d   :  { %4564 = vmatpush3.msra.mxu0 %v5219_v36  ;;  %4565 = vmatprep.mubr.msk.f32.mxu0 %vm5036_vm1, %v5035_v0  ;;  %v5506_v36 = vld [vmem:[#allocation14 + $0x30] sm:$0xff] }
 0x36e   :  { %4575 = vmatpush3.msra.mxu1 %v5265_v41  ;;  %4576 = vmatprep.mubr.msk.f32.mxu1 %vm5036_vm1, %v5035_v0  ;;  %v5522_v41 = vld [vmem:[#allocation14 + $0x20] sm:$0xff] }
 0x36f   :  { %4566 = vmatmul.mubr.msk.f32.vlgmr.msra.gmra.mxu0 %vm98_vm0, %v1819_v4  ;;  %4577 = vmatmul.mubr.msk.f32.vlgmr.msra.gmra.mxu1 %vm98_vm0, %v1819_v4  ;;  %v5551_v4 = vld [vmem:[#allocation14 + $0x70] sm:$0xff] }
 0x370   :  { %4579 = vmatprep.subr.mxu0 %v5035_v0  ;;  %4590 = vmatprep.subr.mxu1 %v5035_v0 }
 0x371   :  { %4587 = vmatprep.mubr.msk.f32.mxu0 %vm5036_vm1, %v5035_v0  ;;  %4598 = vmatprep.mubr.msk.f32.mxu1 %vm5036_vm1, %v5035_v0 }
 0x372   :  { %4580 = vmatpush3.msra.mxu0 %v5496_v31  ;;  %4591 = vmatpush3.msra.mxu1 %v5498_v33 }
 0x373   :  { %4581 = vmatprep.subr.mxu0 %v5035_v0  ;;  %4592 = vmatprep.subr.mxu1 %v5035_v0 }
 0x374   :  { %4582 = vmatpush3.msra.mxu0 %v5504_v34  ;;  %4593 = vmatpush3.msra.mxu1 %v5506_v36 }
 0x375   :  { %4583 = vmatprep.subr.mxu0 %v5035_v0  ;;  %4594 = vmatprep.subr.mxu1 %v5035_v0 }
 0x376   :  { %4584 = vmatpush3.msra.mxu0 %v5512_v38  ;;  %4595 = vmatpush3.msra.mxu1 %v5514_v39 }
 0x377   :  { %4585 = vmatprep.subr.mxu0 %v5035_v0  ;;  %4596 = vmatprep.subr.mxu1 %v5035_v0 }
 0x378   :  { %4586 = vmatpush3.msra.mxu0 %v5520_v40  ;;  %4597 = vmatpush3.msra.mxu1 %v5522_v41 }
 0x379   :  { %4601 = vmatprep.subr.mxu0 %v5035_v0  ;;  %4612 = vmatprep.subr.mxu1 %v5035_v0 }
 0x426   :  { %v1895_v7 = vpop.f32.mrf.mxu0  ;;  %v1977_v9 = vpop.f32.mrf.mxu1 }
 0x427   :  { %v1896_v10 = vadd.f32 %v1895_v7, %v1825_v6  ;;  %v1978_v24 = vadd.f32 %v1977_v9, %v1910_v8  ;;  %v5560_v6 = vld [vmem:[#allocation14 + $0x68] sm:$0xff]  ;;  %v5566_v7 = vld [vmem:[#allocation14 + $0x40] sm:$0xff]  ;;  %v2226_v9 = vld [vmem:[#allocation2 + $0x20] sm:$0xff] }
 0x428   :  { %v4545_v25 = vpop.f32.mrf.mxu0  ;;  %v4556_v27 = vpop.f32.mrf.mxu1  ;;  %v5570_v8 = vld [vmem:[#allocation14 + $0x60] sm:$0xff] }
 0x429   :  { %v4060_v30 = vmul.f32 -1.442695, %v1896_v10  ;;  %v4062_v32 = vmul.f32 -1.442695, %v1978_v24  ;;  %v2311_v24 = vld [vmem:[#allocation3 + $0x20] sm:$0xff] }
 0x42b   :  { %4841 = vpow2.f32 %v4060_v30 }
 0x42c   :  { %4843 = vpow2.f32 %v4062_v32 }
 0x42f   :  { %v2059_v35 = vpop.f32.mrf.mxu0  ;;  %v2136_v11 = vpop.f32.mrf.mxu1 }
 0x430   :  { %v2137_v12 = vadd.f32 %v2136_v11, %v2069_v28  ;;  %v2060_v16 = vadd.f32 %v2059_v35, %v1992_v14 }
 0x431   :  { %v4567_v37 = vpop.f32.mrf.mxu0  ;;  %v4578_v13 = vpop.f32.mrf.mxu1 }
 0x432   :  { %v4065_v15 = vmul.f32 -1.442695, %v2137_v12  ;;  %v2470_v13 = vld [vmem:[#allocation5 + $0x20] sm:$0xff] }
 0x434   :  { %4845 = vpow2.f32 %v4065_v15 }
 0x435   :  { %4847 = vtanh.f32 %v2060_v16 }
 0x438   :  { %v4842_v17 = vpop.eup %4841 }
 0x439   :  { %v4844_v18 = vpop.eup %4843  ;;  %v1902_v19 = vadd.f32 1.0, %v4842_v17  ;;  %v2393_v17 = vld [vmem:[#allocation4 + $0x20] sm:$0xff] }
 0x43a   :  { %v1984_v20 = vadd.f32 1.0, %v4844_v18 }
 0x43b   :  { %4849 = vrcp.f32 %v1902_v19 }
 0x43c   :  { %4851 = vrcp.f32 %v1984_v20 }
 0x441   :  { %v4846_v21 = vpop.eup %4845 }
 0x442   :  { %v4848_v22 = vpop.eup %4847  ;;  %v2143_v43 = vadd.f32 1.0, %v4846_v21 }
 0x444   :  { %4853 = vrcp.f32 %v2143_v43 }
 0x448   :  { %v4850_v23 = vpop.eup %4849 }
 0x449   :  { %v4852_v26 = vpop.eup %4851  ;;  %v2148_v42 = vmul.f32 %v4850_v23, %v4848_v22 }
 0x44a   :  { %v2147_v44 = vmul.f32 %v4852_v26, %v2146_v29 }
 0x44c   :  { %v2149_v45 = vadd.f32 %v2148_v42, %v2147_v44 }
 0x44e   :  { %4855 = vtanh.f32 %v2149_v45  ;;  %2152 = vst.msk [vmem:[#allocation8] sm:$0xff] %vm98_vm0, %v2149_v45 }
 0x451   :  { %v4854_v46 = vpop.eup %4853 }
 0x455   :  { %v2547_v44 = vld [vmem:[#allocation8] sm:$0xff] }
 0x45b   :  { %v4856_v47 = vpop.eup %4855 }
 0x45c   :  { %v2151_v48 = vmul.f32 %v4856_v47, %v4854_v46 }
 0x45e   :  { %2153 = vst.msk [vmem:[#allocation7] sm:$0xff] %vm98_vm0, %v2151_v48  ;;  %v2155_v49 = vcombine.high %v2151_v48, %v2151_v48  ;;  %v2162_v50 = vrot.slane %v2151_v48, %v5331_v54 }
 0x460   :  { %v2169_v51 = vrot.slane %v2155_v49, %v5331_v54  ;;  %v2170_v52 = vcombine.high %v2162_v50, %v2162_v50  ;;  %v2178_v53 = vrot.slane %v2162_v50, %v5331_v54 }
 0x462   :  { %v2171_v55 = vcombine.high %v2169_v51, %v2169_v51  ;;  %v2185_v56 = vrot.slane %v2169_v51, %v5331_v54  ;;  %v2192_v57 = vrot.slane %v2170_v52, %v5331_v54  ;;  %v2200_v58 = vcombine.high %v2178_v53, %v2178_v53  ;;  %2212 = vst.msk [vmem:[#allocation6 + $0x3] sm:$0x1] %vm1008_vm2, %v2178_v53 }
 0x464   :  { %v2199_v59 = vrot.slane %v2171_v55, %v5331_v54  ;;  %v2201_v60 = vcombine.high %v2185_v56, %v2185_v56  ;;  %v2202_v61 = vcombine.high %v2192_v57, %v2192_v57  ;;  %2213 = vst.msk [vmem:[#allocation6 + $0xb] sm:$0x1] %vm1008_vm2, %v2192_v57  ;;  %2214 = vst.msk [vmem:[#allocation6 + $0x13] sm:$0x1] %vm1008_vm2, %v2200_v58 }
 0x465   :  { %2216 = vst.msk [vmem:[#allocation6 + $0x23] sm:$0x1] %vm1008_vm2, %v2185_v56  ;;  %v2220_v1 = vld [vmem:[#allocation7] sm:$0xff] }
 0x466   :  { %v2203_v2 = vcombine.high %v2199_v59, %v2199_v59  ;;  %2215 = vst.msk [vmem:[#allocation6 + $0x1b] sm:$0x1] %vm1008_vm2, %v2202_v61  ;;  %2217 = vst.msk [vmem:[#allocation6 + $0x2b] sm:$0x1] %vm1008_vm2, %v2199_v59  ;;  %4588 = vmatmul.mubr.msk.f32.vlgmr.msra.gmra.mxu0 %vm98_vm0, %v2220_v1  ;;  %4599 = vmatmul.mubr.msk.f32.vlgmr.msra.gmra.mxu1 %vm98_vm0, %v2220_v1 }
 0x467   :  { %2218 = vst.msk [vmem:[#allocation6 + $0x33] sm:$0x1] %vm1008_vm2, %v2201_v60  ;;  %4602 = vmatpush3.msra.mxu0 %v5540_v62  ;;  %4613 = vmatpush3.msra.mxu1 %v5542_v63 }
 0x468   :  { %2219 = vst.msk [vmem:[#allocation6 + $0x3b] sm:$0x1] %vm1008_vm2, %v2203_v2  ;;  %4603 = vmatprep.subr.mxu0 %v5035_v0  ;;  %4614 = vmatprep.subr.mxu1 %v5035_v0 }
 0x469   :  { %4604 = vmatpush3.msra.mxu0 %v5549_v3  ;;  %4615 = vmatpush3.msra.mxu1 %v5551_v4 }
 0x46a   :  { %4605 = vmatprep.subr.mxu0 %v5035_v0  ;;  %4616 = vmatprep.subr.mxu1 %v5035_v0 }
 0x46b   :  { %4606 = vmatpush3.msra.mxu0 %v5558_v5  ;;  %4617 = vmatpush3.msra.mxu1 %v5560_v6 }
 0x46c   :  { %4607 = vmatprep.subr.mxu0 %v5035_v0  ;;  %4618 = vmatprep.subr.mxu1 %v5035_v0 }
 0x46d   :  { %4608 = vmatpush3.msra.mxu0 %v5566_v7  ;;  %4609 = vmatprep.mubr.msk.f32.mxu0 %vm5036_vm1, %v5035_v0 }
 0x46e   :  { %4619 = vmatpush3.msra.mxu1 %v5570_v8  ;;  %4620 = vmatprep.mubr.msk.f32.mxu1 %vm5036_vm1, %v5035_v0 }
 0x46f   :  { %4610 = vmatmul.mubr.msk.f32.vlgmr.msra.gmra.mxu0 %vm98_vm0, %v2220_v1  ;;  %4621 = vmatmul.mubr.msk.f32.vlgmr.msra.gmra.mxu1 %vm98_vm0, %v2220_v1 }
 0x470   :  { %4623 = vmatprep.subr.mxu0 %v5035_v0  ;;  %4634 = vmatprep.subr.mxu1 %v5035_v0 }
 0x471   :  { %4624 = vmatpush3.msra.mxu0 %v5496_v31  ;;  %4635 = vmatpush3.msra.mxu1 %v5498_v33 }
 0x472   :  { %4625 = vmatprep.subr.mxu0 %v5035_v0  ;;  %4636 = vmatprep.subr.mxu1 %v5035_v0 }
 0x473   :  { %4626 = vmatpush3.msra.mxu0 %v5504_v34  ;;  %4637 = vmatpush3.msra.mxu1 %v5506_v36 }
 0x474   :  { %4627 = vmatprep.subr.mxu0 %v5035_v0  ;;  %4638 = vmatprep.subr.mxu1 %v5035_v0 }
 0x475   :  { %4628 = vmatpush3.msra.mxu0 %v5512_v38  ;;  %4639 = vmatpush3.msra.mxu1 %v5514_v39 }
 0x476   :  { %4629 = vmatprep.subr.mxu0 %v5035_v0  ;;  %4640 = vmatprep.subr.mxu1 %v5035_v0 }
 0x477   :  { %4630 = vmatpush3.msra.mxu0 %v5520_v40  ;;  %4641 = vmatpush3.msra.mxu1 %v5522_v41 }
 0x478   :  { %4631 = vmatprep.mubr.msk.f32.mxu0 %vm5036_vm1, %v5035_v0  ;;  %4642 = vmatprep.mubr.msk.f32.mxu1 %vm5036_vm1, %v5035_v0 }
 0x479   :  { %4645 = vmatprep.subr.mxu0 %v5035_v0  ;;  %4656 = vmatprep.subr.mxu1 %v5035_v0 }
 0x526   :  { %v2296_v10 = vpop.f32.mrf.mxu0  ;;  %v2378_v25 = vpop.f32.mrf.mxu1 }
 0x527   :  { %v2297_v27 = vadd.f32 %v2296_v10, %v2226_v9  ;;  %v2379_v30 = vadd.f32 %v2378_v25, %v2311_v24  ;;  %v2627_v25 = vld [vmem:[#allocation2 + $0x28] sm:$0xff] }
 0x528   :  { %v4589_v32 = vpop.f32.mrf.mxu0  ;;  %v4600_v35 = vpop.f32.mrf.mxu1 }
 0x529   :  { %v4067_v11 = vmul.f32 -1.442695, %v2297_v27  ;;  %v4069_v28 = vmul.f32 -1.442695, %v2379_v30  ;;  %v2712_v30 = vld [vmem:[#allocation3 + $0x28] sm:$0xff] }
 0x52b   :  { %4857 = vpow2.f32 %v4067_v11 }
 0x52c   :  { %4859 = vpow2.f32 %v4069_v28 }
 0x52f   :  { %v2460_v12 = vpop.f32.mrf.mxu0  ;;  %v2537_v37 = vpop.f32.mrf.mxu1 }
 0x530   :  { %v2538_v14 = vadd.f32 %v2537_v37, %v2470_v13  ;;  %v2461_v19 = vadd.f32 %v2460_v12, %v2393_v17 }
 0x531   :  { %v4611_v15 = vpop.f32.mrf.mxu0  ;;  %v4622_v16 = vpop.f32.mrf.mxu1 }
 0x532   :  { %v4072_v18 = vmul.f32 -1.442695, %v2538_v14  ;;  %v2871_v16 = vld [vmem:[#allocation5 + $0x28] sm:$0xff] }
 0x534   :  { %4861 = vpow2.f32 %v4072_v18 }
 0x535   :  { %4863 = vtanh.f32 %v2461_v19 }
 0x538   :  { %v4858_v20 = vpop.eup %4857 }
 0x539   :  { %v4860_v21 = vpop.eup %4859  ;;  %v2303_v22 = vadd.f32 1.0, %v4858_v20  ;;  %v2794_v20 = vld [vmem:[#allocation4 + $0x28] sm:$0xff] }
 0x53a   :  { %v2385_v23 = vadd.f32 1.0, %v4860_v21 }
 0x53b   :  { %4865 = vrcp.f32 %v2303_v22 }
 0x53c   :  { %4867 = vrcp.f32 %v2385_v23 }
 0x541   :  { %v4862_v26 = vpop.eup %4861 }
 0x542   :  { %v4864_v29 = vpop.eup %4863  ;;  %v2544_v46 = vadd.f32 1.0, %v4862_v26 }
 0x544   :  { %4869 = vrcp.f32 %v2544_v46 }
 0x548   :  { %v4866_v42 = vpop.eup %4865 }
 0x549   :  { %v4868_v43 = vpop.eup %4867  ;;  %v2549_v45 = vmul.f32 %v4866_v42, %v4864_v29 }
 0x54a   :  { %v2548_v47 = vmul.f32 %v4868_v43, %v2547_v44 }
 0x54c   :  { %v2550_v48 = vadd.f32 %v2549_v45, %v2548_v47 }
 0x54e   :  { %4871 = vtanh.f32 %v2550_v48  ;;  %2553 = vst.msk [vmem:[#allocation8] sm:$0xff] %vm98_vm0, %v2550_v48 }
 0x551   :  { %v4870_v49 = vpop.eup %4869 }
 0x555   :  { %v2948_v47 = vld [vmem:[#allocation8] sm:$0xff] }
 0x55b   :  { %v4872_v50 = vpop.eup %4871 }
 0x55c   :  { %v2552_v51 = vmul.f32 %v4872_v50, %v4870_v49 }
 0x55e   :  { %2554 = vst.msk [vmem:[#allocation7] sm:$0xff] %vm98_vm0, %v2552_v51  ;;  %v2556_v52 = vcombine.high %v2552_v51, %v2552_v51  ;;  %v2563_v53 = vrot.slane %v2552_v51, %v5331_v54 }
 0x560   :  { %v2570_v55 = vrot.slane %v2556_v52, %v5331_v54  ;;  %v2571_v56 = vcombine.high %v2563_v53, %v2563_v53  ;;  %v2579_v57 = vrot.slane %v2563_v53, %v5331_v54 }
 0x562   :  { %v2572_v58 = vcombine.high %v2570_v55, %v2570_v55  ;;  %v2586_v59 = vrot.slane %v2570_v55, %v5331_v54  ;;  %v2593_v60 = vrot.slane %v2571_v56, %v5331_v54  ;;  %v2601_v61 = vcombine.high %v2579_v57, %v2579_v57  ;;  %2613 = vst.msk [vmem:[#allocation6 + $0x4] sm:$0x1] %vm1008_vm2, %v2579_v57 }
 0x564   :  { %v2600_v1 = vrot.slane %v2572_v58, %v5331_v54  ;;  %v2602_v2 = vcombine.high %v2586_v59, %v2586_v59  ;;  %v2603_v9 = vcombine.high %v2593_v60, %v2593_v60  ;;  %2614 = vst.msk [vmem:[#allocation6 + $0xc] sm:$0x1] %vm1008_vm2, %v2593_v60  ;;  %2615 = vst.msk [vmem:[#allocation6 + $0x14] sm:$0x1] %vm1008_vm2, %v2601_v61 }
 0x565   :  { %2617 = vst.msk [vmem:[#allocation6 + $0x24] sm:$0x1] %vm1008_vm2, %v2586_v59  ;;  %v2621_v10 = vld [vmem:[#allocation7] sm:$0xff] }
 0x566   :  { %v2604_v24 = vcombine.high %v2600_v1, %v2600_v1  ;;  %2616 = vst.msk [vmem:[#allocation6 + $0x1c] sm:$0x1] %vm1008_vm2, %v2603_v9  ;;  %2618 = vst.msk [vmem:[#allocation6 + $0x2c] sm:$0x1] %vm1008_vm2, %v2600_v1  ;;  %4632 = vmatmul.mubr.msk.f32.vlgmr.msra.gmra.mxu0 %vm98_vm0, %v2621_v10  ;;  %4643 = vmatmul.mubr.msk.f32.vlgmr.msra.gmra.mxu1 %vm98_vm0, %v2621_v10 }
 0x567   :  { %2619 = vst.msk [vmem:[#allocation6 + $0x34] sm:$0x1] %vm1008_vm2, %v2602_v2  ;;  %4646 = vmatpush3.msra.mxu0 %v5540_v62  ;;  %4657 = vmatpush3.msra.mxu1 %v5542_v63 }
 0x568   :  { %2620 = vst.msk [vmem:[#allocation6 + $0x3c] sm:$0x1] %vm1008_vm2, %v2604_v24  ;;  %4647 = vmatprep.subr.mxu0 %v5035_v0  ;;  %4658 = vmatprep.subr.mxu1 %v5035_v0 }
 0x569   :  { %4648 = vmatpush3.msra.mxu0 %v5549_v3  ;;  %4659 = vmatpush3.msra.mxu1 %v5551_v4 }
 0x56a   :  { %4649 = vmatprep.subr.mxu0 %v5035_v0  ;;  %4660 = vmatprep.subr.mxu1 %v5035_v0 }
 0x56b   :  { %4650 = vmatpush3.msra.mxu0 %v5558_v5  ;;  %4661 = vmatpush3.msra.mxu1 %v5560_v6 }
 0x56c   :  { %4651 = vmatprep.subr.mxu0 %v5035_v0  ;;  %4662 = vmatprep.subr.mxu1 %v5035_v0 }
 0x56d   :  { %4652 = vmatpush3.msra.mxu0 %v5566_v7  ;;  %4653 = vmatprep.mubr.msk.f32.mxu0 %vm5036_vm1, %v5035_v0 }
 0x56e   :  { %4663 = vmatpush3.msra.mxu1 %v5570_v8  ;;  %4664 = vmatprep.mubr.msk.f32.mxu1 %vm5036_vm1, %v5035_v0 }
 0x56f   :  { %4654 = vmatmul.mubr.msk.f32.vlgmr.msra.gmra.mxu0 %vm98_vm0, %v2621_v10  ;;  %4665 = vmatmul.mubr.msk.f32.vlgmr.msra.gmra.mxu1 %vm98_vm0, %v2621_v10 }
 0x570   :  { %4667 = vmatprep.subr.mxu0 %v5035_v0  ;;  %4678 = vmatprep.subr.mxu1 %v5035_v0 }
 0x571   :  { %4668 = vmatpush3.msra.mxu0 %v5496_v31  ;;  %4679 = vmatpush3.msra.mxu1 %v5498_v33 }
 0x572   :  { %4669 = vmatprep.subr.mxu0 %v5035_v0  ;;  %4680 = vmatprep.subr.mxu1 %v5035_v0 }
 0x573   :  { %4670 = vmatpush3.msra.mxu0 %v5504_v34  ;;  %4681 = vmatpush3.msra.mxu1 %v5506_v36 }
 0x574   :  { %4671 = vmatprep.subr.mxu0 %v5035_v0  ;;  %4682 = vmatprep.subr.mxu1 %v5035_v0 }
 0x575   :  { %4672 = vmatpush3.msra.mxu0 %v5512_v38  ;;  %4683 = vmatpush3.msra.mxu1 %v5514_v39 }
 0x576   :  { %4673 = vmatprep.subr.mxu0 %v5035_v0  ;;  %4684 = vmatprep.subr.mxu1 %v5035_v0 }
 0x577   :  { %4674 = vmatpush3.msra.mxu0 %v5520_v40  ;;  %4685 = vmatpush3.msra.mxu1 %v5522_v41 }
 0x578   :  { %4675 = vmatprep.mubr.msk.f32.mxu0 %vm5036_vm1, %v5035_v0  ;;  %4686 = vmatprep.mubr.msk.f32.mxu1 %vm5036_vm1, %v5035_v0 }
 0x579   :  { %4689 = vmatprep.subr.mxu0 %v5035_v0  ;;  %4700 = vmatprep.subr.mxu1 %v5035_v0 }
 0x626   :  { %v2697_v27 = vpop.f32.mrf.mxu0  ;;  %v2779_v32 = vpop.f32.mrf.mxu1 }
 0x627   :  { %v2698_v35 = vadd.f32 %v2697_v27, %v2627_v25  ;;  %v2780_v11 = vadd.f32 %v2779_v32, %v2712_v30 }
 0x628   :  { %v4633_v28 = vpop.f32.mrf.mxu0  ;;  %v4644_v12 = vpop.f32.mrf.mxu1 }
 0x629   :  { %v4074_v37 = vmul.f32 -1.442695, %v2698_v35  ;;  %v4076_v13 = vmul.f32 -1.442695, %v2780_v11  ;;  %v3272_v12 = vld [vmem:[#allocation5 + $0x30] sm:$0xff] }
 0x62b   :  { %4873 = vpow2.f32 %v4074_v37 }
 0x62c   :  { %4875 = vpow2.f32 %v4076_v13 }
 0x62f   :  { %v2861_v14 = vpop.f32.mrf.mxu0  ;;  %v2938_v15 = vpop.f32.mrf.mxu1 }
 0x630   :  { %v2939_v17 = vadd.f32 %v2938_v15, %v2871_v16  ;;  %v2862_v22 = vadd.f32 %v2861_v14, %v2794_v20  ;;  %v3195_v15 = vld [vmem:[#allocation4 + $0x30] sm:$0xff] }
 0x631   :  { %v4655_v18 = vpop.f32.mrf.mxu0  ;;  %v4666_v19 = vpop.f32.mrf.mxu1 }
 0x632   :  { %v4079_v21 = vmul.f32 -1.442695, %v2939_v17 }
 0x634   :  { %4877 = vpow2.f32 %v4079_v21 }
 0x635   :  { %4879 = vtanh.f32 %v2862_v22 }
 0x638   :  { %v4874_v23 = vpop.eup %4873 }
 0x639   :  { %v4876_v26 = vpop.eup %4875  ;;  %v2704_v29 = vadd.f32 1.0, %v4874_v23 }
 0x63a   :  { %v2786_v42 = vadd.f32 1.0, %v4876_v26 }
 0x63b   :  { %4881 = vrcp.f32 %v2704_v29 }
 0x63c   :  { %4883 = vrcp.f32 %v2786_v42 }
 0x641   :  { %v4878_v43 = vpop.eup %4877 }
 0x642   :  { %v4880_v44 = vpop.eup %4879  ;;  %v2945_v49 = vadd.f32 1.0, %v4878_v43 }
 0x644   :  { %4885 = vrcp.f32 %v2945_v49 }
 0x648   :  { %v4882_v45 = vpop.eup %4881 }
 0x649   :  { %v4884_v46 = vpop.eup %4883  ;;  %v2950_v48 = vmul.f32 %v4882_v45, %v4880_v44 }
 0x64a   :  { %v2949_v50 = vmul.f32 %v4884_v46, %v2948_v47 }
 0x64c   :  { %v2951_v51 = vadd.f32 %v2950_v48, %v2949_v50 }
 0x64e   :  { %4887 = vtanh.f32 %v2951_v51  ;;  %2954 = vst.msk [vmem:[#allocation8] sm:$0xff] %vm98_vm0, %v2951_v51 }
 0x651   :  { %v4886_v52 = vpop.eup %4885 }
 0x655   :  { %v3349_v42 = vld [vmem:[#allocation8] sm:$0xff] }
 0x65b   :  { %v4888_v53 = vpop.eup %4887 }
 0x65c   :  { %v2953_v55 = vmul.f32 %v4888_v53, %v4886_v52 }
 0x65e   :  { %2955 = vst.msk [vmem:[#allocation7] sm:$0xff] %vm98_vm0, %v2953_v55  ;;  %v2957_v56 = vcombine.high %v2953_v55, %v2953_v55  ;;  %v2964_v57 = vrot.slane %v2953_v55, %v5331_v54 }
 0x660   :  { %v2971_v58 = vrot.slane %v2957_v56, %v5331_v54  ;;  %v2972_v59 = vcombine.high %v2964_v57, %v2964_v57  ;;  %v2980_v60 = vrot.slane %v2964_v57, %v5331_v54 }
 0x662   :  { %v2973_v61 = vcombine.high %v2971_v58, %v2971_v58  ;;  %v2987_v1 = vrot.slane %v2971_v58, %v5331_v54  ;;  %v2994_v2 = vrot.slane %v2972_v59, %v5331_v54  ;;  %v3002_v9 = vcombine.high %v2980_v60, %v2980_v60  ;;  %3014 = vst.msk [vmem:[#allocation6 + $0x5] sm:$0x1] %vm1008_vm2, %v2980_v60 }
 0x664   :  { %v3001_v10 = vrot.slane %v2973_v61, %v5331_v54  ;;  %v3003_v24 = vcombine.high %v2987_v1, %v2987_v1  ;;  %v3004_v25 = vcombine.high %v2994_v2, %v2994_v2  ;;  %3015 = vst.msk [vmem:[#allocation6 + $0xd] sm:$0x1] %vm1008_vm2, %v2994_v2  ;;  %3016 = vst.msk [vmem:[#allocation6 + $0x15] sm:$0x1] %vm1008_vm2, %v3002_v9 }
 0x665   :  { %3018 = vst.msk [vmem:[#allocation6 + $0x25] sm:$0x1] %vm1008_vm2, %v2987_v1  ;;  %v3022_v27 = vld [vmem:[#allocation7] sm:$0xff] }
 0x666   :  { %v3005_v30 = vcombine.high %v3001_v10, %v3001_v10  ;;  %3017 = vst.msk [vmem:[#allocation6 + $0x1d] sm:$0x1] %vm1008_vm2, %v3004_v25  ;;  %3019 = vst.msk [vmem:[#allocation6 + $0x2d] sm:$0x1] %vm1008_vm2, %v3001_v10  ;;  %4676 = vmatmul.mubr.msk.f32.vlgmr.msra.gmra.mxu0 %vm98_vm0, %v3022_v27  ;;  %4687 = vmatmul.mubr.msk.f32.vlgmr.msra.gmra.mxu1 %vm98_vm0, %v3022_v27 }
 0x667   :  { %3020 = vst.msk [vmem:[#allocation6 + $0x35] sm:$0x1] %vm1008_vm2, %v3003_v24  ;;  %4690 = vmatpush3.msra.mxu0 %v5540_v62  ;;  %4701 = vmatpush3.msra.mxu1 %v5542_v63 }
 0x668   :  { %3021 = vst.msk [vmem:[#allocation6 + $0x3d] sm:$0x1] %vm1008_vm2, %v3005_v30  ;;  %4691 = vmatprep.subr.mxu0 %v5035_v0  ;;  %4702 = vmatprep.subr.mxu1 %v5035_v0 }
 0x669   :  { %4692 = vmatpush3.msra.mxu0 %v5549_v3  ;;  %4703 = vmatpush3.msra.mxu1 %v5551_v4 }
 0x66a   :  { %4693 = vmatprep.subr.mxu0 %v5035_v0  ;;  %4704 = vmatprep.subr.mxu1 %v5035_v0 }
 0x66b   :  { %4694 = vmatpush3.msra.mxu0 %v5558_v5  ;;  %4705 = vmatpush3.msra.mxu1 %v5560_v6 }
 0x66c   :  { %4695 = vmatprep.subr.mxu0 %v5035_v0  ;;  %4706 = vmatprep.subr.mxu1 %v5035_v0 }
 0x66d   :  { %4696 = vmatpush3.msra.mxu0 %v5566_v7  ;;  %4697 = vmatprep.mubr.msk.f32.mxu0 %vm5036_vm1, %v5035_v0 }
 0x66e   :  { %4707 = vmatpush3.msra.mxu1 %v5570_v8  ;;  %4708 = vmatprep.mubr.msk.f32.mxu1 %vm5036_vm1, %v5035_v0 }
 0x66f   :  { %4698 = vmatmul.mubr.msk.f32.vlgmr.msra.gmra.mxu0 %vm98_vm0, %v3022_v27  ;;  %4709 = vmatmul.mubr.msk.f32.vlgmr.msra.gmra.mxu1 %vm98_vm0, %v3022_v27 }
 0x670   :  { %4711 = vmatprep.subr.mxu0 %v5035_v0  ;;  %4722 = vmatprep.subr.mxu1 %v5035_v0 }
 0x671   :  { %4712 = vmatpush3.msra.mxu0 %v5496_v31  ;;  %4723 = vmatpush3.msra.mxu1 %v5498_v33  ;;  %v3028_v31 = vld [vmem:[#allocation2 + $0x30] sm:$0xff] }
 0x672   :  { %4713 = vmatprep.subr.mxu0 %v5035_v0  ;;  %4724 = vmatprep.subr.mxu1 %v5035_v0 }
 0x673   :  { %4714 = vmatpush3.msra.mxu0 %v5504_v34  ;;  %4725 = vmatpush3.msra.mxu1 %v5506_v36  ;;  %v3113_v34 = vld [vmem:[#allocation3 + $0x30] sm:$0xff] }
 0x674   :  { %4715 = vmatprep.subr.mxu0 %v5035_v0  ;;  %4726 = vmatprep.subr.mxu1 %v5035_v0 }
 0x675   :  { %4716 = vmatpush3.msra.mxu0 %v5512_v38  ;;  %4727 = vmatpush3.msra.mxu1 %v5514_v39 }
 0x676   :  { %4717 = vmatprep.subr.mxu0 %v5035_v0  ;;  %4728 = vmatprep.subr.mxu1 %v5035_v0 }
 0x677   :  { %4718 = vmatpush3.msra.mxu0 %v5520_v40  ;;  %4729 = vmatpush3.msra.mxu1 %v5522_v41 }
 0x678   :  { %4719 = vmatprep.mubr.msk.f32.mxu0 %vm5036_vm1, %v5035_v0  ;;  %4730 = vmatprep.mubr.msk.f32.mxu1 %vm5036_vm1, %v5035_v0 }
 0x679   :  { %4733 = vmatprep.subr.mxu0 %v5035_v0  ;;  %4744 = vmatprep.subr.mxu1 %v5035_v0 }
 0x726   :  { %v3098_v33 = vpop.f32.mrf.mxu0  ;;  %v3180_v36 = vpop.f32.mrf.mxu1 }
 0x727   :  { %v3099_v38 = vadd.f32 %v3098_v33, %v3028_v31  ;;  %v3181_v39 = vadd.f32 %v3180_v36, %v3113_v34  ;;  %v3673_v34 = vld [vmem:[#allocation5 + $0x38] sm:$0xff] }
 0x728   :  { %v4677_v32 = vpop.f32.mrf.mxu0  ;;  %v4688_v40 = vpop.f32.mrf.mxu1 }
 0x729   :  { %v4081_v35 = vmul.f32 -1.442695, %v3099_v38  ;;  %v4083_v41 = vmul.f32 -1.442695, %v3181_v39  ;;  %v3596_v32 = vld [vmem:[#allocation4 + $0x38] sm:$0xff] }
 0x72b   :  { %4889 = vpow2.f32 %v4081_v35 }
 0x72c   :  { %4891 = vpow2.f32 %v4083_v41 }
 0x72f   :  { %v3262_v11 = vpop.f32.mrf.mxu0  ;;  %v3339_v28 = vpop.f32.mrf.mxu1 }
 0x730   :  { %v3340_v37 = vadd.f32 %v3339_v28, %v3272_v12  ;;  %v3263_v17 = vadd.f32 %v3262_v11, %v3195_v15 }
 0x731   :  { %v4699_v13 = vpop.f32.mrf.mxu0  ;;  %v4710_v14 = vpop.f32.mrf.mxu1 }
 0x732   :  { %v4086_v16 = vmul.f32 -1.442695, %v3340_v37 }
 0x734   :  { %4893 = vpow2.f32 %v4086_v16 }
 0x735   :  { %4895 = vtanh.f32 %v3263_v17 }
 0x738   :  { %v4890_v18 = vpop.eup %4889 }
 0x739   :  { %v4892_v19 = vpop.eup %4891  ;;  %v3105_v20 = vadd.f32 1.0, %v4890_v18 }
 0x73a   :  { %v3187_v21 = vadd.f32 1.0, %v4892_v19 }
 0x73b   :  { %4897 = vrcp.f32 %v3105_v20 }
 0x73c   :  { %4899 = vrcp.f32 %v3187_v21 }
 0x741   :  { %v4894_v22 = vpop.eup %4893 }
 0x742   :  { %v4896_v23 = vpop.eup %4895  ;;  %v3346_v44 = vadd.f32 1.0, %v4894_v22 }
 0x744   :  { %4901 = vrcp.f32 %v3346_v44 }
 0x748   :  { %v4898_v26 = vpop.eup %4897 }
 0x749   :  { %v4900_v29 = vpop.eup %4899  ;;  %v3351_v43 = vmul.f32 %v4898_v26, %v4896_v23 }
 0x74a   :  { %v3350_v45 = vmul.f32 %v4900_v29, %v3349_v42 }
 0x74c   :  { %v3352_v46 = vadd.f32 %v3351_v43, %v3350_v45 }
 0x74e   :  { %4903 = vtanh.f32 %v3352_v46  ;;  %3355 = vst.msk [vmem:[#allocation8] sm:$0xff] %vm98_vm0, %v3352_v46 }
 0x751   :  { %v4902_v47 = vpop.eup %4901 }
 0x755   :  { %v3750_v16 = vld [vmem:[#allocation8] sm:$0xff] }
 0x75b   :  { %v4904_v48 = vpop.eup %4903 }
 0x75c   :  { %v3354_v49 = vmul.f32 %v4904_v48, %v4902_v47 }
 0x75e   :  { %3356 = vst.msk [vmem:[#allocation7] sm:$0xff] %vm98_vm0, %v3354_v49  ;;  %v3358_v50 = vcombine.high %v3354_v49, %v3354_v49  ;;  %v3365_v51 = vrot.slane %v3354_v49, %v5331_v54 }
 0x760   :  { %v3372_v52 = vrot.slane %v3358_v50, %v5331_v54  ;;  %v3373_v53 = vcombine.high %v3365_v51, %v3365_v51  ;;  %v3381_v55 = vrot.slane %v3365_v51, %v5331_v54 }
 0x762   :  { %v3374_v56 = vcombine.high %v3372_v52, %v3372_v52  ;;  %v3388_v57 = vrot.slane %v3372_v52, %v5331_v54  ;;  %v3395_v58 = vrot.slane %v3373_v53, %v5331_v54  ;;  %v3403_v59 = vcombine.high %v3381_v55, %v3381_v55  ;;  %3415 = vst.msk [vmem:[#allocation6 + $0x6] sm:$0x1] %vm1008_vm2, %v3381_v55 }
 0x764   :  { %v3402_v60 = vrot.slane %v3374_v56, %v5331_v54  ;;  %v3404_v61 = vcombine.high %v3388_v57, %v3388_v57  ;;  %v3405_v1 = vcombine.high %v3395_v58, %v3395_v58  ;;  %3416 = vst.msk [vmem:[#allocation6 + $0xe] sm:$0x1] %vm1008_vm2, %v3395_v58  ;;  %3417 = vst.msk [vmem:[#allocation6 + $0x16] sm:$0x1] %vm1008_vm2, %v3403_v59 }
 0x765   :  { %3419 = vst.msk [vmem:[#allocation6 + $0x26] sm:$0x1] %vm1008_vm2, %v3388_v57  ;;  %v3423_v2 = vld [vmem:[#allocation7] sm:$0xff] }
 0x766   :  { %v3406_v9 = vcombine.high %v3402_v60, %v3402_v60  ;;  %3418 = vst.msk [vmem:[#allocation6 + $0x1e] sm:$0x1] %vm1008_vm2, %v3405_v1  ;;  %3420 = vst.msk [vmem:[#allocation6 + $0x2e] sm:$0x1] %vm1008_vm2, %v3402_v60  ;;  %4720 = vmatmul.mubr.msk.f32.vlgmr.msra.gmra.mxu0 %vm98_vm0, %v3423_v2  ;;  %4731 = vmatmul.mubr.msk.f32.vlgmr.msra.gmra.mxu1 %vm98_vm0, %v3423_v2 }
 0x767   :  { %3421 = vst.msk [vmem:[#allocation6 + $0x36] sm:$0x1] %vm1008_vm2, %v3404_v61  ;;  %4734 = vmatpush3.msra.mxu0 %v5540_v62  ;;  %4745 = vmatpush3.msra.mxu1 %v5542_v63  ;;  %v3835_v62 = vld [vmem:[#allocation15 + $0x18] sm:$0xff]  ;;  %v3834_v63 = vld [vmem:[#allocation15 + $0x10] sm:$0xff] }
 0x768   :  { %3422 = vst.msk [vmem:[#allocation6 + $0x3e] sm:$0x1] %vm1008_vm2, %v3406_v9  ;;  %4735 = vmatprep.subr.mxu0 %v5035_v0  ;;  %4746 = vmatprep.subr.mxu1 %v5035_v0  ;;  %v4094_v61 = vld [vmem:[%s5800_s5] ss:$0 sm:$0xff]  ;;  %s3985_s5 = sshll.u32 %s5038_s24, 4  ;;  %s3986_s5 = int_to_ptr.vmem [resolvable:$true] %s3985_s5 }
 0x769   :  { %4736 = vmatpush3.msra.mxu0 %v5549_v3  ;;  %4747 = vmatpush3.msra.mxu1 %v5551_v4  ;;  %v3833_v3 = vld [vmem:[#allocation15 + $0x8] sm:$0xff]  ;;  %v3832_v4 = vld [vmem:[#allocation15] sm:$0xff]  ;;  %s5001_s25 = scalar_lea.vmem %s3986_s5, 1024  ;;  %p5006_p7 = scmp.lt.s32.totalorder %s3986_s5, %s3986_s5 }
 0x76a   :  { %4737 = vmatprep.subr.mxu0 %v5035_v0  ;;  %4748 = vmatprep.subr.mxu1 %v5035_v0  ;;  %p5002_p6 = scmp.ne.s32.totalorder %s3986_s5, %s5001_s25  ;;  %p5007_p8 = scmp.lt.s32.totalorder %s5001_s25, %s5001_s25 }
 0x76b   :  { %4738 = vmatpush3.msra.mxu0 %v5558_v5  ;;  %4749 = vmatpush3.msra.mxu1 %v5560_v6  ;;  %v3429_v5 = vld [vmem:[#allocation2 + $0x38] sm:$0xff] }
 0x76c   :  { %4739 = vmatprep.subr.mxu0 %v5035_v0  ;;  %4750 = vmatprep.subr.mxu1 %v5035_v0  ;;  %p5008_p9 = por %p5007_p8, %p5006_p7 }
 0x76d   :  { %4740 = vmatpush3.msra.mxu0 %v5566_v7  ;;  %4741 = vmatprep.mubr.msk.f32.mxu0 %vm5036_vm1, %v5035_v0  ;;  %v3514_v7 = vld [vmem:[#allocation3 + $0x38] sm:$0xff] }
 0x76e   :  { %4751 = vmatpush3.msra.mxu1 %v5570_v8  ;;  %4752 = vmatprep.mubr.msk.f32.mxu1 %vm5036_vm1, %v5035_v0  ;;  %p5009_p10 = pnand %p5008_p9, %p5002_p6 }
 0x76f   :  { %4742 = vmatmul.mubr.msk.f32.vlgmr.msra.gmra.mxu0 %vm98_vm0, %v3423_v2  ;;  %4753 = vmatmul.mubr.msk.f32.vlgmr.msra.gmra.mxu1 %vm98_vm0, %v3423_v2 }
 0x770   :  { %4755 = vmatprep.subr.mxu0 %v3835_v62 }
 0x771   :  { %4756 = vmatpush3.msra.mxu0 %v3835_v62 }
 0x772   :  { %4757 = vmatprep.subr.mxu0 %v3834_v63 }
 0x773   :  { %4758 = vmatpush3.msra.mxu0 %v3834_v63 }
 0x774   :  { %4759 = vmatprep.subr.mxu0 %v3833_v3 }
 0x775   :  { %4760 = vmatpush3.msra.mxu0 %v3833_v3 }
 0x776   :  { %4761 = vmatprep.subr.mxu0 %v3832_v4 }
 0x777   :  { %4762 = vmatpush3.msra.mxu0 %v3832_v4 }
 0x826   :  { %v3499_v6 = vpop.f32.mrf.mxu0  ;;  %v3581_v0 = vpop.f32.mrf.mxu1 }
 0x827   :  { %v3500_v8 = vadd.f32 %v3499_v6, %v3429_v5  ;;  %v3582_v10 = vadd.f32 %v3581_v0, %v3514_v7 }
 0x828   :  { %v4721_v24 = vpop.f32.mrf.mxu0  ;;  %v4732_v25 = vpop.f32.mrf.mxu1 }
 0x829   :  { %v4088_v27 = vmul.f32 -1.442695, %v3500_v8  ;;  %v4090_v30 = vmul.f32 -1.442695, %v3582_v10 }
 0x82b   :  { %4905 = vpow2.f32 %v4088_v27 }
 0x82c   :  { %4907 = vpow2.f32 %v4090_v30 }
 0x82f   :  { %v3663_v31 = vpop.f32.mrf.mxu0  ;;  %v3740_v33 = vpop.f32.mrf.mxu1 }
 0x830   :  { %v3741_v36 = vadd.f32 %v3740_v33, %v3673_v34  ;;  %v3664_v35 = vadd.f32 %v3663_v31, %v3596_v32 }
 0x831   :  { %v4743_v38 = vpop.f32.mrf.mxu0  ;;  %v4754_v39 = vpop.f32.mrf.mxu1 }
 0x832   :  { %v4093_v40 = vmul.f32 -1.442695, %v3741_v36 }
 0x834   :  { %4909 = vpow2.f32 %v4093_v40 }
 0x835   :  { %4911 = vtanh.f32 %v3664_v35 }
 0x838   :  { %v4906_v41 = vpop.eup %4905 }
 0x839   :  { %v4908_v11 = vpop.eup %4907  ;;  %v3506_v28 = vadd.f32 1.0, %v4906_v41 }
 0x83a   :  { %v3588_v12 = vadd.f32 1.0, %v4908_v11 }
 0x83b   :  { %4913 = vrcp.f32 %v3506_v28 }
 0x83c   :  { %4915 = vrcp.f32 %v3588_v12 }
 0x841   :  { %v4910_v37 = vpop.eup %4909 }
 0x842   :  { %v4912_v13 = vpop.eup %4911  ;;  %v3747_v18 = vadd.f32 1.0, %v4910_v37 }
 0x844   :  { %4917 = vrcp.f32 %v3747_v18 }
 0x848   :  { %v4914_v14 = vpop.eup %4913 }
 0x849   :  { %v4916_v15 = vpop.eup %4915  ;;  %v3752_v17 = vmul.f32 %v4914_v14, %v4912_v13 }
 0x84a   :  { %v3751_v19 = vmul.f32 %v4916_v15, %v3750_v16 }
 0x84c   :  { %v3753_v20 = vadd.f32 %v3752_v17, %v3751_v19 }
 0x84e   :  { %4919 = vtanh.f32 %v3753_v20  ;;  %3756 = vst.msk [vmem:[#allocation8] sm:$0xff] %vm98_vm0, %v3753_v20 }
 0x851   :  { %v4918_v21 = vpop.eup %4917 }
 0x85b   :  { %v4920_v22 = vpop.eup %4919 }
 0x85c   :  { %v3755_v23 = vmul.f32 %v4920_v22, %v4918_v21 }
 0x85e   :  { %3757 = vst.msk [vmem:[#allocation7] sm:$0xff] %vm98_vm0, %v3755_v23  ;;  %v3759_v26 = vcombine.high %v3755_v23, %v3755_v23  ;;  %v3766_v29 = vrot.slane %v3755_v23, %v5331_v54 }
 0x860   :  { %v3773_v42 = vrot.slane %v3759_v26, %v5331_v54  ;;  %v3774_v43 = vcombine.high %v3766_v29, %v3766_v29  ;;  %v3782_v44 = vrot.slane %v3766_v29, %v5331_v54 }
 0x862   :  { %v3775_v45 = vcombine.high %v3773_v42, %v3773_v42  ;;  %v3789_v46 = vrot.slane %v3773_v42, %v5331_v54  ;;  %v3796_v47 = vrot.slane %v3774_v43, %v5331_v54  ;;  %v3804_v48 = vcombine.high %v3782_v44, %v3782_v44  ;;  %3816 = vst.msk [vmem:[#allocation6 + $0x7] sm:$0x1] %vm1008_vm2, %v3782_v44 }
 0x864   :  { %v3803_v49 = vrot.slane %v3775_v45, %v5331_v54  ;;  %v3805_v50 = vcombine.high %v3789_v46, %v3789_v46  ;;  %v3806_v51 = vcombine.high %v3796_v47, %v3796_v47  ;;  %3817 = vst.msk [vmem:[#allocation6 + $0xf] sm:$0x1] %vm1008_vm2, %v3796_v47  ;;  %3818 = vst.msk [vmem:[#allocation6 + $0x17] sm:$0x1] %vm1008_vm2, %v3804_v48 }
 0x865   :  { %3820 = vst.msk [vmem:[#allocation6 + $0x27] sm:$0x1] %vm1008_vm2, %v3789_v46 }
 0x866   :  { %v3807_v52 = vcombine.high %v3803_v49, %v3803_v49  ;;  %3819 = vst.msk [vmem:[#allocation6 + $0x1f] sm:$0x1] %vm1008_vm2, %v3806_v51  ;;  %3821 = vst.msk [vmem:[#allocation6 + $0x2f] sm:$0x1] %vm1008_vm2, %v3803_v49 }
 0x867   :  { %3822 = vst.msk [vmem:[#allocation6 + $0x37] sm:$0x1] %vm1008_vm2, %v3805_v50 }
 0x868   :  { %3823 = vst.msk [vmem:[#allocation6 + $0x3f] sm:$0x1] %vm1008_vm2, %v3807_v52 }
 0x869   :  { %v3824_v53 = vld [vmem:[#allocation6] sm:$0xff] }
 0x86a   :  { %4763 = vmatprep.mubr.msk.f32.mxu0 %vm98_vm0, %v3824_v53 }
 0x86b   :  { %v3825_v54 = vld [vmem:[#allocation6 + $0x8] sm:$0xff]  ;;  %v3826_v55 = vld [vmem:[#allocation6 + $0x10] sm:$0xff] }
 0x86c   :  { %4764 = vmatmul.mubr.msk.f32.vlgmr.msra.gmra.mxu0 %vm98_vm0, %v3825_v54  ;;  %v3828_v57 = vld [vmem:[#allocation6 + $0x20] sm:$0xff] }
 0x86d   :  { %4766 = vmatprep.mubr.msk.f32.mxu0 %vm98_vm0, %v3826_v55  ;;  %v3827_v56 = vld [vmem:[#allocation6 + $0x18] sm:$0xff]  ;;  %v3829_v58 = vld [vmem:[#allocation6 + $0x28] sm:$0xff] }
 0x86e   :  { %v3830_v59 = vld [vmem:[#allocation6 + $0x30] sm:$0xff] }
 0x86f   :  { %v3831_v60 = vld [vmem:[#allocation6 + $0x38] sm:$0xff] }
 0x870   :  { %4767 = vmatmul.mubr.msk.f32.gmra.mxu0 %vm98_vm0, %v3827_v56 }
 0x871   :  { %4769 = vmatprep.mubr.msk.f32.mxu0 %vm98_vm0, %v3828_v57 }
 0x874   :  { %4770 = vmatmul.mubr.msk.f32.gmra.mxu0 %vm98_vm0, %v3829_v58 }
 0x875   :  { %4772 = vmatprep.mubr.msk.f32.mxu0 %vm98_vm0, %v3830_v59 }
 0x878   :  { %4773 = vmatmul.mubr.msk.f32.gmra.mxu0 %vm98_vm0, %v3831_v60 }
 0x92c   :  { %v4765_v1 = vpop.f32.mrf.mxu0 }
 0x92d   :  { %v3939_v2 = vadd.f32 %v4765_v1, %v4094_v61 }
 0x92e   :  { %v3933_v9 = vpop.f32.mrf.mxu0 }
 0x92f   :  { %3973 = vst [vmem:[#allocation17 + $0x8] sm:$0xff] %v3939_v2  ;;  %v3934_v62 = vadd.f32 %v4094_v61, %v3933_v9 }
 0x930   :  { %v4768_v63 = vpop.f32.mrf.mxu0 }
 0x931   :  { %3972 = vst [vmem:[#allocation17] sm:$0xff] %v3934_v62  ;;  %v3949_v3 = vadd.f32 %v4768_v63, %v4094_v61 }
 0x932   :  { %v3943_v4 = vpop.f32.mrf.mxu0 }
 0x933   :  { %3975 = vst [vmem:[#allocation17 + $0x18] sm:$0xff] %v3949_v3  ;;  %v3944_v5 = vadd.f32 %v4094_v61, %v3943_v4 }
 0x934   :  { %v4771_v6 = vpop.f32.mrf.mxu0 }
 0x935   :  { %3974 = vst [vmem:[#allocation17 + $0x10] sm:$0xff] %v3944_v5  ;;  %v3959_v7 = vadd.f32 %v4771_v6, %v4094_v61 }
 0x936   :  { %v3953_v0 = vpop.f32.mrf.mxu0 }
 0x937   :  { %3977 = vst [vmem:[#allocation17 + $0x28] sm:$0xff] %v3959_v7  ;;  %v3954_v8 = vadd.f32 %v4094_v61, %v3953_v0 }
 0x938   :  { %v4774_v10 = vpop.f32.mrf.mxu0 }
 0x939   :  { %3976 = vst [vmem:[#allocation17 + $0x20] sm:$0xff] %v3954_v8  ;;  %v3969_v24 = vadd.f32 %v4774_v10, %v4094_v61 }
 0x93a   :  { %v3963_v25 = vpop.f32.mrf.mxu0 }
 0x93b   :  { %3979 = vst [vmem:[#allocation17 + $0x38] sm:$0xff] %v3969_v24  ;;  %v3964_v27 = vadd.f32 %v4094_v61, %v3963_v25 }
 0x93d   :  { %3978 = vst [vmem:[#allocation17 + $0x30] sm:$0xff] %v3964_v27 }
 0x93e   :  { %5012 = shalt.err (!%p5009_p10)
}
 0x93f   :  { %3991 = dma.vmem_to_hbm [thread:$0]  %s3986_s5, 1024, %s5801_s6, [#allocation11], %s5031_s26, %s5031_s26, %s5032_s27  }
 0x940   :  { %5027 = dma.done.wait [#allocation11], 1024  }
 0x941   :  { %5028 = vsyncadd [#allocation11], 4294966272 }
 0x942   :  { %3995 = vsyncpa [#allocation10], 1 }
 0x943   :  { %3996 = vsyncpa [#allocation13], 1 }
 0x944   :  { %3997 = vsyncpa [#allocation16], 1 }
 0x945   :  { %3998 = vsyncpa [#allocation11], 1 }

</bundles_post_ra>
